<compile_context>
chip_gen: v7x
topology: tpu7x:2x2x1
jax: 0.10.0
libtpu: 0.0.40
codegen_flags: <defaults>
</compile_context>

<pallas_src>
import functools

import jax
import jax.numpy as jnp
import numpy as np
from jax.experimental import pallas as pl
from jax.experimental.pallas import tpu as pltpu


def _elu(x):
    # ELU with alpha=1 (matches torch.nn.ELU default); overflow-safe.
    return jnp.where(x > 0, x, jnp.exp(jnp.minimum(x, 0.0)) - 1.0)


def _round_up(a, b):
    return (a + b - 1) // b * b


def _speech_deconv_kernel(x_ref, w_ref, p_ref, o_ref, *, kw_taps, w_out, cout):
    """One (batch, row-block) tile.

    x_ref : (1, TH, W_pad, kH*Cin)  activation rows, vertical taps pre-folded
    w_ref : (kW, kH*Cin, 2*Cout)    fused [ln | gate] per-horizontal-tap weights
    p_ref : (8, Cout)               rows: b_ln, ln_scale, ln_shift, g_scale, g_shift'
    o_ref : (1, TH, W_out, Cout)
    """
    th = x_ref.shape[1]
    c2 = x_ref.shape[3]

    # Accumulate the kW horizontal taps from the VMEM-resident block:
    # one fused (rows, C2) x (C2, 2*Cout) MXU pass per tap, f32 accumulation.
    acc = None
    for kw in range(kw_taps):                       # static, small
        xs = x_ref[0, :, kw:kw + w_out, :].reshape(th * w_out, c2)
        part = jnp.dot(xs, w_ref[kw], preferred_element_type=jnp.float32)
        acc = part if acc is None else acc + part

    b_ln = p_ref[0:1, :]
    l_s = p_ref[1:2, :]
    l_sh = p_ref[2:3, :]
    g_s = p_ref[3:4, :]
    g_sh = p_ref[4:5, :]                            # gate bias already folded in

    ln = _elu(acc[:, :cout] + b_ln)                 # ELU(convT + b_ln)
    ln = _elu(ln * l_s + l_sh)                      # ELU(BN(.)) (eval-mode BN folded)
    gate = jax.nn.sigmoid(acc[:, cout:] * g_s + g_sh)   # sigmoid(BN(convT + b_gate))

    o_ref[...] = (ln * gate).reshape(o_ref.shape).astype(o_ref.dtype)


def speech_deconv(x, params, *, stride, padding, output_padding, eps=1e-5,
                  block_rows=512, operand_dtype=jnp.float32):
    """x: NCHW float32.  Returns NCHW float32 (same semantics as SpeechDeConv.forward)."""
    N, Cin, H, W = x.shape
    w_ln = params["w_ln"]                           # [Cin, Cout, kH, kW]
    w_gate = params["w_gate"]
    Cout, kH, kW = w_ln.shape[1], w_ln.shape[2], w_ln.shape[3]
    sH, sW = stride
    pH, pW = padding
    opH, opW = output_padding

    H_out = (H - 1) * sH - 2 * pH + kH + opH
    W_out = (W - 1) * sW - 2 * pW + kW + opW
    W_pad = W_out + kW - 1
    C2 = kH * Cin

    # --- XLA glue: ConvTranspose2d -> zero-dilated, padded NHWC activation ----
    xn = x.astype(jnp.float32).transpose(0, 2, 3, 1)                  # NHWC
    y = jnp.zeros((N, (H - 1) * sH + 1, (W - 1) * sW + 1, Cin), jnp.float32)
    y = y.at[:, ::sH, ::sW, :].set(xn)
    y = jnp.pad(y, ((0, 0),
                    (kH - 1 - pH, kH - 1 - pH + opH),
                    (kW - 1 - pW, kW - 1 - pW + opW),
                    (0, 0)))                                          # [N, H_out+kH-1, W_pad, Cin]

    # Fold only the kH vertical taps into the channel axis (kH x, not kH*kW x);
    # channel index = kh*Cin + ci, matching the weight packing below.
    yh = jnp.concatenate([y[:, kh:kh + H_out] for kh in range(kH)], axis=-1)  # [N, H_out, W_pad, C2]

    # --- row-block tiling (multiple of 8 sublanes, ~block_rows output rows) ---
    th = max(block_rows // max(W_out, 1), 8)
    th = (th // 8) * 8
    th = min(th, _round_up(H_out, 8))
    H_out_pad = _round_up(H_out, th)
    yh = jnp.pad(yh, ((0, 0), (0, H_out_pad - H_out), (0, 0), (0, 0)))
    yh = yh.astype(operand_dtype)

    # --- weights: equivalent forward-conv taps, fused [ln | gate] ------------
    def conv_w(w):   # [Cin, Cout, kH, kW] -> [kH, kW, Cin, Cout], spatially flipped
        return jnp.flip(w, axis=(2, 3)).transpose(2, 3, 0, 1)

    wconv = jnp.concatenate([conv_w(w_ln), conv_w(w_gate)], axis=-1)  # [kH, kW, Cin, 2*Cout]
    wtap = wconv.transpose(1, 0, 2, 3).reshape(kW, C2, 2 * Cout)      # row idx = kh*Cin + ci
    wtap = wtap.astype(operand_dtype)

    # --- eval-mode BN folded to per-channel scale/shift; gate bias folded -----
    def bn_fold(gamma, beta, mean, var):
        s = gamma / jnp.sqrt(var + eps)
        return s, beta - mean * s

    l_s, l_sh = bn_fold(params["ln_bn_gamma"], params["ln_bn_beta"],
                        params["ln_bn_mean"], params["ln_bn_var"])
    g_s, g_sh = bn_fold(params["gate_bn_gamma"], params["gate_bn_beta"],
                        params["gate_bn_mean"], params["gate_bn_var"])
    g_sh = g_sh + params["b_gate"] * g_s            # fold gate bias into BN shift

    par = jnp.zeros((8, Cout), jnp.float32)
    par = par.at[0].set(params["b_ln"]).at[1].set(l_s).at[2].set(l_sh)
    par = par.at[3].set(g_s).at[4].set(g_sh)

    n_hb = H_out_pad // th
    grid = (N, n_hb)

    kernel = functools.partial(_speech_deconv_kernel,
                               kw_taps=kW, w_out=W_out, cout=Cout)

    cost = pl.CostEstimate(
        flops=int(2 * N * H_out_pad * W_out * kH * kW * Cin * 2 * Cout),
        transcendentals=int(3 * N * H_out_pad * W_out * Cout),
        bytes_accessed=int(yh.size * yh.dtype.itemsize
                           + wtap.size * wtap.dtype.itemsize
                           + par.size * par.dtype.itemsize
                           + N * H_out_pad * W_out * Cout * 4))

    out = pl.pallas_call(
        kernel,
        out_shape=jax.ShapeDtypeStruct((N, H_out_pad, W_out, Cout), jnp.float32),
        grid=grid,
        in_specs=[
            # activation row-block: DMA'd per grid step (double-buffered)
            pl.BlockSpec((1, th, W_pad, C2), lambda n, hb: (n, hb, 0, 0)),
            # fused weights + packed per-channel params: constant index -> resident
            pl.BlockSpec((kW, C2, 2 * Cout), lambda n, hb: (0, 0, 0)),
            pl.BlockSpec((8, Cout), lambda n, hb: (0, 0)),
        ],
        out_specs=pl.BlockSpec((1, th, W_out, Cout), lambda n, hb: (n, hb, 0, 0)),
        compiler_params=pltpu.CompilerParams(
            dimension_semantics=("parallel", "parallel"),
            vmem_limit_bytes=32 * 1024 * 1024),
        cost_estimate=cost,
    )(yh, wtap, par)

    out = out[:, :H_out]                            # drop padded rows
    # NHWC -> NCHW for the PyTorch-compatible return layout.
    return out.transpose(0, 3, 1, 2)


# ----------------------------- reference (pure JAX/XLA) -----------------------
def _conv_transpose_ref(x, w, b, stride, padding, output_padding):
    kH, kW = w.shape[2], w.shape[3]
    w_conv = jnp.flip(w, axis=(2, 3)).transpose(1, 0, 2, 3)   # [Cout, Cin, kH, kW]
    out = jax.lax.conv_general_dilated(
        x, w_conv, window_strides=(1, 1),
        padding=[(kH - 1 - padding[0], kH - 1 - padding[0] + output_padding[0]),
                 (kW - 1 - padding[1], kW - 1 - padding[1] + output_padding[1])],
        lhs_dilation=stride, rhs_dilation=(1, 1),
        dimension_numbers=("NCHW", "OIHW", "NCHW"))
    return out + b[None, :, None, None]


def _reference(x, params, *, stride, padding, output_padding, eps=1e-5):
    ln = _conv_transpose_ref(x, params["w_ln"], params["b_ln"],
                             stride, padding, output_padding)
    ln = _elu(ln)
    ln = (ln - params["ln_bn_mean"][None, :, None, None]) / jnp.sqrt(
        params["ln_bn_var"][None, :, None, None] + eps)
    ln = ln * params["ln_bn_gamma"][None, :, None, None] + params["ln_bn_beta"][None, :, None, None]
    ln = _elu(ln)

    gate = _conv_transpose_ref(x, params["w_gate"], params["b_gate"],
                               stride, padding, output_padding)
    gate = (gate - params["gate_bn_mean"][None, :, None, None]) / jnp.sqrt(
        params["gate_bn_var"][None, :, None, None] + eps)
    gate = gate * params["gate_bn_gamma"][None, :, None, None] + params["gate_bn_beta"][None, :, None, None]
    gate = jax.nn.sigmoid(gate)
    return ln * gate


if __name__ == "__main__":
    # Small shapes consistent with the module: NCHW input, 3x3 deconv, stride 2.
    N, Cin, H, W = 2, 4, 16, 16
    Cout, kH, kW = 8, 3, 3
    stride, padding, output_padding = (2, 2), (1, 1), (1, 1)

    key = jax.random.PRNGKey(0)
    ks = jax.random.split(key, 12)
    params = {
        "w_ln":   0.1 * jax.random.normal(ks[0], (Cin, Cout, kH, kW), jnp.float32),
        "b_ln":   0.1 * jax.random.normal(ks[1], (Cout,), jnp.float32),
        "w_gate": 0.1 * jax.random.normal(ks[2], (Cin, Cout, kH, kW), jnp.float32),
        "b_gate": 0.1 * jax.random.normal(ks[3], (Cout,), jnp.float32),
        "ln_bn_gamma":   1.0 + 0.1 * jax.random.normal(ks[4], (Cout,), jnp.float32),
        "ln_bn_beta":    0.1 * jax.random.normal(ks[5], (Cout,), jnp.float32),
        "ln_bn_mean":    0.1 * jax.random.normal(ks[6], (Cout,), jnp.float32),
        "ln_bn_var":     0.5 + jax.random.uniform(ks[7], (Cout,), jnp.float32),
        "gate_bn_gamma": 1.0 + 0.1 * jax.random.normal(ks[8], (Cout,), jnp.float32),
        "gate_bn_beta":  0.1 * jax.random.normal(ks[9], (Cout,), jnp.float32),
        "gate_bn_mean":  0.1 * jax.random.normal(ks[10], (Cout,), jnp.float32),
        "gate_bn_var":   0.5 + jax.random.uniform(key, (Cout,), jnp.float32),
    }
    x = jax.random.normal(ks[11], (N, Cin, H, W), jnp.float32)

    ref = _reference(x, params, stride=stride, padding=padding,
                     output_padding=output_padding)

    # f32 operands: tight tolerance against the XLA reference.
    fn = functools.partial(speech_deconv, stride=stride, padding=padding,
                           output_padding=output_padding)
    out = jax.block_until_ready(jax.jit(fn)(x, params))
    np.testing.assert_allclose(np.asarray(out), np.asarray(ref), rtol=1e-4, atol=1e-4)

    # bf16 operands (f32 accumulation + f32 elementwise): loose tolerance.
    fn_bf16 = functools.partial(speech_deconv, stride=stride, padding=padding,
                                output_padding=output_padding,
                                operand_dtype=jnp.bfloat16)
    out_bf16 = jax.block_until_ready(jax.jit(fn_bf16)(x, params))
    np.testing.assert_allclose(np.asarray(out_bf16), np.asarray(ref),
                               rtol=5e-2, atol=5e-2)

    print("KERNEL_OK")
</pallas_src>

<mosaic_0001>
module attributes {stable_mosaic.version = 11 : i64} {
  func.func @_speech_deconv_kernel(%arg0: i32, %arg1: i32, %arg2: memref<1x16x34x12xf32, #tpu.memory_space<vmem>>, %arg3: memref<3x12x16xf32, #tpu.memory_space<vmem>>, %arg4: memref<8x8xf32, #tpu.memory_space<vmem>>, %arg5: memref<1x16x32x8xf32, #tpu.memory_space<vmem>>) attributes {dimension_semantics = [#tpu.dimension_semantics<parallel>, #tpu.dimension_semantics<parallel>], iteration_bounds = array<i64: 2, 2>, scalar_prefetch = 0 : i64, scratch_operands = 0 : i64, tpu.core_type = #tpu.core_type<tc>, window_params = [{transform_indices = @transform_0, window_bounds = array<i64: 1, 16, 34, 12>}, {pipeline_mode = #tpu.pipeline_mode<synchronous>, transform_indices = @transform_1, window_bounds = array<i64: 3, 12, 16>}, {pipeline_mode = #tpu.pipeline_mode<synchronous>, transform_indices = @transform_2, window_bounds = array<i64: 8, 8>}, {transform_indices = @transform_3, window_bounds = array<i64: 1, 16, 32, 8>}]} {
    %c0 = arith.constant 0 : index
    %c0_0 = arith.constant 0 : index
    %c0_1 = arith.constant 0 : index
    %c0_2 = arith.constant 0 : index
    %0 = vector.load %arg2[%c0, %c0_0, %c0_1, %c0_2] : memref<1x16x34x12xf32, #tpu.memory_space<vmem>>, vector<1x16x32x12xf32>
    %1 = vector.shape_cast %0 : vector<1x16x32x12xf32> to vector<16x32x12xf32>
    %2 = vector.shape_cast %1 : vector<16x32x12xf32> to vector<512x12xf32>
    %c0_3 = arith.constant 0 : index
    %c0_4 = arith.constant 0 : index
    %c0_5 = arith.constant 0 : index
    %3 = vector.load %arg3[%c0_3, %c0_4, %c0_5] : memref<3x12x16xf32, #tpu.memory_space<vmem>>, vector<1x12x16xf32>
    %4 = vector.shape_cast %3 : vector<1x12x16xf32> to vector<12x16xf32>
    %cst = arith.constant dense<0.000000e+00> : vector<512x16xf32>
    %5 = tpu.matmul %2, %4, %cst {dimension_numbers = #tpu.dot_dimension_numbers<[1], [0], [0], [1], [0, 0, 1, 1], [], []>} : vector<512x12xf32>, vector<12x16xf32>, vector<512x16xf32> -> vector<512x16xf32>
    %c0_6 = arith.constant 0 : index
    %c0_7 = arith.constant 0 : index
    %c1 = arith.constant 1 : index
    %c0_8 = arith.constant 0 : index
    %6 = vector.load %arg2[%c0_6, %c0_7, %c1, %c0_8] : memref<1x16x34x12xf32, #tpu.memory_space<vmem>>, vector<1x16x32x12xf32>
    %7 = vector.shape_cast %6 : vector<1x16x32x12xf32> to vector<16x32x12xf32>
    %8 = vector.shape_cast %7 : vector<16x32x12xf32> to vector<512x12xf32>
    %c1_9 = arith.constant 1 : index
    %c0_10 = arith.constant 0 : index
    %c0_11 = arith.constant 0 : index
    %9 = vector.load %arg3[%c1_9, %c0_10, %c0_11] : memref<3x12x16xf32, #tpu.memory_space<vmem>>, vector<1x12x16xf32>
    %10 = vector.shape_cast %9 : vector<1x12x16xf32> to vector<12x16xf32>
    %cst_12 = arith.constant dense<0.000000e+00> : vector<512x16xf32>
    %11 = tpu.matmul %8, %10, %cst_12 {dimension_numbers = #tpu.dot_dimension_numbers<[1], [0], [0], [1], [0, 0, 1, 1], [], []>} : vector<512x12xf32>, vector<12x16xf32>, vector<512x16xf32> -> vector<512x16xf32>
    %12 = arith.addf %5, %11 : vector<512x16xf32>
    %c0_13 = arith.constant 0 : index
    %c0_14 = arith.constant 0 : index
    %c2 = arith.constant 2 : index
    %c0_15 = arith.constant 0 : index
    %13 = vector.load %arg2[%c0_13, %c0_14, %c2, %c0_15] : memref<1x16x34x12xf32, #tpu.memory_space<vmem>>, vector<1x16x32x12xf32>
    %14 = vector.shape_cast %13 : vector<1x16x32x12xf32> to vector<16x32x12xf32>
    %15 = vector.shape_cast %14 : vector<16x32x12xf32> to vector<512x12xf32>
    %c2_16 = arith.constant 2 : index
    %c0_17 = arith.constant 0 : index
    %c0_18 = arith.constant 0 : index
    %16 = vector.load %arg3[%c2_16, %c0_17, %c0_18] : memref<3x12x16xf32, #tpu.memory_space<vmem>>, vector<1x12x16xf32>
    %17 = vector.shape_cast %16 : vector<1x12x16xf32> to vector<12x16xf32>
    %cst_19 = arith.constant dense<0.000000e+00> : vector<512x16xf32>
    %18 = tpu.matmul %15, %17, %cst_19 {dimension_numbers = #tpu.dot_dimension_numbers<[1], [0], [0], [1], [0, 0, 1, 1], [], []>} : vector<512x12xf32>, vector<12x16xf32>, vector<512x16xf32> -> vector<512x16xf32>
    %19 = arith.addf %12, %18 : vector<512x16xf32>
    %c0_20 = arith.constant 0 : index
    %c0_21 = arith.constant 0 : index
    %20 = vector.load %arg4[%c0_20, %c0_21] : memref<8x8xf32, #tpu.memory_space<vmem>>, vector<1x8xf32>
    %c1_22 = arith.constant 1 : index
    %c0_23 = arith.constant 0 : index
    %21 = vector.load %arg4[%c1_22, %c0_23] : memref<8x8xf32, #tpu.memory_space<vmem>>, vector<1x8xf32>
    %c2_24 = arith.constant 2 : index
    %c0_25 = arith.constant 0 : index
    %22 = vector.load %arg4[%c2_24, %c0_25] : memref<8x8xf32, #tpu.memory_space<vmem>>, vector<1x8xf32>
    %c3 = arith.constant 3 : index
    %c0_26 = arith.constant 0 : index
    %23 = vector.load %arg4[%c3, %c0_26] : memref<8x8xf32, #tpu.memory_space<vmem>>, vector<1x8xf32>
    %c4 = arith.constant 4 : index
    %c0_27 = arith.constant 0 : index
    %24 = vector.load %arg4[%c4, %c0_27] : memref<8x8xf32, #tpu.memory_space<vmem>>, vector<1x8xf32>
    %25 = vector.extract_strided_slice %19 {offsets = [0, 0], sizes = [512, 8], strides = [1, 1]} : vector<512x16xf32> to vector<512x8xf32>
    %26 = vector.broadcast %20 : vector<1x8xf32> to vector<512x8xf32>
    %27 = arith.addf %25, %26 : vector<512x8xf32>
    %cst_28 = arith.constant 0.000000e+00 : f32
    %28 = vector.broadcast %cst_28 : f32 to vector<512x8xf32>
    %29 = arith.cmpf ogt, %27, %28 : vector<512x8xf32>
    %cst_29 = arith.constant 0.000000e+00 : f32
    %30 = vector.broadcast %cst_29 : f32 to vector<512x8xf32>
    %31 = arith.minimumf %27, %30 : vector<512x8xf32>
    %32 = math.exp %31 : vector<512x8xf32>
    %cst_30 = arith.constant 1.000000e+00 : f32
    %33 = vector.broadcast %cst_30 : f32 to vector<512x8xf32>
    %34 = arith.subf %32, %33 : vector<512x8xf32>
    %35 = arith.select %29, %27, %34 : vector<512x8xi1>, vector<512x8xf32>
    %36 = vector.broadcast %21 : vector<1x8xf32> to vector<512x8xf32>
    %37 = arith.mulf %35, %36 : vector<512x8xf32>
    %38 = vector.broadcast %22 : vector<1x8xf32> to vector<512x8xf32>
    %39 = arith.addf %37, %38 : vector<512x8xf32>
    %cst_31 = arith.constant 0.000000e+00 : f32
    %40 = vector.broadcast %cst_31 : f32 to vector<512x8xf32>
    %41 = arith.cmpf ogt, %39, %40 : vector<512x8xf32>
    %cst_32 = arith.constant 0.000000e+00 : f32
    %42 = vector.broadcast %cst_32 : f32 to vector<512x8xf32>
    %43 = arith.minimumf %39, %42 : vector<512x8xf32>
    %44 = math.exp %43 : vector<512x8xf32>
    %cst_33 = arith.constant 1.000000e+00 : f32
    %45 = vector.broadcast %cst_33 : f32 to vector<512x8xf32>
    %46 = arith.subf %44, %45 : vector<512x8xf32>
    %47 = arith.select %41, %39, %46 : vector<512x8xi1>, vector<512x8xf32>
    %48 = vector.extract_strided_slice %19 {offsets = [0, 8], sizes = [512, 8], strides = [1, 1]} : vector<512x16xf32> to vector<512x8xf32>
    %49 = vector.broadcast %23 : vector<1x8xf32> to vector<512x8xf32>
    %50 = arith.mulf %48, %49 : vector<512x8xf32>
    %51 = vector.broadcast %24 : vector<1x8xf32> to vector<512x8xf32>
    %52 = arith.addf %50, %51 : vector<512x8xf32>
    %53 = arith.negf %52 : vector<512x8xf32>
    %54 = math.exp %53 : vector<512x8xf32>
    %cst_34 = arith.constant 1.000000e+00 : f32
    %55 = vector.broadcast %cst_34 : f32 to vector<512x8xf32>
    %56 = arith.addf %55, %54 : vector<512x8xf32>
    %57 = arith.divf %55, %56 : vector<512x8xf32>
    %58 = arith.mulf %47, %57 : vector<512x8xf32>
    %59 = vector.shape_cast %58 : vector<512x8xf32> to vector<1x16x32x8xf32>
    %c0_35 = arith.constant 0 : index
    %c0_36 = arith.constant 0 : index
    %c0_37 = arith.constant 0 : index
    %c0_38 = arith.constant 0 : index
    %60 = vector.load %arg5[%c0_35, %c0_36, %c0_37, %c0_38] : memref<1x16x32x8xf32, #tpu.memory_space<vmem>>, vector<1x16x32x8xf32>
    tpu.vector_store %arg5[%c0_35, %c0_36, %c0_37, %c0_38], %59 {strides = array<i32>} : memref<1x16x32x8xf32, #tpu.memory_space<vmem>>, vector<1x16x32x8xf32>,
    return
  }
  func.func @transform_0(%arg0: i32, %arg1: i32) -> (i32, i32, i32, i32) {
    %c0_i32 = arith.constant 0 : i32
    %c0_i32_0 = arith.constant 0 : i32
    %c0_i32_1 = arith.constant 0 : i32
    return %arg0, %arg1, %c0_i32, %c0_i32_0 : i32, i32, i32, i32
  }
  func.func @transform_1(%arg0: i32, %arg1: i32) -> (i32, i32, i32) {
    %c0_i32 = arith.constant 0 : i32
    %c0_i32_0 = arith.constant 0 : i32
    %c0_i32_1 = arith.constant 0 : i32
    %c0_i32_2 = arith.constant 0 : i32
    return %c0_i32, %c0_i32_0, %c0_i32_1 : i32, i32, i32
  }
  func.func @transform_2(%arg0: i32, %arg1: i32) -> (i32, i32) {
    %c0_i32 = arith.constant 0 : i32
    %c0_i32_0 = arith.constant 0 : i32
    %c0_i32_1 = arith.constant 0 : i32
    return %c0_i32, %c0_i32_0 : i32, i32
  }
  func.func @transform_3(%arg0: i32, %arg1: i32) -> (i32, i32, i32, i32) {
    %c0_i32 = arith.constant 0 : i32
    %c0_i32_0 = arith.constant 0 : i32
    %c0_i32_1 = arith.constant 0 : i32
    return %arg0, %arg1, %c0_i32, %c0_i32_0 : i32, i32, i32, i32
  }
}

</mosaic_0001>

<bundles_post_ra>
// kernel: speech_deconv.1
= control target key start
LH: loop header
LB: loop body
LE: loop exit
PB: predicated region body
PF: predicated region fallthrough
CT: control target
= control target key end

     0   :  { %s5889_s12 = smov 0   ;;  %s5891_s13 = smov 0   ;;  %s8686_s0 = inlined_call_operand.vmem [shape: f32[2,32,34,12], index: 0, kind: input, shape index: {}]   ;;  %s8687_s1 = inlined_call_operand.vmem [shape: f32[3,12,16], index: 1, kind: input, shape index: {}]   ;;  %s8688_s2 = inlined_call_operand.vmem [shape: f32[8,8], index: 2, kind: input, shape index: {}]   ;;  %s8689_s3 = inlined_call_operand.vmem [shape: f32[2,32,32,8], index: 3, kind: output, shape index: {}]  }
   0x1   :  { %s5893_s14 = smov 0   ;;  %s5895_s15 = smov 0  }
   0x2   :  { %s5897_s16 = smov 0  }
   0x3 LB: > { %s22_s17 = sadd.s32 1, %s5856_s14  ;;  %s25_s18 = sadd.s32 1, %s5860_s15  ;;  %s5864_s16 = sphi %s5897_s16, %s13_s16   ;;  %s5860_s15 = sphi %s5895_s15, %s8925_s15   ;;  %s5856_s14 = sphi %s5893_s14, %s8924_s14   ;;  %s5852_s13 = sphi %s5891_s13, %s8923_s13   ;;  %s5848_s12 = sphi %s5889_s12, %s8922_s12  }
   0x4   : > { %p23_p0 = scmp.ge.s32.totalorder %s22_s17, 2  ;;  %p4214_p1 = scmp.ge.s32.totalorder %s5864_s16, 1 }
   0x5   : > { %p159_p2 = scmp.lt.s32.totalorder %s5864_s16, 5 }
   0x6   : > { %s8927_s17 = smov (%p23_p0, %s22_s17), 0  ;;  %s8929_s18 = smov (!%p23_p0, %s25_s18), %s5860_s15 }
   0x7   : > { %p160_p3 = pnand %p4214_p1, %p159_p2  ;;  %p27_p4 = scmp.ge.s32.totalorder %s8929_s18, 2 }
   0x9   : > { %s8931_s18 = smov (%p27_p4, %s8929_s18), 0  ;;  %163 = sbr.rel (%p160_p3) target bundleno = 700 (0x2bc), region = 32 }
  0x10   : > { %v279_v0 = vld [vmem:[%s8687_s1] sm:$0xff]  ;;  %v280_v1 = vld [vmem:[%s8687_s1 + $0x8] sm:$0xf]  ;;  %vm541_vm0 = vcmask 1043456   ;;  %v4221_v2 = vld [vmem:[%s8687_s1 + $0x10] sm:$0xff]  ;;  %vm5866_vm1 = vmmov 1  }
  0x11   : > { %vm5932_vm2 = vmpackc.low %vm541_vm0, %vm5866_vm1  ;;  %v5123_v4 = vpack.c.bf16 %v280_v1, %v279_v0  ;;  %v4222_v5 = vld [vmem:[%s8687_s1 + $0x18] sm:$0xf]  ;;  %s4215_s27 = sshll.u32 %s5848_s12, 4  ;;  %p194_p5 = scmp.lt.s32.totalorder %s5852_s13, 1  ;;  %v4353_v6 = vld [vmem:[%s8687_s1 + $0x20] sm:$0xff]  ;;  %vm348_vm3 = vcmask 97280  }
  0x12   : > { %v5117_v7 = vpack.c.bf16 %v4222_v5, %v4221_v2  ;;  %p196_p6 = scmp.lt.s32.totalorder %s4215_s27, 31  ;;  %v4354_v8 = vld [vmem:[%s8687_s1 + $0x28] sm:$0xf]  ;;  %s5867_s20 = smov 8  }
  0x13   : > { %5125 = vmatprep.subr.msk.bf16.mxu0 %vm5932_vm2, %v5123_v4  ;;  %s8933_s13 = smov (!%p194_p5, %s5852_s13), 1  ;;  %v5129_v9 = vpack.c.bf16 %v4354_v8, %v4353_v6  ;;  %s5868_s25 = smov 120  }
  0x14   : > { %5119 = vmatprep.subr.msk.bf16.mxu1 %vm5932_vm2, %v5117_v7  ;;  %5128 = vmatpush3.bf16.msk.msra.mxu0 %vm5932_vm2, %v5123_v4  ;;  %s8935_s27 = smov (!%p196_p6, %s4215_s27), 31  ;;  %s5266_s5 = smul.u32 160, %s8933_s13 }
  0x15   : > { %5122 = vmatpush3.bf16.msk.msra.mxu1 %vm5932_vm2, %v5117_v7  ;;  %5131 = vmatprep.subr.msk.bf16.mxu0 %vm5932_vm2, %v5129_v9  ;;  %s5265_s6 = smul.u32 5, %s8935_s27  ;;  %s4219_s9 = sshll.u32 %s8933_s13, 7 }
  0x16   : > { %5135 = vmatprep.subr.msk.bf16.mxu1 %vm5932_vm2, %v5123_v4 }
  0x17   : > { %s200_s7 = sadd.s32 %s5266_s5, %s5265_s6 }
  0x18   : > { %s4216_s8 = sshll.u32 %s200_s7, 3 }
  0x19   : > { %s5969_s11 = scalar_lea.vmem %s8686_s0, %s4216_s8  ;;  %s4218_s8 = sshll.u32 %s8935_s27, 2 }
  0x1a   : > { %v281_v10 = vld [vmem:[%s5969_s11 + $0x1] sm:$0xff]  ;;  %v282_v12 = vld [vmem:[%s5969_s11 + $0x9] sm:$0xff]  ;;  %v283_v14 = vld [vmem:[%s5969_s11 + $0x11] sm:$0xff]  ;;  %s7840_s13 = sadd.s32 %s4219_s9, %s4218_s8 }
  0x1b   : > { %v215_v11 = vld [vmem:[%s5969_s11] sm:$0xff]  ;;  %4821 = vmatprep.mubr.msk.f32.mxu1 %vm348_vm3, %v281_v10  ;;  %v216_v13 = vld [vmem:[%s5969_s11 + $0x8] sm:$0xff]  ;;  %v217_v15 = vld [vmem:[%s5969_s11 + $0x10] sm:$0xff]  ;;  %s4220_s27 = sshll.u32 %s7840_s13, 3 }
  0x1c   : > { %4921 = vmatprep.mubr.msk.f32.mxu0 %vm348_vm3, %v215_v11  ;;  %4822 = vmatmul.mubr.msk.f32.vlgmr.msra.gmra.mrb[0].mxu1 %vm348_vm3, %v282_v12  ;;  %v284_v16 = vld [vmem:[%s5969_s11 + $0x19] sm:$0xff]  ;;  %v285_v18 = vld [vmem:[%s5969_s11 + $0x29] sm:$0xff]  ;;  %v286_v20 = vld [vmem:[%s5969_s11 + $0x31] sm:$0xff]  ;;  %s7881_s12 = scalar_lea.vmem %s8689_s3, %s4220_s27 }
  0x1d   : > { %4922 = vmatmul.mubr.msk.f32.vlgmr.msra.gmra.mrb[0].mxu0 %vm348_vm3, %v216_v13  ;;  %4824 = vmatprep.mubr.msk.f32.mxu1 %vm348_vm3, %v283_v14  ;;  %v218_v17 = vld [vmem:[%s5969_s11 + $0x18] sm:$0xff]  ;;  %v219_v19 = vld [vmem:[%s5969_s11 + $0x28] sm:$0xff]  ;;  %v220_v21 = vld [vmem:[%s5969_s11 + $0x30] sm:$0xff] }
  0x1e   : > { %5134 = vmatpush3.bf16.msk.msra.mxu0 %vm5932_vm2, %v5129_v9  ;;  %5136 = vmatpush3.bf16.msk.msra.mxu1 %vm5932_vm2, %v5123_v4  ;;  %v287_v22 = vld [vmem:[%s5969_s11 + $0x39] sm:$0xff]  ;;  %v288_v24 = vld [vmem:[%s5969_s11 + $0x41] sm:$0xff]  ;;  %v289_v26 = vld [vmem:[%s5969_s11 + $0x51] sm:$0xff] }
  0x1f   : > { %4924 = vmatprep.mubr.msk.f32.mxu0 %vm348_vm3, %v217_v15  ;;  %v221_v23 = vld [vmem:[%s5969_s11 + $0x38] sm:$0xff]  ;;  %v222_v25 = vld [vmem:[%s5969_s11 + $0x40] sm:$0xff]  ;;  %v223_v27 = vld [vmem:[%s5969_s11 + $0x50] sm:$0xff] }
  0x20   : > { %4825 = vmatmul.mubr.msk.f32.gmra.mrb[2].mxu1 %vm348_vm3, %v284_v16  ;;  %v290_v28 = vld [vmem:[%s5969_s11 + $0x59] sm:$0xff]  ;;  %v291_v30 = vld [vmem:[%s5969_s11 + $0x61] sm:$0xff]  ;;  %v292_v32 = vld [vmem:[%s5969_s11 + $0x69] sm:$0xff] }
  0x21   : > { %4925 = vmatmul.mubr.msk.f32.gmra.mrb[2].mxu0 %vm348_vm3, %v218_v17  ;;  %4827 = vmatprep.mubr.msk.f32.mxu1 %vm348_vm3, %v285_v18  ;;  %v224_v29 = vld [vmem:[%s5969_s11 + $0x58] sm:$0xff]  ;;  %v225_v31 = vld [vmem:[%s5969_s11 + $0x60] sm:$0xff]  ;;  %v226_v33 = vld [vmem:[%s5969_s11 + $0x68] sm:$0xff] }
  0x22   : > { %4927 = vmatprep.mubr.msk.f32.mxu0 %vm348_vm3, %v219_v19  ;;  %v293_v34 = vld [vmem:[%s5969_s11 + $0x79] sm:$0xff]  ;;  %v294_v36 = vld [vmem:[%s5969_s11 + $0x81] sm:$0xff]  ;;  %v295_v38 = vld [vmem:[%s5969_s11 + $0x89] sm:$0xff] }
  0x23   : > { %v227_v35 = vld [vmem:[%s5969_s11 + $0x78] sm:$0xff]  ;;  %v228_v37 = vld [vmem:[%s5969_s11 + $0x80] sm:$0xff]  ;;  %v229_v39 = vld [vmem:[%s5969_s11 + $0x88] sm:$0xff] }
  0x24   : > { %4828 = vmatmul.mubr.msk.f32.gmra.mrb[4].mxu1 %vm348_vm3, %v286_v20  ;;  %v296_v40 = vld [vmem:[%s5969_s11 + $0x91] sm:$0xff]  ;;  %v297_v42 = vld [vmem:[%s5969_s11 + $0xa1] sm:$0xff]  ;;  %v298_v44 = vld [vmem:[%s5969_s11 + $0xa9] sm:$0xff] }
  0x25   : > { %4928 = vmatmul.mubr.msk.f32.gmra.mrb[4].mxu0 %vm348_vm3, %v220_v21  ;;  %4830 = vmatprep.mubr.msk.f32.mxu1 %vm348_vm3, %v287_v22  ;;  %v230_v41 = vld [vmem:[%s5969_s11 + $0x90] sm:$0xff]  ;;  %v231_v43 = vld [vmem:[%s5969_s11 + $0xa0] sm:$0xff]  ;;  %v232_v45 = vld [vmem:[%s5969_s11 + $0xa8] sm:$0xff] }
  0x26   : > { %4930 = vmatprep.mubr.msk.f32.mxu0 %vm348_vm3, %v221_v23  ;;  %v299_v46 = vld [vmem:[%s5969_s11 + $0xb1] sm:$0xff]  ;;  %v300_v48 = vld [vmem:[%s5969_s11 + $0xb9] sm:$0xff]  ;;  %v301_v50 = vld [vmem:[%s5969_s11 + $0xc9] sm:$0xff] }
  0x27   : > { %v233_v47 = vld [vmem:[%s5969_s11 + $0xb0] sm:$0xff]  ;;  %v234_v49 = vld [vmem:[%s5969_s11 + $0xb8] sm:$0xff]  ;;  %v235_v51 = vld [vmem:[%s5969_s11 + $0xc8] sm:$0xff] }
  0x28   : > { %4831 = vmatmul.mubr.msk.f32.gmra.mrb[6].mxu1 %vm348_vm3, %v288_v24  ;;  %v302_v52 = vld [vmem:[%s5969_s11 + $0xd1] sm:$0xff]  ;;  %v303_v54 = vld [vmem:[%s5969_s11 + $0xd9] sm:$0xff]  ;;  %v304_v56 = vld [vmem:[%s5969_s11 + $0xe1] sm:$0xff] }
  0x29   : > { %4931 = vmatmul.mubr.msk.f32.gmra.mrb[6].mxu0 %vm348_vm3, %v222_v25  ;;  %4833 = vmatprep.mubr.msk.f32.mxu1 %vm348_vm3, %v289_v26  ;;  %v236_v53 = vld [vmem:[%s5969_s11 + $0xd0] sm:$0xff]  ;;  %v237_v55 = vld [vmem:[%s5969_s11 + $0xd8] sm:$0xff]  ;;  %v238_v57 = vld [vmem:[%s5969_s11 + $0xe0] sm:$0xff] }
  0x2a   : > { %4933 = vmatprep.mubr.msk.f32.mxu0 %vm348_vm3, %v223_v27  ;;  %v305_v58 = vld [vmem:[%s5969_s11 + $0xf1] sm:$0xff]  ;;  %v306_v60 = vld [vmem:[%s5969_s11 + $0xf9] sm:$0xff]  ;;  %v307_v62 = vld [vmem:[%s5969_s11 + $0x101] sm:$0xff] }
  0x2b   : > { %v239_v59 = vld [vmem:[%s5969_s11 + $0xf0] sm:$0xff]  ;;  %v240_v61 = vld [vmem:[%s5969_s11 + $0xf8] sm:$0xff]  ;;  %v241_v63 = vld [vmem:[%s5969_s11 + $0x100] sm:$0xff] }
  0x2c   : > { %4834 = vmatmul.mubr.msk.f32.gmra.mrb[8].mxu1 %vm348_vm3, %v290_v28  ;;  %v308_v0 = vld [vmem:[%s5969_s11 + $0x109] sm:$0xff]  ;;  %v309_v2 = vld [vmem:[%s5969_s11 + $0x119] sm:$0xff]  ;;  %v4551_v4 = vld [vmem:[%s8688_s2 + $0x3] ss:$0 sm:$0xff] }
  0x2d   : > { %4934 = vmatmul.mubr.msk.f32.gmra.mrb[8].mxu0 %vm348_vm3, %v224_v29  ;;  %4836 = vmatprep.mubr.msk.f32.mxu1 %vm348_vm3, %v291_v30  ;;  %v242_v1 = vld [vmem:[%s5969_s11 + $0x108] sm:$0xff]  ;;  %v243_v3 = vld [vmem:[%s5969_s11 + $0x118] sm:$0xff]  ;;  %v244_v6 = vld [vmem:[%s5969_s11 + $0x120] sm:$0xff] }
  0x2e   : > { %4936 = vmatprep.mubr.msk.f32.mxu0 %vm348_vm3, %v225_v31  ;;  %v310_v5 = vld [vmem:[%s5969_s11 + $0x121] sm:$0xff]  ;;  %v311_v7 = vld [vmem:[%s5969_s11 + $0x129] sm:$0xff]  ;;  %3203 = vrot.lane.b32.xlu0 %v4551_v4, %s5867_s20  ;;  %v312_v10 = vld [vmem:[%s5969_s11 + $0x131] sm:$0xff] }
  0x2f   : > { %v245_v8 = vld [vmem:[%s5969_s11 + $0x128] sm:$0xff]  ;;  %v4552_v9 = vld [vmem:[%s8688_s2 + $0x4] ss:$0 sm:$0xff]  ;;  %v246_v11 = vld [vmem:[%s5969_s11 + $0x130] sm:$0xff] }
  0x30   : > { %4837 = vmatmul.mubr.msk.f32.gmra.mrb[10].mxu1 %vm348_vm3, %v292_v32  ;;  %v313_v12 = vld [vmem:[%s5969_s11 + $0x141] sm:$0xff]  ;;  %v314_v14 = vld [vmem:[%s5969_s11 + $0x149] sm:$0xff]  ;;  %v315_v16 = vld [vmem:[%s5969_s11 + $0x151] sm:$0xff] }
  0x31   : > { %4937 = vmatmul.mubr.msk.f32.gmra.mrb[10].mxu0 %vm348_vm3, %v226_v33  ;;  %4839 = vmatprep.mubr.msk.f32.mxu1 %vm348_vm3, %v293_v34  ;;  %v1510_v13 = vld [vmem:[%s5969_s11 + $0x2] sm:$0xff]  ;;  %v1511_v15 = vld [vmem:[%s5969_s11 + $0xa] sm:$0xff]  ;;  %v1512_v17 = vld [vmem:[%s5969_s11 + $0x12] sm:$0xff] }
  0x32   : > { %4939 = vmatprep.mubr.msk.f32.mxu0 %vm348_vm3, %v227_v35  ;;  %3275 = vrot.lane.b32.xlu0 %v4552_v9, %s5867_s20  ;;  %v316_v18 = vld [vmem:[%s5969_s11 + $0x159] sm:$0xff]  ;;  %v317_v20 = vld [vmem:[%s5969_s11 + $0x169] sm:$0xff]  ;;  %v318_v22 = vld [vmem:[%s5969_s11 + $0x171] sm:$0xff] }
  0x33   : > { %v1513_v19 = vld [vmem:[%s5969_s11 + $0x1a] sm:$0xff]  ;;  %v1514_v21 = vld [vmem:[%s5969_s11 + $0x2a] sm:$0xff]  ;;  %v1515_v23 = vld [vmem:[%s5969_s11 + $0x32] sm:$0xff] }
  0x34   : > { %4840 = vmatmul.mubr.msk.f32.gmra.mrb[12].mxu1 %vm348_vm3, %v294_v36  ;;  %v319_v24 = vld [vmem:[%s5969_s11 + $0x179] sm:$0xff]  ;;  %v320_v26 = vld [vmem:[%s5969_s11 + $0x181] sm:$0xff]  ;;  %v321_v28 = vld [vmem:[%s5969_s11 + $0x191] sm:$0xff] }
  0x35   : > { %4940 = vmatmul.mubr.msk.f32.gmra.mrb[12].mxu0 %vm348_vm3, %v228_v37  ;;  %4842 = vmatprep.mubr.msk.f32.mxu1 %vm348_vm3, %v295_v38  ;;  %v1516_v25 = vld [vmem:[%s5969_s11 + $0x3a] sm:$0xff]  ;;  %v1517_v27 = vld [vmem:[%s5969_s11 + $0x42] sm:$0xff]  ;;  %v1518_v29 = vld [vmem:[%s5969_s11 + $0x52] sm:$0xff] }
  0x36   : > { %4942 = vmatprep.mubr.msk.f32.mxu0 %vm348_vm3, %v229_v39  ;;  %v322_v30 = vld [vmem:[%s5969_s11 + $0x199] sm:$0xff]  ;;  %v323_v32 = vld [vmem:[%s5969_s11 + $0x1a1] sm:$0xff]  ;;  %v324_v34 = vld [vmem:[%s5969_s11 + $0x1a9] sm:$0xff] }
  0x37   : > { %v1519_v31 = vld [vmem:[%s5969_s11 + $0x5a] sm:$0xff]  ;;  %v1520_v33 = vld [vmem:[%s5969_s11 + $0x62] sm:$0xff]  ;;  %v1521_v35 = vld [vmem:[%s5969_s11 + $0x6a] sm:$0xff] }
  0x38   : > { %4843 = vmatmul.mubr.msk.f32.gmra.mrb[14].mxu1 %vm348_vm3, %v296_v40  ;;  %v325_v36 = vld [vmem:[%s5969_s11 + $0x1b9] sm:$0xff]  ;;  %v326_v38 = vld [vmem:[%s5969_s11 + $0x1c1] sm:$0xff]  ;;  %v327_v40 = vld [vmem:[%s5969_s11 + $0x1c9] sm:$0xff] }
  0x39   : > { %4943 = vmatmul.mubr.msk.f32.gmra.mrb[14].mxu0 %vm348_vm3, %v230_v41  ;;  %4845 = vmatprep.mubr.msk.f32.mxu1 %vm348_vm3, %v297_v42  ;;  %v1522_v37 = vld [vmem:[%s5969_s11 + $0x7a] sm:$0xff]  ;;  %v1523_v39 = vld [vmem:[%s5969_s11 + $0x82] sm:$0xff]  ;;  %v1524_v41 = vld [vmem:[%s5969_s11 + $0x8a] sm:$0xff] }
  0x3a   : > { %4945 = vmatprep.mubr.msk.f32.mxu0 %vm348_vm3, %v231_v43  ;;  %v328_v42 = vld [vmem:[%s5969_s11 + $0x1d1] sm:$0xff]  ;;  %v341_v4 = vld [vmem:[%s5969_s11 + $0x259] sm:$0xff] }
  0x3b   : > { %v1525_v43 = vld [vmem:[%s5969_s11 + $0x92] sm:$0xff]  ;;  %v1540_v9 = vld [vmem:[%s5969_s11 + $0x12a] sm:$0xff] }
  0x3c   : > { %4846 = vmatmul.mubr.msk.f32.gmra.mrb[16].mxu1 %vm348_vm3, %v298_v44  ;;  %v329_v44 = vld [vmem:[%s5969_s11 + $0x1e1] sm:$0xff] }
  0x3d   : > { %4946 = vmatmul.mubr.msk.f32.gmra.mrb[16].mxu0 %vm348_vm3, %v232_v45  ;;  %4848 = vmatprep.mubr.msk.f32.mxu1 %vm348_vm3, %v299_v46  ;;  %v1526_v45 = vld [vmem:[%s5969_s11 + $0xa2] sm:$0xff] }
  0x3e   : > { %4948 = vmatprep.mubr.msk.f32.mxu0 %vm348_vm3, %v233_v47  ;;  %v330_v46 = vld [vmem:[%s5969_s11 + $0x1e9] sm:$0xff] }
  0x3f   : > { %v1527_v47 = vld [vmem:[%s5969_s11 + $0xaa] sm:$0xff] }
  0x40   : > { %4849 = vmatmul.mubr.msk.f32.gmra.mrb[18].mxu1 %vm348_vm3, %v300_v48  ;;  %v331_v48 = vld [vmem:[%s5969_s11 + $0x1f1] sm:$0xff] }
  0x41   : > { %4949 = vmatmul.mubr.msk.f32.gmra.mrb[18].mxu0 %vm348_vm3, %v234_v49  ;;  %4851 = vmatprep.mubr.msk.f32.mxu1 %vm348_vm3, %v301_v50  ;;  %v1528_v49 = vld [vmem:[%s5969_s11 + $0xb2] sm:$0xff] }
  0x42   : > { %4951 = vmatprep.mubr.msk.f32.mxu0 %vm348_vm3, %v235_v51  ;;  %v332_v50 = vld [vmem:[%s5969_s11 + $0x1f9] sm:$0xff] }
  0x43   : > { %v1529_v51 = vld [vmem:[%s5969_s11 + $0xba] sm:$0xff] }
  0x44   : > { %4852 = vmatmul.mubr.msk.f32.gmra.mrb[20].mxu1 %vm348_vm3, %v302_v52  ;;  %v333_v52 = vld [vmem:[%s5969_s11 + $0x209] sm:$0xff] }
  0x45   : > { %4952 = vmatmul.mubr.msk.f32.gmra.mrb[20].mxu0 %vm348_vm3, %v236_v53  ;;  %4854 = vmatprep.mubr.msk.f32.mxu1 %vm348_vm3, %v303_v54  ;;  %v1530_v53 = vld [vmem:[%s5969_s11 + $0xca] sm:$0xff] }
  0x46   : > { %4954 = vmatprep.mubr.msk.f32.mxu0 %vm348_vm3, %v237_v55  ;;  %v334_v54 = vld [vmem:[%s5969_s11 + $0x211] sm:$0xff] }
  0x47   : > { %v1531_v55 = vld [vmem:[%s5969_s11 + $0xd2] sm:$0xff] }
  0x48   : > { %4855 = vmatmul.mubr.msk.f32.gmra.mrb[22].mxu1 %vm348_vm3, %v304_v56  ;;  %v335_v56 = vld [vmem:[%s5969_s11 + $0x219] sm:$0xff] }
  0x49   : > { %4955 = vmatmul.mubr.msk.f32.gmra.mrb[22].mxu0 %vm348_vm3, %v238_v57  ;;  %4857 = vmatprep.mubr.msk.f32.mxu1 %vm348_vm3, %v305_v58  ;;  %v1532_v57 = vld [vmem:[%s5969_s11 + $0xda] sm:$0xff] }
  0x4a   : > { %4957 = vmatprep.mubr.msk.f32.mxu0 %vm348_vm3, %v239_v59  ;;  %v336_v58 = vld [vmem:[%s5969_s11 + $0x221] sm:$0xff] }
  0x4b   : > { %v1533_v59 = vld [vmem:[%s5969_s11 + $0xe2] sm:$0xff] }
  0x4c   : > { %4858 = vmatmul.mubr.msk.f32.gmra.mrb[24].mxu1 %vm348_vm3, %v306_v60  ;;  %v337_v60 = vld [vmem:[%s5969_s11 + $0x231] sm:$0xff] }
  0x4d   : > { %4958 = vmatmul.mubr.msk.f32.gmra.mrb[24].mxu0 %vm348_vm3, %v240_v61  ;;  %4860 = vmatprep.mubr.msk.f32.mxu1 %vm348_vm3, %v307_v62  ;;  %v1534_v61 = vld [vmem:[%s5969_s11 + $0xf2] sm:$0xff] }
  0x4e   : > { %4960 = vmatprep.mubr.msk.f32.mxu0 %vm348_vm3, %v241_v63  ;;  %v338_v62 = vld [vmem:[%s5969_s11 + $0x239] sm:$0xff] }
  0x4f   : > { %v1535_v63 = vld [vmem:[%s5969_s11 + $0xfa] sm:$0xff] }
  0x50   : > { %4861 = vmatmul.mubr.msk.f32.gmra.mrb[26].mxu1 %vm348_vm3, %v308_v0  ;;  %v339_v0 = vld [vmem:[%s5969_s11 + $0x241] sm:$0xff] }
  0x51   : > { %4961 = vmatmul.mubr.msk.f32.gmra.mrb[26].mxu0 %vm348_vm3, %v242_v1  ;;  %4863 = vmatprep.mubr.msk.f32.mxu1 %vm348_vm3, %v309_v2  ;;  %v1536_v1 = vld [vmem:[%s5969_s11 + $0x102] sm:$0xff] }
  0x52   : > { %4963 = vmatprep.mubr.msk.f32.mxu0 %vm348_vm3, %v243_v3  ;;  %v340_v2 = vld [vmem:[%s5969_s11 + $0x249] sm:$0xff] }
  0x53   : > { %v1537_v3 = vld [vmem:[%s5969_s11 + $0x10a] sm:$0xff] }
  0x54   : > { %4864 = vmatmul.mubr.msk.f32.gmra.mrb[28].mxu1 %vm348_vm3, %v310_v5  ;;  %v1538_v5 = vld [vmem:[%s5969_s11 + $0x11a] sm:$0xff] }
  0x55   : > { %4964 = vmatmul.mubr.msk.f32.gmra.mrb[28].mxu0 %vm348_vm3, %v244_v6  ;;  %4866 = vmatprep.mubr.msk.f32.mxu1 %vm348_vm3, %v311_v7  ;;  %v342_v6 = vld [vmem:[%s5969_s11 + $0x261] sm:$0xff] }
  0x56   : > { %4966 = vmatprep.mubr.msk.f32.mxu0 %vm348_vm3, %v245_v8  ;;  %v1539_v7 = vld [vmem:[%s5969_s11 + $0x122] sm:$0xff] }
  0x57   : > { %v343_v8 = vld [vmem:[%s5969_s11 + $0x269] sm:$0xff] }
  0x58   : > { %4867 = vmatmul.mubr.msk.f32.gmra.mrb[30].mxu1 %vm348_vm3, %v312_v10  ;;  %v344_v10 = vld [vmem:[%s5969_s11 + $0x271] sm:$0xff] }
  0x59   : > { %4967 = vmatmul.mubr.msk.f32.gmra.mrb[30].mxu0 %vm348_vm3, %v246_v11  ;;  %4869 = vmatprep.mubr.msk.f32.mxu1 %vm348_vm3, %v313_v12  ;;  %v1541_v11 = vld [vmem:[%s5969_s11 + $0x132] sm:$0xff]  ;;  %v247_v12 = vld [vmem:[%s5969_s11 + $0x140] sm:$0xff] }
  0x5a   : > { %5021 = vmatprep.mubr.msk.f32.mxu0 %vm348_vm3, %v1510_v13  ;;  %v1542_v13 = vld [vmem:[%s5969_s11 + $0x142] sm:$0xff] }
  0x5c   : > { %4870 = vmatmul.mubr.msk.f32.gmra.mrb[32].mxu1 %vm348_vm3, %v314_v14  ;;  %v248_v14 = vld [vmem:[%s5969_s11 + $0x148] sm:$0xff] }
  0x5d   : > { %5022 = vmatmul.mubr.msk.f32.vlgmr.msra.gmra.mrb[0].mxu0 %vm348_vm3, %v1511_v15  ;;  %4872 = vmatprep.mubr.msk.f32.mxu1 %vm348_vm3, %v315_v16  ;;  %v1543_v15 = vld [vmem:[%s5969_s11 + $0x14a] sm:$0xff] }
  0x5e   : > { %5024 = vmatprep.mubr.msk.f32.mxu0 %vm348_vm3, %v1512_v17  ;;  %v249_v16 = vld [vmem:[%s5969_s11 + $0x150] sm:$0xff] }
  0x5f   : > { %v1544_v17 = vld [vmem:[%s5969_s11 + $0x152] sm:$0xff] }
  0x60   : > { %4873 = vmatmul.mubr.msk.f32.gmra.mrb[34].mxu1 %vm348_vm3, %v316_v18  ;;  %v250_v18 = vld [vmem:[%s5969_s11 + $0x158] sm:$0xff] }
  0x61   : > { %5025 = vmatmul.mubr.msk.f32.gmra.mrb[2].mxu0 %vm348_vm3, %v1513_v19  ;;  %4875 = vmatprep.mubr.msk.f32.mxu1 %vm348_vm3, %v317_v20  ;;  %v1545_v19 = vld [vmem:[%s5969_s11 + $0x15a] sm:$0xff]  ;;  %v251_v20 = vld [vmem:[%s5969_s11 + $0x168] sm:$0xff] }
  0x62   : > { %5027 = vmatprep.mubr.msk.f32.mxu0 %vm348_vm3, %v1514_v21  ;;  %v1546_v21 = vld [vmem:[%s5969_s11 + $0x16a] sm:$0xff] }
  0x64   : > { %4876 = vmatmul.mubr.msk.f32.gmra.mrb[36].mxu1 %vm348_vm3, %v318_v22  ;;  %v252_v22 = vld [vmem:[%s5969_s11 + $0x170] sm:$0xff] }
  0x65   : > { %5028 = vmatmul.mubr.msk.f32.gmra.mrb[4].mxu0 %vm348_vm3, %v1515_v23  ;;  %4878 = vmatprep.mubr.msk.f32.mxu1 %vm348_vm3, %v319_v24  ;;  %v1547_v23 = vld [vmem:[%s5969_s11 + $0x172] sm:$0xff] }
  0x66   : > { %5030 = vmatprep.mubr.msk.f32.mxu0 %vm348_vm3, %v1516_v25  ;;  %v253_v24 = vld [vmem:[%s5969_s11 + $0x178] sm:$0xff] }
  0x67   : > { %v1548_v25 = vld [vmem:[%s5969_s11 + $0x17a] sm:$0xff] }
  0x68   : > { %4879 = vmatmul.mubr.msk.f32.gmra.mrb[38].mxu1 %vm348_vm3, %v320_v26  ;;  %v254_v26 = vld [vmem:[%s5969_s11 + $0x180] sm:$0xff] }
  0x69   : > { %5031 = vmatmul.mubr.msk.f32.gmra.mrb[6].mxu0 %vm348_vm3, %v1517_v27  ;;  %4881 = vmatprep.mubr.msk.f32.mxu1 %vm348_vm3, %v321_v28  ;;  %v1549_v27 = vld [vmem:[%s5969_s11 + $0x182] sm:$0xff]  ;;  %v255_v28 = vld [vmem:[%s5969_s11 + $0x190] sm:$0xff] }
  0x6a   : > { %5033 = vmatprep.mubr.msk.f32.mxu0 %vm348_vm3, %v1518_v29  ;;  %v1550_v29 = vld [vmem:[%s5969_s11 + $0x192] sm:$0xff] }
  0x6c   : > { %4882 = vmatmul.mubr.msk.f32.gmra.mrb[40].mxu1 %vm348_vm3, %v322_v30  ;;  %v256_v30 = vld [vmem:[%s5969_s11 + $0x198] sm:$0xff] }
  0x6d   : > { %5034 = vmatmul.mubr.msk.f32.gmra.mrb[8].mxu0 %vm348_vm3, %v1519_v31  ;;  %4884 = vmatprep.mubr.msk.f32.mxu1 %vm348_vm3, %v323_v32  ;;  %v1551_v31 = vld [vmem:[%s5969_s11 + $0x19a] sm:$0xff] }
  0x6e   : > { %5036 = vmatprep.mubr.msk.f32.mxu0 %vm348_vm3, %v1520_v33  ;;  %v257_v32 = vld [vmem:[%s5969_s11 + $0x1a0] sm:$0xff] }
  0x6f   : > { %v1552_v33 = vld [vmem:[%s5969_s11 + $0x1a2] sm:$0xff] }
  0x70   : > { %4885 = vmatmul.mubr.msk.f32.gmra.mrb[42].mxu1 %vm348_vm3, %v324_v34  ;;  %v258_v34 = vld [vmem:[%s5969_s11 + $0x1a8] sm:$0xff] }
  0x71   : > { %5037 = vmatmul.mubr.msk.f32.gmra.mrb[10].mxu0 %vm348_vm3, %v1521_v35  ;;  %4887 = vmatprep.mubr.msk.f32.mxu1 %vm348_vm3, %v325_v36  ;;  %v1553_v35 = vld [vmem:[%s5969_s11 + $0x1aa] sm:$0xff]  ;;  %v259_v36 = vld [vmem:[%s5969_s11 + $0x1b8] sm:$0xff] }
  0x72   : > { %5039 = vmatprep.mubr.msk.f32.mxu0 %vm348_vm3, %v1522_v37  ;;  %v1554_v37 = vld [vmem:[%s5969_s11 + $0x1ba] sm:$0xff] }
  0x74   : > { %4888 = vmatmul.mubr.msk.f32.gmra.mrb[44].mxu1 %vm348_vm3, %v326_v38  ;;  %v260_v38 = vld [vmem:[%s5969_s11 + $0x1c0] sm:$0xff] }
  0x75   : > { %5040 = vmatmul.mubr.msk.f32.gmra.mrb[12].mxu0 %vm348_vm3, %v1523_v39  ;;  %4890 = vmatprep.mubr.msk.f32.mxu1 %vm348_vm3, %v327_v40  ;;  %v1555_v39 = vld [vmem:[%s5969_s11 + $0x1c2] sm:$0xff] }
  0x76   : > { %5042 = vmatprep.mubr.msk.f32.mxu0 %vm348_vm3, %v1524_v41  ;;  %v261_v40 = vld [vmem:[%s5969_s11 + $0x1c8] sm:$0xff] }
  0x77   : > { %v1556_v41 = vld [vmem:[%s5969_s11 + $0x1ca] sm:$0xff] }
  0x78   : > { %4891 = vmatmul.mubr.msk.f32.gmra.mrb[46].mxu1 %vm348_vm3, %v328_v42  ;;  %v262_v42 = vld [vmem:[%s5969_s11 + $0x1d0] sm:$0xff] }
  0x79   : > { %5043 = vmatmul.mubr.msk.f32.gmra.mrb[14].mxu0 %vm348_vm3, %v1525_v43  ;;  %4893 = vmatprep.mubr.msk.f32.mxu1 %vm348_vm3, %v329_v44  ;;  %v1557_v43 = vld [vmem:[%s5969_s11 + $0x1d2] sm:$0xff]  ;;  %v263_v44 = vld [vmem:[%s5969_s11 + $0x1e0] sm:$0xff] }
  0x7a   : > { %5045 = vmatprep.mubr.msk.f32.mxu0 %vm348_vm3, %v1526_v45  ;;  %v1558_v45 = vld [vmem:[%s5969_s11 + $0x1e2] sm:$0xff] }
  0x7c   : > { %4894 = vmatmul.mubr.msk.f32.gmra.mrb[48].mxu1 %vm348_vm3, %v330_v46  ;;  %v264_v46 = vld [vmem:[%s5969_s11 + $0x1e8] sm:$0xff] }
  0x7d   : > { %5046 = vmatmul.mubr.msk.f32.gmra.mrb[16].mxu0 %vm348_vm3, %v1527_v47  ;;  %4896 = vmatprep.mubr.msk.f32.mxu1 %vm348_vm3, %v331_v48  ;;  %v1559_v47 = vld [vmem:[%s5969_s11 + $0x1ea] sm:$0xff] }
  0x7e   : > { %5048 = vmatprep.mubr.msk.f32.mxu0 %vm348_vm3, %v1528_v49  ;;  %v265_v48 = vld [vmem:[%s5969_s11 + $0x1f0] sm:$0xff] }
  0x7f   : > { %v1560_v49 = vld [vmem:[%s5969_s11 + $0x1f2] sm:$0xff] }
  0x80   : > { %4897 = vmatmul.mubr.msk.f32.gmra.mrb[50].mxu1 %vm348_vm3, %v332_v50  ;;  %v266_v50 = vld [vmem:[%s5969_s11 + $0x1f8] sm:$0xff] }
  0x81   : > { %5049 = vmatmul.mubr.msk.f32.gmra.mrb[18].mxu0 %vm348_vm3, %v1529_v51  ;;  %4899 = vmatprep.mubr.msk.f32.mxu1 %vm348_vm3, %v333_v52  ;;  %v1561_v51 = vld [vmem:[%s5969_s11 + $0x1fa] sm:$0xff]  ;;  %v267_v52 = vld [vmem:[%s5969_s11 + $0x208] sm:$0xff] }
  0x82   : > { %5051 = vmatprep.mubr.msk.f32.mxu0 %vm348_vm3, %v1530_v53  ;;  %v1562_v53 = vld [vmem:[%s5969_s11 + $0x20a] sm:$0xff] }
  0x84   : > { %4900 = vmatmul.mubr.msk.f32.gmra.mrb[52].mxu1 %vm348_vm3, %v334_v54  ;;  %v268_v54 = vld [vmem:[%s5969_s11 + $0x210] sm:$0xff] }
  0x85   : > { %5052 = vmatmul.mubr.msk.f32.gmra.mrb[20].mxu0 %vm348_vm3, %v1531_v55  ;;  %4902 = vmatprep.mubr.msk.f32.mxu1 %vm348_vm3, %v335_v56  ;;  %v1563_v55 = vld [vmem:[%s5969_s11 + $0x212] sm:$0xff] }
  0x86   : > { %5054 = vmatprep.mubr.msk.f32.mxu0 %vm348_vm3, %v1532_v57  ;;  %v269_v56 = vld [vmem:[%s5969_s11 + $0x218] sm:$0xff] }
  0x87   : > { %v1564_v57 = vld [vmem:[%s5969_s11 + $0x21a] sm:$0xff] }
  0x88   : > { %4903 = vmatmul.mubr.msk.f32.gmra.mrb[54].mxu1 %vm348_vm3, %v336_v58  ;;  %v270_v58 = vld [vmem:[%s5969_s11 + $0x220] sm:$0xff] }
  0x89   : > { %5055 = vmatmul.mubr.msk.f32.gmra.mrb[22].mxu0 %vm348_vm3, %v1533_v59  ;;  %4905 = vmatprep.mubr.msk.f32.mxu1 %vm348_vm3, %v337_v60  ;;  %v1565_v59 = vld [vmem:[%s5969_s11 + $0x222] sm:$0xff]  ;;  %v271_v60 = vld [vmem:[%s5969_s11 + $0x230] sm:$0xff] }
  0x8a   : > { %5057 = vmatprep.mubr.msk.f32.mxu0 %vm348_vm3, %v1534_v61  ;;  %v1566_v61 = vld [vmem:[%s5969_s11 + $0x232] sm:$0xff] }
  0x8c   : > { %4906 = vmatmul.mubr.msk.f32.gmra.mrb[56].mxu1 %vm348_vm3, %v338_v62  ;;  %v272_v62 = vld [vmem:[%s5969_s11 + $0x238] sm:$0xff] }
  0x8d   : > { %5058 = vmatmul.mubr.msk.f32.gmra.mrb[24].mxu0 %vm348_vm3, %v1535_v63  ;;  %4908 = vmatprep.mubr.msk.f32.mxu1 %vm348_vm3, %v339_v0  ;;  %v1567_v63 = vld [vmem:[%s5969_s11 + $0x23a] sm:$0xff] }
  0x8e   : > { %5060 = vmatprep.mubr.msk.f32.mxu0 %vm348_vm3, %v1536_v1  ;;  %v273_v0 = vld [vmem:[%s5969_s11 + $0x240] sm:$0xff] }
  0x8f   : > { %v1568_v1 = vld [vmem:[%s5969_s11 + $0x242] sm:$0xff] }
  0x90   : > { %4909 = vmatmul.mubr.msk.f32.gmra.mrb[58].mxu1 %vm348_vm3, %v340_v2  ;;  %v274_v2 = vld [vmem:[%s5969_s11 + $0x248] sm:$0xff] }
  0x91   : > { %5061 = vmatmul.mubr.msk.f32.gmra.mrb[26].mxu0 %vm348_vm3, %v1537_v3  ;;  %4911 = vmatprep.mubr.msk.f32.mxu1 %vm348_vm3, %v341_v4  ;;  %v1569_v3 = vld [vmem:[%s5969_s11 + $0x24a] sm:$0xff]  ;;  %v275_v4 = vld [vmem:[%s5969_s11 + $0x258] sm:$0xff] }
  0x92   : > { %5063 = vmatprep.mubr.msk.f32.mxu0 %vm348_vm3, %v1538_v5  ;;  %v1570_v5 = vld [vmem:[%s5969_s11 + $0x25a] sm:$0xff] }
  0x94   : > { %4912 = vmatmul.mubr.msk.f32.gmra.mrb[60].mxu1 %vm348_vm3, %v342_v6  ;;  %v276_v6 = vld [vmem:[%s5969_s11 + $0x260] sm:$0xff] }
  0x95   : > { %5064 = vmatmul.mubr.msk.f32.gmra.mrb[28].mxu0 %vm348_vm3, %v1539_v7  ;;  %4914 = vmatprep.mubr.msk.f32.mxu1 %vm348_vm3, %v343_v8  ;;  %v1571_v7 = vld [vmem:[%s5969_s11 + $0x262] sm:$0xff] }
  0x96   : > { %5066 = vmatprep.mubr.msk.f32.mxu0 %vm348_vm3, %v1540_v9  ;;  %v277_v8 = vld [vmem:[%s5969_s11 + $0x268] sm:$0xff] }
  0x97   : > { %v1572_v9 = vld [vmem:[%s5969_s11 + $0x26a] sm:$0xff] }
  0x98   : > { %4915 = vmatmul.mubr.msk.f32.gmra.mrb[62].mxu1 %vm348_vm3, %v344_v10  ;;  %v278_v10 = vld [vmem:[%s5969_s11 + $0x270] sm:$0xff] }
  0x99   : > { %5067 = vmatmul.mubr.msk.f32.gmra.mrb[30].mxu0 %vm348_vm3, %v1541_v11  ;;  %4969 = vmatprep.mubr.msk.f32.mxu1 %vm348_vm3, %v247_v12  ;;  %v1573_v11 = vld [vmem:[%s5969_s11 + $0x272] sm:$0xff] }
  0x9a   : > { %5069 = vmatprep.mubr.msk.f32.mxu0 %vm348_vm3, %v1542_v13 }
  0x9c   : > { %4970 = vmatmul.mubr.msk.f32.vlgmr.msra.gmra.mrb[32].mxu1 %vm348_vm3, %v248_v14 }
  0x9d   : > { %5070 = vmatmul.mubr.msk.f32.gmra.mrb[32].mxu0 %vm348_vm3, %v1543_v15  ;;  %4972 = vmatprep.mubr.msk.f32.mxu1 %vm348_vm3, %v249_v16 }
  0x9e   : > { %5072 = vmatprep.mubr.msk.f32.mxu0 %vm348_vm3, %v1544_v17 }
  0xa0   : > { %4973 = vmatmul.mubr.msk.f32.gmra.mrb[34].mxu1 %vm348_vm3, %v250_v18 }
  0xa1   : > { %5073 = vmatmul.mubr.msk.f32.gmra.mrb[34].mxu0 %vm348_vm3, %v1545_v19  ;;  %4975 = vmatprep.mubr.msk.f32.mxu1 %vm348_vm3, %v251_v20 }
  0xa2   : > { %5075 = vmatprep.mubr.msk.f32.mxu0 %vm348_vm3, %v1546_v21 }
  0xa4   : > { %4976 = vmatmul.mubr.msk.f32.gmra.mrb[36].mxu1 %vm348_vm3, %v252_v22 }
  0xa5   : > { %5076 = vmatmul.mubr.msk.f32.gmra.mrb[36].mxu0 %vm348_vm3, %v1547_v23  ;;  %4978 = vmatprep.mubr.msk.f32.mxu1 %vm348_vm3, %v253_v24 }
  0xa6   : > { %5078 = vmatprep.mubr.msk.f32.mxu0 %vm348_vm3, %v1548_v25 }
  0xa8   : > { %4979 = vmatmul.mubr.msk.f32.gmra.mrb[38].mxu1 %vm348_vm3, %v254_v26 }
  0xa9   : > { %5079 = vmatmul.mubr.msk.f32.gmra.mrb[38].mxu0 %vm348_vm3, %v1549_v27  ;;  %4981 = vmatprep.mubr.msk.f32.mxu1 %vm348_vm3, %v255_v28 }
  0xaa   : > { %5081 = vmatprep.mubr.msk.f32.mxu0 %vm348_vm3, %v1550_v29 }
  0xac   : > { %4982 = vmatmul.mubr.msk.f32.gmra.mrb[40].mxu1 %vm348_vm3, %v256_v30 }
  0xad   : > { %5082 = vmatmul.mubr.msk.f32.gmra.mrb[40].mxu0 %vm348_vm3, %v1551_v31  ;;  %4984 = vmatprep.mubr.msk.f32.mxu1 %vm348_vm3, %v257_v32 }
  0xae   : > { %5084 = vmatprep.mubr.msk.f32.mxu0 %vm348_vm3, %v1552_v33 }
  0xb0   : > { %4985 = vmatmul.mubr.msk.f32.gmra.mrb[42].mxu1 %vm348_vm3, %v258_v34 }
  0xb1   : > { %5085 = vmatmul.mubr.msk.f32.gmra.mrb[42].mxu0 %vm348_vm3, %v1553_v35  ;;  %4987 = vmatprep.mubr.msk.f32.mxu1 %vm348_vm3, %v259_v36 }
  0xb2   : > { %5087 = vmatprep.mubr.msk.f32.mxu0 %vm348_vm3, %v1554_v37 }
  0xb4   : > { %4988 = vmatmul.mubr.msk.f32.gmra.mrb[44].mxu1 %vm348_vm3, %v260_v38 }
  0xb5   : > { %5088 = vmatmul.mubr.msk.f32.gmra.mrb[44].mxu0 %vm348_vm3, %v1555_v39  ;;  %4990 = vmatprep.mubr.msk.f32.mxu1 %vm348_vm3, %v261_v40 }
  0xb6   : > { %5090 = vmatprep.mubr.msk.f32.mxu0 %vm348_vm3, %v1556_v41 }
  0xb8   : > { %4991 = vmatmul.mubr.msk.f32.gmra.mrb[46].mxu1 %vm348_vm3, %v262_v42 }
  0xb9   : > { %5091 = vmatmul.mubr.msk.f32.gmra.mrb[46].mxu0 %vm348_vm3, %v1557_v43  ;;  %4993 = vmatprep.mubr.msk.f32.mxu1 %vm348_vm3, %v263_v44 }
  0xba   : > { %5093 = vmatprep.mubr.msk.f32.mxu0 %vm348_vm3, %v1558_v45 }
  0xbc   : > { %4994 = vmatmul.mubr.msk.f32.gmra.mrb[48].mxu1 %vm348_vm3, %v264_v46 }
  0xbd   : > { %5094 = vmatmul.mubr.msk.f32.gmra.mrb[48].mxu0 %vm348_vm3, %v1559_v47  ;;  %4996 = vmatprep.mubr.msk.f32.mxu1 %vm348_vm3, %v265_v48  ;;  %v6415_v48 = vpop.permute.xlu0 %3203 }
  0xbe   : > { %5096 = vmatprep.mubr.msk.f32.mxu0 %vm348_vm3, %v1560_v49 }
  0xc0   : > { %4997 = vmatmul.mubr.msk.f32.gmra.mrb[50].mxu1 %vm348_vm3, %v266_v50 }
  0xc1   : > { %5097 = vmatmul.mubr.msk.f32.gmra.mrb[50].mxu0 %vm348_vm3, %v1561_v51  ;;  %4999 = vmatprep.mubr.msk.f32.mxu1 %vm348_vm3, %v267_v52 }
  0xc2   : > { %5099 = vmatprep.mubr.msk.f32.mxu0 %vm348_vm3, %v1562_v53  ;;  %v6420_v53 = vld [vmem:[%s8688_s2] ss:$0 sm:$0xff] }
  0xc4   : > { %5000 = vmatmul.mubr.msk.f32.gmra.mrb[52].mxu1 %vm348_vm3, %v268_v54 }
  0xc5   : > { %5100 = vmatmul.mubr.msk.f32.gmra.mrb[52].mxu0 %vm348_vm3, %v1563_v55  ;;  %5002 = vmatprep.mubr.msk.f32.mxu1 %vm348_vm3, %v269_v56  ;;  %v6423_v56 = vpop.permute.xlu0 %3275 }
  0xc6   : > { %5102 = vmatprep.mubr.msk.f32.mxu0 %vm348_vm3, %v1564_v57 }
  0xc8   : > { %5003 = vmatmul.mubr.msk.f32.gmra.mrb[54].mxu1 %vm348_vm3, %v270_v58 }
  0xc9   : > { %5103 = vmatmul.mubr.msk.f32.gmra.mrb[54].mxu0 %vm348_vm3, %v1565_v59  ;;  %5005 = vmatprep.mubr.msk.f32.mxu1 %vm348_vm3, %v271_v60 }
  0xca   : > { %5105 = vmatprep.mubr.msk.f32.mxu0 %vm348_vm3, %v1566_v61 }
  0xcc   : > { %5006 = vmatmul.mubr.msk.f32.gmra.mrb[56].mxu1 %vm348_vm3, %v272_v62 }
  0xcd   : > { %5106 = vmatmul.mubr.msk.f32.gmra.mrb[56].mxu0 %vm348_vm3, %v1567_v63  ;;  %5008 = vmatprep.mubr.msk.f32.mxu1 %vm348_vm3, %v273_v0 }
  0xce   : > { %5108 = vmatprep.mubr.msk.f32.mxu0 %vm348_vm3, %v1568_v1 }
  0xd0   : > { %5009 = vmatmul.mubr.msk.f32.gmra.mrb[58].mxu1 %vm348_vm3, %v274_v2 }
  0xd1   : > { %5109 = vmatmul.mubr.msk.f32.gmra.mrb[58].mxu0 %vm348_vm3, %v1569_v3  ;;  %5011 = vmatprep.mubr.msk.f32.mxu1 %vm348_vm3, %v275_v4 }
  0xd2   : > { %5111 = vmatprep.mubr.msk.f32.mxu0 %vm348_vm3, %v1570_v5 }
  0xd4   : > { %5012 = vmatmul.mubr.msk.f32.gmra.mrb[60].mxu1 %vm348_vm3, %v276_v6 }
  0xd5   : > { %5112 = vmatmul.mubr.msk.f32.gmra.mrb[60].mxu0 %vm348_vm3, %v1571_v7  ;;  %5014 = vmatprep.mubr.msk.f32.mxu1 %vm348_vm3, %v277_v8 }
  0xd6   : > { %5114 = vmatprep.mubr.msk.f32.mxu0 %vm348_vm3, %v1572_v9 }
  0xd8   : > { %5015 = vmatmul.mubr.msk.f32.gmra.mrb[62].mxu1 %vm348_vm3, %v278_v10 }
  0xd9   : > { %5115 = vmatmul.mubr.msk.f32.gmra.mrb[62].mxu0 %vm348_vm3, %v1573_v11 }
  0xef   : > { %v4823_v12 = vpop.f32.mrb[0].mxu1 }
  0xf0   : > { %v611_v13 = vpop.f32.mrb[1].mxu1 }
  0xf3   : > { %v4826_v14 = vpop.f32.mrb[2].mxu1 }
  0xf4   : > { %v621_v15 = vpop.f32.mrb[3].mxu1 }
  0xf7   : > { %v4829_v16 = vpop.f32.mrb[4].mxu1 }
  0xf8   : > { %v631_v17 = vpop.f32.mrb[5].mxu1 }
  0xfb   : > { %v4832_v18 = vpop.f32.mrb[6].mxu1 }
  0xfc   : > { %v641_v19 = vpop.f32.mrb[7].mxu1 }
  0xff   : > { %v6365_v20 = vpop.f32.mrb[8].mxu1 }
 0x100   : > { %v6367_v21 = vpop.f32.mrb[9].mxu1 }
 0x103   : > { %v6369_v22 = vpop.f32.mrb[10].mxu1 }
 0x104   : > { %v6371_v23 = vpop.f32.mrb[11].mxu1 }
 0x107   : > { %v6373_v24 = vpop.f32.mrb[12].mxu1 }
 0x108   : > { %v6375_v25 = vpop.f32.mrb[13].mxu1 }
 0x10b   : > { %v6377_v26 = vpop.f32.mrb[14].mxu1 }
 0x10c   : > { %v6379_v27 = vpop.f32.mrb[15].mxu1 }
 0x10f   : > { %v6381_v28 = vpop.f32.mrb[16].mxu1 }
 0x110   : > { %v6383_v29 = vpop.f32.mrb[17].mxu1 }
 0x113   : > { %v6385_v30 = vpop.f32.mrb[18].mxu1 }
 0x114   : > { %v6387_v31 = vpop.f32.mrb[19].mxu1 }
 0x117   : > { %v6389_v32 = vpop.f32.mrb[20].mxu1 }
 0x118   : > { %v6391_v33 = vpop.f32.mrb[21].mxu1 }
 0x11b   : > { %v6393_v34 = vpop.f32.mrb[22].mxu1 }
 0x11c   : > { %v6395_v35 = vpop.f32.mrb[23].mxu1 }
 0x11f   : > { %v6397_v36 = vpop.f32.mrb[24].mxu1 }
 0x120   : > { %v6399_v37 = vpop.f32.mrb[25].mxu1 }
 0x123   : > { %v6401_v38 = vpop.f32.mrb[26].mxu1 }
 0x124   : > { %v6403_v39 = vpop.f32.mrb[27].mxu1 }
 0x125   : > { %8704 = vst [vmem:[#allocation2_spill] sm:$0xff] %v6403_v39 }
 0x127   : > { %v6405_v40 = vpop.f32.mrb[28].mxu1 }
 0x128   : > { %8705 = vst [vmem:[#allocation3_spill] sm:$0xff] %v6405_v40  ;;  %v6407_v41 = vpop.f32.mrb[29].mxu1 }
 0x129   : > { %8706 = vst [vmem:[#allocation4_spill] sm:$0xff] %v6407_v41 }
 0x12b   : > { %v6409_v42 = vpop.f32.mrb[30].mxu1 }
 0x12c   : > { %8707 = vst [vmem:[#allocation5_spill] sm:$0xff] %v6409_v42  ;;  %v6411_v43 = vpop.f32.mrb[31].mxu1 }
 0x12d   : > { %8708 = vst [vmem:[#allocation6_spill] sm:$0xff] %v6411_v43 }
 0x130   : > { %v5023_v44 = vpop.f32.mrb[0].mxu0 }
 0x131   : > { %v5137_v45 = vadd.f32 %v5023_v44, %v4823_v12  ;;  %v1838_v46 = vpop.f32.mrb[1].mxu0 }
 0x132   : > { %v6413_v47 = vadd.f32 %v1838_v46, %v611_v13 }
 0x133   : > { %v6427_v59 = vadd.f32 %v5137_v45, %v6420_v53  ;;  %v3207_v10 = vmul.f32 %v5137_v45, %v6415_v48 }
 0x134   : > { %v5026_v49 = vpop.f32.mrb[2].mxu0  ;;  %v6432_v2 = vadd.f32 %v6413_v47, %v6420_v53 }
 0x135   : > { %v5139_v50 = vadd.f32 %v5026_v49, %v4826_v14  ;;  %v1848_v51 = vpop.f32.mrb[3].mxu0  ;;  %v2359_v6 = vmin.f32 %v6427_v59, 0.0  ;;  %vm2295_vm4 = vcmp.gt.f32.partialorder %v6427_v59, 0.0 }
 0x136   : > { %v5140_v52 = vadd.f32 %v1848_v51, %v621_v15  ;;  %v2358_v13 = vmin.f32 %v6432_v2, 0.0  ;;  %v3279_v51 = vadd.f32 %v6423_v56, %v3207_v10  ;;  %vm2294_vm5 = vcmp.gt.f32.partialorder %v6432_v2, 0.0 }
 0x137   : > { %v3209_v0 = vmul.f32 %v5139_v50, %v6415_v48 }
 0x138   : > { %v3208_v54 = vmul.f32 %v5140_v52, %v6415_v48  ;;  %v5029_v55 = vpop.f32.mrb[4].mxu0  ;;  %v6448_v45 = vadd.f32 %v5140_v52, %v6420_v53 }
 0x139   : > { %v1858_v57 = vpop.f32.mrb[5].mxu0  ;;  %v5141_v60 = vadd.f32 %v5029_v55, %v4829_v16  ;;  %v3281_v11 = vadd.f32 %v6423_v56, %v3209_v0  ;;  %v2424_v16 = vmul.f32 1.442695, %v2359_v6 }
 0x13a   : > { %v3280_v58 = vadd.f32 %v6423_v56, %v3208_v54  ;;  %v5142_v61 = vadd.f32 %v1858_v57, %v631_v17  ;;  %v2422_v54 = vmul.f32 1.442695, %v2358_v13  ;;  %vm2296_vm7 = vcmp.gt.f32.partialorder %v6448_v45, 0.0 }
 0x13b   : > { %v3211_v7 = vmul.f32 %v5141_v60, %v6415_v48  ;;  %v4556_v46 = vmul.f32 -1.442695, %v3281_v11  ;;  %v6452_v55 = vadd.f32 %v5141_v60, %v6420_v53  ;;  %v2360_v60 = vmin.f32 %v6448_v45, 0.0 }
 0x13c   : > { %v4555_v62 = vmul.f32 -1.442695, %v3280_v58  ;;  %v5032_v63 = vpop.f32.mrb[6].mxu0  ;;  %v3210_v3 = vmul.f32 %v5142_v61, %v6415_v48 }
 0x13d   : > { %v1868_v1 = vpop.f32.mrb[7].mxu0  ;;  %v5143_v4 = vadd.f32 %v5032_v63, %v4832_v18  ;;  %v6444_v18 = vadd.f32 %v5139_v50, %v6420_v53  ;;  %vm2299_vm8 = vcmp.gt.f32.partialorder %v6452_v55, 0.0 }
 0x13e   : > { %v5144_v5 = vadd.f32 %v1868_v1, %v641_v19  ;;  %5310 = vpow2.f32 %v4555_v62  ;;  %v3282_v8 = vadd.f32 %v6423_v56, %v3210_v3  ;;  %v3283_v19 = vadd.f32 %v6423_v56, %v3211_v7 }
 0x13f   : > { %v3213_v17 = vmul.f32 %v5143_v4, %v6415_v48  ;;  %v2361_v52 = vmin.f32 %v6444_v18, 0.0  ;;  %vm2297_vm6 = vcmp.gt.f32.partialorder %v6444_v18, 0.0 }
 0x140   : > { %v5035_v9 = vpop.f32.mrb[8].mxu0  ;;  %v4557_v14 = vmul.f32 -1.442695, %v3282_v8  ;;  %v3212_v15 = vmul.f32 %v5144_v5, %v6415_v48  ;;  %v4558_v63 = vmul.f32 -1.442695, %v3283_v19 }
 0x141   : > { %v1878_v12 = vpop.f32.mrb[9].mxu0  ;;  %v3285_v50 = vadd.f32 %v6423_v56, %v3213_v17  ;;  %v5145_v58 = vadd.f32 %v5035_v9, %v6365_v20  ;;  %v2363_v20 = vmin.f32 %v6452_v55, 0.0  ;;  %v4554_v9 = vmul.f32 -1.442695, %v3279_v51 }
 0x142   : > { %5312 = vpow2.f32 %v4557_v14  ;;  %v3284_v57 = vadd.f32 %v6423_v56, %v3212_v15  ;;  %v5146_v62 = vadd.f32 %v1878_v12, %v6367_v21  ;;  %v6468_v21 = vadd.f32 %v5142_v61, %v6420_v53 }
 0x143   : > { %5314 = vpow2.f32 %v2424_v16  ;;  %v3215_v6 = vmul.f32 %v5145_v58, %v6415_v48  ;;  %v2428_v11 = vmul.f32 1.442695, %v2361_v52  ;;  %v6471_v12 = vadd.f32 %v5143_v4, %v6420_v53 }
 0x144   : > { %v5038_v44 = vpop.f32.mrb[10].mxu0  ;;  %v4559_v0 = vmul.f32 -1.442695, %v3284_v57  ;;  %5316 = vpow2.f32 %v4556_v46  ;;  %v2426_v14 = vmul.f32 1.442695, %v2360_v60  ;;  %v3214_v16 = vmul.f32 %v5146_v62, %v6415_v48 }
 0x145   : > { %v1888_v49 = vpop.f32.mrb[11].mxu0  ;;  %v6460_v1 = vadd.f32 %v5038_v44, %v6369_v22  ;;  %v4560_v22 = vmul.f32 -1.442695, %v3285_v50  ;;  %v3287_v15 = vadd.f32 %v6423_v56, %v3215_v6  ;;  %v2432_v61 = vmul.f32 1.442695, %v2363_v20 }
 0x146   : > { %5318 = vpow2.f32 %v4559_v0  ;;  %v2362_v19 = vmin.f32 %v6468_v21, 0.0  ;;  %v6477_v44 = vadd.f32 %v5144_v5, %v6420_v53  ;;  %v3286_v46 = vadd.f32 %v6423_v56, %v3214_v16 }
 0x147   : > { %5320 = vpow2.f32 %v2422_v54  ;;  %v2365_v51 = vmin.f32 %v6471_v12, 0.0  ;;  %v6482_v54 = vadd.f32 %v5145_v58, %v6420_v53  ;;  %v6492_v20 = vadd.f32 %v5146_v62, %v6420_v53 }
 0x148   : > { %v5041_v3 = vpop.f32.mrb[12].mxu0  ;;  %v5311_v8 = vpop.eup %5310  ;;  %5322 = vpow2.f32 %v4558_v63  ;;  %v4562_v63 = vmul.f32 -1.442695, %v3287_v15  ;;  %v4561_v5 = vmul.f32 -1.442695, %v3286_v46  ;;  %v2364_v6 = vmin.f32 %v6477_v44, 0.0 }
 0x149   : > { %v6464_v7 = vpop.f32.mrb[13].mxu0  ;;  %v3536_v10 = vadd.f32 1.0, %v5311_v8  ;;  %v2430_v60 = vmul.f32 1.442695, %v2362_v19  ;;  %v5148_v58 = vadd.f32 %v1888_v49, %v6371_v23  ;;  %v3217_v49 = vmul.f32 %v6460_v1, %v6415_v48 }
 0x14a   : > { %v2434_v23 = vmul.f32 1.442695, %v2364_v6  ;;  %vm2298_vm9 = vcmp.gt.f32.partialorder %v6468_v21, 0.0  ;;  %vm2301_vm10 = vcmp.gt.f32.partialorder %v6471_v12, 0.0  ;;  %vm2300_vm11 = vcmp.gt.f32.partialorder %v6477_v44, 0.0 }
 0x14b   : > { %5324 = vrcp.f32 %v3536_v10  ;;  %v2436_v10 = vmul.f32 1.442695, %v2365_v51  ;;  %v6518_v6 = vadd.f32 %v5148_v58, %v6420_v53  ;;  %vm2303_vm12 = vcmp.gt.f32.partialorder %v6482_v54, 0.0 }
 0x14c   : > { %v5044_v13 = vpop.f32.mrb[14].mxu0  ;;  %5326 = vpow2.f32 %v4554_v9  ;;  %v5313_v4 = vpop.eup %5312  ;;  %vm2302_vm13 = vcmp.gt.f32.partialorder %v6492_v20, 0.0 }
 0x14d   : > { %v1908_v17 = vpop.f32.mrb[15].mxu0  ;;  %5328 = vpow2.f32 %v4560_v22  ;;  %v6486_v50 = vpop.eup %5314  ;;  %v3538_v52 = vadd.f32 1.0, %v5313_v4  ;;  %v2367_v22 = vmin.f32 %v6482_v54, 0.0  ;;  %8709 = vst [vmem:[#allocation7_spill] sm:$0xff] %v6518_v6 }
 0x14e   : > { %5330 = vpow2.f32 %v2428_v11  ;;  %v5317_v8 = vpop.eup %5316  ;;  %v5149_v11 = vadd.f32 %v5041_v3, %v6373_v24  ;;  %v2366_v24 = vmin.f32 %v6492_v20, 0.0 }
 0x14f   : > { %5332 = vpow2.f32 %v2426_v14  ;;  %v3537_v4 = vadd.f32 1.0, %v5317_v8 }
 0x150   : > { %v6484_v57 = vpop.f32.mrb[16].mxu0  ;;  %5334 = vpow2.f32 %v2432_v61  ;;  %v5319_v9 = vpop.eup %5318  ;;  %v3216_v61 = vmul.f32 %v5148_v58, %v6415_v48  ;;  %v2438_v58 = vmul.f32 1.442695, %v2366_v24  ;;  %v6544_v24 = vadd.f32 %v5149_v11, %v6420_v53 }
 0x151   : > { %v6488_v0 = vpop.f32.mrb[17].mxu0  ;;  %5336 = vrcp.f32 %v3538_v52  ;;  %v6499_v15 = vpop.eup %5320  ;;  %v3540_v16 = vadd.f32 1.0, %v5319_v9  ;;  %v2440_v52 = vmul.f32 1.442695, %v2367_v22  ;;  %v5150_v9 = vadd.f32 %v6464_v7, %v6375_v25 }
 0x152   : > { %5338 = vpow2.f32 %v4561_v5  ;;  %v5323_v62 = vpop.eup %5322  ;;  %v3288_v3 = vadd.f32 %v6423_v56, %v3216_v61  ;;  %v3289_v61 = vadd.f32 %v6423_v56, %v3217_v49  ;;  %8710 = vst [vmem:[#allocation8_spill] sm:$0xff] %v6544_v24 }
 0x153   : > { %5340 = vpow2.f32 %v4562_v63  ;;  %v6512_v63 = vadd.f32 %v6460_v1, %v6420_v53  ;;  %v3539_v1 = vadd.f32 1.0, %v5323_v62  ;;  %v3218_v25 = vmul.f32 %v5150_v9, %v6415_v48 }
 0x154   : > { %v6497_v14 = vpop.f32.mrb[18].mxu0  ;;  %5342 = vpow2.f32 %v2430_v60  ;;  %v4563_v8 = vmul.f32 -1.442695, %v3288_v3  ;;  %v3219_v3 = vmul.f32 %v5149_v11, %v6415_v48 }
 0x155   : > { %v6502_v19 = vpop.f32.mrb[19].mxu0  ;;  %v5325_v46 = vpop.eup %5324  ;;  %5344 = vrcp.f32 %v3540_v16  ;;  %v3290_v42 = vadd.f32 %v6423_v56, %v3218_v25  ;;  %vm2305_vm14 = vcmp.gt.f32.partialorder %v6512_v63, 0.0 }
 0x156   : > { %v6508_v51 = vpop.eup %5326  ;;  %5346 = vpow2.f32 %v2436_v10  ;;  %3794 = vrot.lane.b32.xlu0 %v5325_v46, %s5868_s25  ;;  %v5151_v10 = vadd.f32 %v5044_v13, %v6377_v26  ;;  %v6529_v46 = vadd.f32 %v1908_v17, %v6379_v27  ;;  %v2369_v13 = vmin.f32 %v6512_v63, 0.0 }
 0x157   : > { %v5329_v60 = vpop.eup %5328  ;;  %5348 = vpow2.f32 %v2434_v23  ;;  %v2368_v27 = vmin.f32 %v6518_v6, 0.0  ;;  %v3291_v41 = vadd.f32 %v6423_v56, %v3219_v3 }
 0x158   : > { %v6515_v5 = vpop.f32.mrb[20].mxu0  ;;  %v6525_v16 = vpop.eup %5330  ;;  %5350 = vrcp.f32 %v3537_v4  ;;  %v3541_v7 = vadd.f32 1.0, %v5329_v60  ;;  %v4564_v4 = vmul.f32 -1.442695, %v3289_v61  ;;  %v4565_v61 = vmul.f32 -1.442695, %v3290_v42 }
 0x159   : > { %v6523_v22 = vpop.f32.mrb[21].mxu0  ;;  %v6531_v43 = vpop.eup %5332  ;;  %5352 = vpow2.f32 %v4563_v8  ;;  %v2442_v25 = vmul.f32 1.442695, %v2368_v27  ;;  %v3221_v42 = vmul.f32 %v5151_v10, %v6415_v48 }
 0x15a   : > { %v6535_v26 = vpop.eup %5334  ;;  %5354 = vpow2.f32 %v2440_v52  ;;  %v6550_v52 = vadd.f32 %v5150_v9, %v6420_v53 }
 0x15b   : > { %v5337_v23 = vpop.eup %5336  ;;  %5356 = vrcp.f32 %v3539_v1  ;;  %v2444_v1 = vmul.f32 1.442695, %v2369_v13  ;;  %v4566_v13 = vmul.f32 -1.442695, %v3291_v41 }
 0x15c   : > { %v6538_v62 = vpop.f32.mrb[22].mxu0  ;;  %v5339_v49 = vpop.eup %5338  ;;  %3798 = vrot.lane.b32.xlu0 %v5337_v23, %s5868_s25  ;;  %5358 = vpow2.f32 %v2438_v58  ;;  %8711 = vst [vmem:[#allocation9_spill] sm:$0xff] %v6550_v52  ;;  %v3220_v23 = vmul.f32 %v6529_v46, %v6415_v48  ;;  %v5153_v58 = vadd.f32 %v6484_v57, %v6381_v28  ;;  %v2370_v27 = vmin.f32 %v6550_v52, 0.0 }
 0x15d   : > { %v6541_v17 = vpop.f32.mrb[23].mxu0  ;;  %v5341_v60 = vpop.eup %5340  ;;  %v3542_v8 = vadd.f32 1.0, %v5339_v49  ;;  %5360 = vrcp.f32 %v3541_v7  ;;  %v2371_v7 = vmin.f32 %v6544_v24, 0.0  ;;  %v3206_v28 = vmul.f32 %v6413_v47, %v6415_v48 }
 0x15e   : > { %v6552_v40 = vpop.eup %5342  ;;  %v3543_v49 = vadd.f32 1.0, %v5341_v60  ;;  %v6578_v60 = vadd.f32 %v5151_v10, %v6420_v53  ;;  %v3293_v47 = vadd.f32 %v6423_v56, %v3221_v42  ;;  %v6593_v10 = vadd.f32 %v6529_v46, %v6420_v53 }
 0x15f   : > { %v5345_v11 = vpop.eup %5344  ;;  %5362 = vrcp.f32 %v3542_v8  ;;  %v3292_v8 = vadd.f32 %v6423_v56, %v3220_v23  ;;  %v2448_v52 = vmul.f32 1.442695, %v2371_v7  ;;  %v3535_v42 = vadd.f32 1.0, %v6508_v51 }
 0x160   : > { %v6554_v6 = vpop.f32.mrb[24].mxu0  ;;  %v6562_v9 = vpop.eup %5346  ;;  %5364 = vpow2.f32 %v4564_v4  ;;  %3802 = vrot.lane.b32.xlu0 %v5345_v11, %s5868_s25  ;;  %8713 = vst [vmem:[#allocation11_spill] sm:$0xff] %v6578_v60  ;;  %8715 = vst [vmem:[#allocation13_spill] sm:$0xff] %v6593_v10  ;;  %v2373_v7 = vmin.f32 %v6578_v60, 0.0  ;;  %v4568_v46 = vmul.f32 -1.442695, %v3293_v47  ;;  %v6616_v51 = vadd.f32 %v6502_v19, %v6387_v31 }
 0x161   : > { %v6560_v3 = vpop.f32.mrb[25].mxu0  ;;  %5366 = vpow2.f32 %v4565_v61  ;;  %v6569_v39 = vpop.eup %5348  ;;  %v4567_v41 = vmul.f32 -1.442695, %v3292_v8  ;;  %v6582_v61 = vadd.f32 %v6488_v0, %v6383_v29  ;;  %v2372_v60 = vmin.f32 %v6593_v10, 0.0 }
 0x162   : > { %5368 = vpow2.f32 %v2444_v1  ;;  %v6575_v4 = vpop.eup %5350 }
 0x163   : > { %8712 = vst [vmem:[#allocation10_spill] sm:$0xff] %v6575_v4  ;;  %5370 = vpow2.f32 %v2442_v25  ;;  %v5353_v23 = vpop.eup %5352  ;;  %v2446_v25 = vmul.f32 1.442695, %v2370_v27  ;;  %v3222_v29 = vmul.f32 %v6582_v61, %v6415_v48 }
 0x164   : > { %v6573_v57 = vpop.f32.mrb[26].mxu0  ;;  %5372 = vrcp.f32 %v3543_v49  ;;  %v6587_v1 = vpop.eup %5354  ;;  %v3544_v24 = vadd.f32 1.0, %v5353_v23 }
 0x165   : > { %v6584_v11 = vpop.f32.mrb[27].mxu0  ;;  %5374 = vpow2.f32 %v4566_v13  ;;  %v6589_v4 = vpop.eup %5356  ;;  %v3278_v13 = vadd.f32 %v6423_v56, %v3206_v28  ;;  %v3294_v23 = vadd.f32 %v6423_v56, %v3222_v29  ;;  %v6624_v29 = vadd.f32 %v6515_v5, %v6389_v32 }
 0x166   : > { %8714 = vst [vmem:[#allocation12_spill] sm:$0xff] %v6589_v4  ;;  %5376 = vpow2.f32 %v4567_v41  ;;  %v6599_v49 = vpop.eup %5358  ;;  %v3223_v41 = vmul.f32 %v5153_v58, %v6415_v48  ;;  %v3224_v32 = vmul.f32 %v6616_v51, %v6415_v48 }
 0x167   : > { %5378 = vrcp.f32 %v3544_v24  ;;  %v6606_v8 = vpop.eup %5360  ;;  %v6612_v24 = vadd.f32 %v6497_v14, %v6385_v30  ;;  %v4569_v47 = vmul.f32 -1.442695, %v3294_v23  ;;  %v2452_v14 = vmul.f32 1.442695, %v2373_v7 }
 0x168   : > { %v6597_v0 = vpop.f32.mrb[28].mxu0  ;;  %8716 = vst [vmem:[#allocation14_spill] sm:$0xff] %v6606_v8  ;;  %5380 = vpow2.f32 %v2448_v52  ;;  %v6620_v52 = vadd.f32 %v5153_v58, %v6420_v53  ;;  %v4553_v31 = vmul.f32 -1.442695, %v3278_v13  ;;  %v3295_v58 = vadd.f32 %v6423_v56, %v3223_v41 }
 0x169   : > { %v6604_v27 = vpop.f32.mrb[29].mxu0  ;;  %v5363_v4 = vpop.eup %5362  ;;  %5382 = vpow2.f32 %v2446_v25  ;;  %v2450_v7 = vmul.f32 1.442695, %v2372_v60  ;;  %v6652_v60 = vadd.f32 %v6582_v61, %v6420_v53 }
 0x16a   : > { %v5365_v28 = vpop.eup %5364  ;;  %8717 = vst [vmem:[#allocation15_spill] sm:$0xff] %v6620_v52  ;;  %3806 = vrot.lane.b32.xlu0 %v5363_v4, %s5868_s25  ;;  %5384 = vrcp.f32 %v3535_v42  ;;  %v2375_v42 = vmin.f32 %v6620_v52, 0.0 }
 0x16b   : > { %v5367_v30 = vpop.eup %5366  ;;  %5386 = vpow2.f32 %v4568_v46  ;;  %v3545_v4 = vadd.f32 1.0, %v5365_v28 }
 0x16c   : > { %v6627_v25 = vpop.f32.mrb[30].mxu0  ;;  %v6631_v8 = vpop.eup %5368  ;;  %v3546_v10 = vadd.f32 1.0, %v5367_v30  ;;  %5388 = vpow2.f32 %v4569_v47  ;;  %v4570_v47 = vmul.f32 -1.442695, %v3295_v58  ;;  %v2456_v58 = vmul.f32 1.442695, %v2375_v42 }
 0x16d   : > { %v6629_v19 = vpop.f32.mrb[31].mxu0  ;;  %v6636_v5 = vpop.eup %5370  ;;  %v5158_v42 = vadd.f32 %v6523_v22, %v6391_v33 }
 0x16e   : > { %8718 = vst [vmem:[#allocation16_spill] sm:$0xff] %v6629_v19  ;;  %v6638_v23 = vpop.eup %5372  ;;  %5390 = vrcp.f32 %v3546_v10  ;;  %v3296_v10 = vadd.f32 %v6423_v56, %v3224_v32 }
 0x16f   : > { %8719 = vst [vmem:[#allocation17_spill] sm:$0xff] %v6638_v23  ;;  %v6641_v13 = vpop.f32.mrb[32].mxu1  ;;  %v5375_v46 = vpop.eup %5374  ;;  %5392 = vpow2.f32 %v4553_v31  ;;  %v3225_v31 = vmul.f32 %v6612_v24, %v6415_v48 }
 0x170   : > { %8720 = vst [vmem:[#allocation18_spill] sm:$0xff] %v6641_v13  ;;  %v6643_v19 = vpop.f32.mrb[32].mxu0  ;;  %v6646_v41 = vpop.f32.mrb[33].mxu1  ;;  %5394 = vpow2.f32 %v2452_v14  ;;  %v4421_v14 = vadd.f32 -1.0, %v6499_v15  ;;  %v3547_v15 = vadd.f32 1.0, %v5375_v46 }
 0x171   : > { %8721 = vst [vmem:[#allocation19_spill] sm:$0xff] %v6643_v19  ;;  %8722 = vst [vmem:[#allocation20_spill] sm:$0xff] %v6646_v41  ;;  %v6648_v30 = vpop.f32.mrb[33].mxu0  ;;  %v5377_v28 = vpop.eup %5376  ;;  %5396 = vrcp.f32 %v3545_v4  ;;  %v4424_v4 = vadd.f32 -1.0, %v6525_v16  ;;  %v3297_v16 = vadd.f32 %v6423_v56, %v3225_v31 }
 0x172   : > { %8723 = vst [vmem:[#allocation21_spill] sm:$0xff] %v6648_v30  ;;  %v5379_v13 = vpop.eup %5378  ;;  %v3548_v19 = vadd.f32 1.0, %v5377_v28  ;;  %v4422_v30 = vadd.f32 -1.0, %v6486_v50  ;;  %5398 = vpow2.f32 %v2450_v7  ;;  %v4571_v28 = vmul.f32 -1.442695, %v3296_v10 }
 0x173   : > { %v6658_v41 = vpop.eup %5380  ;;  %3810 = vrot.lane.b32.xlu0 %v5379_v13, %s5868_s25  ;;  %v6663_v61 = vpop.f32.mrb[34].mxu1  ;;  %v2374_v7 = vmin.f32 %v6652_v60, 0.0  ;;  %v5159_v10 = vadd.f32 %v6538_v62, %v6393_v34  ;;  %v6695_v33 = vsel %vm2294_vm5, %v6432_v2, %v4421_v14  ;;  %v3226_v34 = vmul.f32 %v5158_v42, %v6415_v48 }
 0x174   : > { %v6665_v32 = vpop.f32.mrb[34].mxu0  ;;  %v6667_v23 = vpop.eup %5382  ;;  %5400 = vrcp.f32 %v3548_v19  ;;  %v3227_v19 = vmul.f32 %v6624_v29, %v6415_v48  ;;  %8726 = vst [vmem:[#allocation24_spill] sm:$0xff] %v6695_v33  ;;  %v4423_v2 = vadd.f32 -1.0, %v6531_v43  ;;  %vm2310_vm5 = vcmp.gt.f32.partialorder %v6652_v60, 0.0 }
 0x175   : > { %8724 = vst [vmem:[#allocation22_spill] sm:$0xff] %v6665_v32  ;;  %v6671_v52 = vpop.f32.mrb[35].mxu1  ;;  %v6673_v50 = vpop.f32.mrb[35].mxu0  ;;  %5402 = vpow2.f32 %v4570_v47  ;;  %v6680_v32 = vadd.f32 %v6612_v24, %v6420_v53  ;;  %v6690_v47 = vsel %vm2295_vm4, %v6427_v59, %v4422_v30  ;;  %v6708_v24 = vsel %vm2297_vm6, %v6444_v18, %v4424_v4 }
 0x176   : > { %v5385_v13 = vpop.eup %5384  ;;  %8725 = vst [vmem:[#allocation23_spill] sm:$0xff] %v6690_v47  ;;  %5404 = vpow2.f32 %v2456_v58  ;;  %8728 = vst [vmem:[#allocation26_spill] sm:$0xff] %v6708_v24  ;;  %v6713_v30 = vadd.f32 %v6616_v51, %v6420_v53  ;;  %v2454_v33 = vmul.f32 1.442695, %v2374_v7  ;;  %v4572_v4 = vmul.f32 -1.442695, %v3297_v16 }
 0x177   : > { %v5387_v46 = vpop.eup %5386  ;;  %3792 = vrot.lane.b32.xlu1 %v5385_v13, %s5868_s25  ;;  %v6701_v22 = vpop.f32.mrb[36].mxu1  ;;  %5406 = vpow2.f32 %v4571_v28  ;;  %v4426_v13 = vadd.f32 -1.0, %v6535_v26  ;;  %v2377_v18 = vmin.f32 %v6680_v32, 0.0  ;;  %v3299_v43 = vadd.f32 %v6423_v56, %v3227_v19 }
 0x178   : > { %v6703_v62 = vpop.f32.mrb[36].mxu0  ;;  %v5389_v59 = vpop.eup %5388  ;;  %5408 = vrcp.f32 %v3547_v15  ;;  %v3298_v51 = vadd.f32 %v6423_v56, %v3226_v34  ;;  %v3549_v24 = vadd.f32 1.0, %v5387_v46  ;;  %v3229_v26 = vmul.f32 %v5159_v10, %v6415_v48 }
 0x179   : > { %8727 = vst [vmem:[#allocation25_spill] sm:$0xff] %v6703_v62  ;;  %v6715_v31 = vpop.f32.mrb[37].mxu1  ;;  %v6717_v14 = vpop.f32.mrb[37].mxu0  ;;  %v3550_v47 = vadd.f32 1.0, %v5389_v59  ;;  %v2376_v16 = vmin.f32 %v6713_v30, 0.0  ;;  %v5160_v34 = vadd.f32 %v6541_v17, %v6395_v35  ;;  %v6753_v35 = vadd.f32 %v6560_v3, %v6399_v37 }
 0x17a   : > { %8729 = vst [vmem:[#allocation27_spill] sm:$0xff] %v6717_v14  ;;  %v5391_v58 = vpop.eup %5390  ;;  %v4573_v19 = vmul.f32 -1.442695, %v3298_v51  ;;  %v2460_v17 = vmul.f32 1.442695, %v2377_v18  ;;  %v6765_v37 = vadd.f32 %v5159_v10, %v6420_v53  ;;  %v3301_v3 = vadd.f32 %v6423_v56, %v3229_v26 }
 0x17b   : > { %v5393_v62 = vpop.eup %5392  ;;  %3814 = vrot.lane.b32.xlu0 %v5391_v58, %s5868_s25  ;;  %5410 = vrcp.f32 %v3550_v47  ;;  %v6727_v15 = vpop.f32.mrb[38].mxu1  ;;  %v6738_v58 = vadd.f32 %v6554_v6, %v6397_v36  ;;  %v6757_v36 = vadd.f32 %v6573_v57, %v6401_v38  ;;  %v4574_v51 = vmul.f32 -1.442695, %v3299_v43 }
 0x17c   : > { %v6724_v28 = vpop.eup %5394  ;;  %v3534_v14 = vadd.f32 1.0, %v5393_v62  ;;  %v6729_v7 = vpop.f32.mrb[38].mxu0  ;;  %v3228_v38 = vmul.f32 %v5160_v34, %v6415_v48  ;;  %v6782_v10 = vsel %vm2299_vm8, %v6452_v55, %v4426_v13  ;;  %v2458_v18 = vmul.f32 1.442695, %v2376_v16 }
 0x17d   : > { %8730 = vst [vmem:[#allocation28_spill] sm:$0xff] %v6729_v7  ;;  %v6731_v59 = vpop.eup %5396  ;;  %v6740_v46 = vpop.f32.mrb[39].mxu1  ;;  %v6749_v7 = vadd.f32 %v6624_v29, %v6420_v53  ;;  %8734 = vst [vmem:[#allocation32_spill] sm:$0xff] %v6782_v10  ;;  %v4428_v55 = vadd.f32 -1.0, %v6562_v9  ;;  %vm2313_vm6 = vcmp.gt.f32.partialorder %v6680_v32, 0.0 }
 0x17e   : > { %v6742_v47 = vpop.f32.mrb[39].mxu0  ;;  %v6744_v62 = vpop.eup %5398  ;;  %5412 = vrcp.f32 %v3534_v14  ;;  %v6761_v14 = vadd.f32 %v5158_v42, %v6420_v53  ;;  %v6777_v42 = vsel %vm2296_vm7, %v6448_v45, %v4423_v2  ;;  %v3300_v2 = vadd.f32 %v6423_v56, %v3228_v38 }
 0x17f   : > { %8731 = vst [vmem:[#allocation29_spill] sm:$0xff] %v6742_v47  ;;  %v5401_v6 = vpop.eup %5400  ;;  %5414 = vpow2.f32 %v4572_v4  ;;  %v6770_v57 = vpop.f32.mrb[40].mxu1  ;;  %8733 = vst [vmem:[#allocation31_spill] sm:$0xff] %v6777_v42  ;;  %v2379_v45 = vmin.f32 %v6749_v7, 0.0  ;;  %v2381_v42 = vmin.f32 %v6765_v37, 0.0  ;;  %v4430_v38 = vadd.f32 -1.0, %v6587_v1 }
 0x180   : > { %v5403_v47 = vpop.eup %5402  ;;  %5416 = vpow2.f32 %v4573_v19  ;;  %3818 = vrot.lane.b32.xlu0 %v5401_v6, %s5868_s25  ;;  %v6772_v29 = vpop.f32.mrb[40].mxu0  ;;  %v4425_v19 = vadd.f32 -1.0, %v6552_v40  ;;  %vm2312_vm7 = vcmp.gt.f32.partialorder %v6713_v30, 0.0  ;;  %vm2315_vm8 = vcmp.gt.f32.partialorder %v6749_v7, 0.0 }
 0x181   : > { %8732 = vst [vmem:[#allocation30_spill] sm:$0xff] %v6772_v29  ;;  %5418 = vpow2.f32 %v2454_v33  ;;  %v6785_v4 = vpop.f32.mrb[41].mxu1  ;;  %v6787_v43 = vpop.f32.mrb[41].mxu0  ;;  %v3551_v13 = vadd.f32 1.0, %v5403_v47  ;;  %v2378_v33 = vmin.f32 %v6761_v14, 0.0  ;;  %v6806_v29 = vadd.f32 %v5160_v34, %v6420_v53 }
 0x182   : > { %8735 = vst [vmem:[#allocation33_spill] sm:$0xff] %v6785_v4  ;;  %8736 = vst [vmem:[#allocation34_spill] sm:$0xff] %v6787_v43  ;;  %v6789_v26 = vpop.eup %5404  ;;  %5420 = vrcp.f32 %v3549_v24  ;;  %v4576_v43 = vmul.f32 -1.442695, %v3301_v3  ;;  %v4427_v24 = vadd.f32 -1.0, %v6569_v39  ;;  %v6817_v39 = vsel %vm2298_vm9, %v6468_v21, %v4425_v19 }
 0x183   : > { %v5407_v6 = vpop.eup %5406  ;;  %5422 = vpow2.f32 %v2460_v17  ;;  %v6799_v40 = vpop.f32.mrb[42].mxu1  ;;  %v4575_v4 = vmul.f32 -1.442695, %v3300_v2  ;;  %v2464_v17 = vmul.f32 1.442695, %v2379_v45  ;;  %8740 = vst [vmem:[#allocation38_spill] sm:$0xff] %v6817_v39 }
 0x184   : > { %v6796_v16 = vpop.eup %5408  ;;  %v3552_v10 = vadd.f32 1.0, %v5407_v6  ;;  %5424 = vpow2.f32 %v4574_v51  ;;  %v6803_v9 = vpop.f32.mrb[42].mxu0  ;;  %v3230_v51 = vmul.f32 %v6753_v35, %v6415_v48  ;;  %v2462_v1 = vmul.f32 1.442695, %v2378_v33 }
 0x185   : > { %5426 = vpow2.f32 %v2458_v18  ;;  %8737 = vst [vmem:[#allocation35_spill] sm:$0xff] %v6803_v9  ;;  %v5411_v47 = vpop.eup %5410  ;;  %v6810_v3 = vpop.f32.mrb[43].mxu1  ;;  %v6825_v18 = vsel %vm2301_vm10, %v6471_v12, %v4428_v55  ;;  %v2468_v45 = vmul.f32 1.442695, %v2381_v42  ;;  %v6836_v33 = vsel %vm2300_vm11, %v6477_v44, %v4427_v24  ;;  %v8745_v42 = vld [vmem:[#allocation2_spill] sm:$0xff]  ;;  %v8749_v24 = vld [vmem:[#allocation7_spill] sm:$0xff] }
 0x186   : > { %5428 = vrcp.f32 %v3552_v10  ;;  %8738 = vst [vmem:[#allocation36_spill] sm:$0xff] %v6810_v3  ;;  %v6812_v6 = vpop.f32.mrb[43].mxu0  ;;  %v3231_v10 = vmul.f32 %v6738_v58, %v6415_v48  ;;  %3822 = vrot.lane.b32.xlu0 %v5411_v47, %s5868_s25  ;;  %8741 = vst [vmem:[#allocation39_spill] sm:$0xff] %v6825_v18  ;;  %v3302_v21 = vadd.f32 %v6423_v56, %v3230_v51  ;;  %vm2304_vm15 = vcmp.gt.f32.partialorder %v8749_v24, 0.0  ;;  %v8760_v3 = vld [vmem:[#allocation16_spill] sm:$0xff] }
 0x187   : > { %8739 = vst [vmem:[#allocation37_spill] sm:$0xff] %v6812_v6  ;;  %5430 = vrcp.f32 %v3551_v13  ;;  %v6829_v19 = vpop.f32.mrb[44].mxu1  ;;  %8744 = vst [vmem:[#allocation42_spill] sm:$0xff] %v6836_v33  ;;  %v6842_v12 = vadd.f32 %v6738_v58, %v6420_v53  ;;  %v6855_v44 = vsel %vm2303_vm12, %v6482_v54, %v4430_v38  ;;  %v2380_v58 = vmin.f32 %v6806_v29, 0.0 }
 0x188   : > { %v5413_v34 = vpop.eup %5412  ;;  %5432 = vpow2.f32 %v4576_v43  ;;  %8742 = vst [vmem:[#allocation40_spill] sm:$0xff] %v6829_v19  ;;  %v6831_v2 = vpop.f32.mrb[44].mxu0  ;;  %v6846_v43 = vadd.f32 %v6584_v11, %v8745_v42  ;;  %8748 = vst [vmem:[#allocation44_spill] sm:$0xff] %v6855_v44  ;;  %v4429_v11 = vadd.f32 -1.0, %v6599_v49  ;;  %v3303_v18 = vadd.f32 %v6423_v56, %v3231_v10 }
 0x189   : > { %8743 = vst [vmem:[#allocation41_spill] sm:$0xff] %v6831_v2  ;;  %v5415_v13 = vpop.eup %5414  ;;  %3790 = vrot.lane.b32.xlu1 %v5413_v34, %s5868_s25  ;;  %5434 = vpow2.f32 %v4575_v4  ;;  %v6848_v55 = vpop.f32.mrb[45].mxu1  ;;  %v4577_v4 = vmul.f32 -1.442695, %v3302_v21  ;;  %v4432_v39 = vadd.f32 -1.0, %v6631_v8  ;;  %v6868_v54 = vadd.f32 %v6753_v35, %v6420_v53  ;;  %v8757_v2 = vld [vmem:[#allocation4_spill] sm:$0xff] }
 0x18a   : > { %8746 = vst [vmem:[#allocation2_spill] sm:$0xff] %v6848_v55  ;;  %v6850_v47 = vpop.f32.mrb[45].mxu0  ;;  %v5417_v51 = vpop.eup %5416  ;;  %5436 = vpow2.f32 %v2464_v17  ;;  %v3232_v38 = vmul.f32 %v6846_v43, %v6415_v48  ;;  %v3553_v10 = vadd.f32 1.0, %v5415_v13  ;;  %v2383_v8 = vmin.f32 %v6842_v12, 0.0 }
 0x18b   : > { %8747 = vst [vmem:[#allocation43_spill] sm:$0xff] %v6850_v47  ;;  %v6859_v34 = vpop.eup %5418  ;;  %5438 = vpow2.f32 %v2462_v1  ;;  %v3554_v42 = vadd.f32 1.0, %v5417_v51  ;;  %v6872_v17 = vpop.f32.mrb[46].mxu1  ;;  %v4431_v1 = vadd.f32 -1.0, %v6636_v5  ;;  %v8752_v51 = vld [vmem:[#allocation10_spill] sm:$0xff]  ;;  %v8755_v47 = vld [vmem:[#allocation8_spill] sm:$0xff] }
 0x18c   : > { %v6863_v33 = vpop.eup %5420  ;;  %5440 = vpow2.f32 %v2468_v45  ;;  %8750 = vst [vmem:[#allocation7_spill] sm:$0xff] %v6872_v17  ;;  %v6874_v21 = vpop.f32.mrb[46].mxu0  ;;  %vm2307_vm0 = vcmp.gt.f32.partialorder %v8755_v47, 0.0  ;;  %v2466_v17 = vmul.f32 1.442695, %v2380_v58  ;;  %v3304_v5 = vadd.f32 %v6423_v56, %v3232_v38 }
 0x18d   : > { %8751 = vst [vmem:[#allocation45_spill] sm:$0xff] %v6874_v21  ;;  %v6876_v49 = vpop.eup %5422  ;;  %3796 = vrot.lane.b32.xlu1 %v8752_v51, %s5868_s25  ;;  %5442 = vrcp.f32 %v3554_v42  ;;  %v6882_v35 = vpop.f32.mrb[47].mxu1  ;;  %v3233_v21 = vmul.f32 %v6757_v36, %v6415_v48  ;;  %v4578_v51 = vmul.f32 -1.442695, %v3303_v18  ;;  %v8756_v42 = vld [vmem:[#allocation3_spill] sm:$0xff]  ;;  %v6905_v38 = vadd.f32 %v6757_v36, %v6420_v53  ;;  %v8759_v18 = vld [vmem:[#allocation6_spill] sm:$0xff] }
 0x18e   : > { %8753 = vst [vmem:[#allocation10_spill] sm:$0xff] %v6882_v35  ;;  %v6884_v45 = vpop.f32.mrb[47].mxu0  ;;  %v5425_v44 = vpop.eup %5424  ;;  %5444 = vpow2.f32 %v4577_v4  ;;  %v5165_v55 = vadd.f32 %v6597_v0, %v8756_v42  ;;  %v6896_v35 = vadd.f32 %v6604_v27, %v8757_v2  ;;  %v2382_v4 = vmin.f32 %v6868_v54, 0.0  ;;  %v8765_v36 = vld [vmem:[#allocation11_spill] sm:$0xff] }
 0x18f   : > { %8754 = vst [vmem:[#allocation46_spill] sm:$0xff] %v6884_v45  ;;  %v6890_v13 = vpop.eup %5426  ;;  %v8758_v45 = vld [vmem:[#allocation5_spill] sm:$0xff]  ;;  %v4579_v6 = vmul.f32 -1.442695, %v3304_v5  ;;  %v6909_v9 = vadd.f32 %v8760_v3, %v8759_v18  ;;  %v6911_v0 = vpop.f32.mrb[48].mxu1  ;;  %vm2309_vm2 = vcmp.gt.f32.partialorder %v8765_v36, 0.0  ;;  %5446 = vrcp.f32 %v3553_v10 }
 0x190   : > { %v6900_v19 = vadd.f32 %v6627_v25, %v8758_v45  ;;  %v5429_v58 = vpop.eup %5428  ;;  %8761 = vst [vmem:[#allocation8_spill] sm:$0xff] %v6911_v0  ;;  %v6913_v27 = vpop.f32.mrb[48].mxu0  ;;  %v6920_v25 = vsel %vm2302_vm13, %v6492_v20, %v4429_v11  ;;  %v8764_v45 = vld [vmem:[#allocation9_spill] sm:$0xff]  ;;  %v3555_v5 = vadd.f32 1.0, %v5425_v44  ;;  %v8766_v3 = vld [vmem:[#allocation12_spill] sm:$0xff]  ;;  %v6934_v20 = vsel %vm2305_vm14, %v6512_v63, %v4432_v39 }
 0x191   : > { %8762 = vst [vmem:[#allocation3_spill] sm:$0xff] %v6913_v27  ;;  %v6915_v2 = vpop.eup %5430  ;;  %8763 = vst [vmem:[#allocation4_spill] sm:$0xff] %v6920_v25  ;;  %vm2306_vm1 = vcmp.gt.f32.partialorder %v8764_v45, 0.0  ;;  %3800 = vrot.lane.b32.xlu1 %v8766_v3, %s5868_s25  ;;  %3826 = vrot.lane.b32.xlu0 %v5429_v58, %s5868_s25  ;;  %v6927_v42 = vpop.f32.mrb[49].mxu1  ;;  %5448 = vpow2.f32 %v2466_v17  ;;  %v3305_v11 = vadd.f32 %v6423_v56, %v3233_v21  ;;  %v4434_v3 = vadd.f32 -1.0, %v6658_v41  ;;  %v8771_v25 = vld [vmem:[#allocation13_spill] sm:$0xff] }
 0x192   : > { %8767 = vst [vmem:[#allocation5_spill] sm:$0xff] %v6927_v42  ;;  %v6929_v18 = vpop.f32.mrb[49].mxu0  ;;  %v5433_v27 = vpop.eup %5432  ;;  %8769 = vst [vmem:[#allocation16_spill] sm:$0xff] %v6934_v20  ;;  %v3234_v44 = vmul.f32 %v6896_v35, %v6415_v48  ;;  %v6942_v58 = vsel %vm2304_vm15, %v8749_v24, %v4431_v1  ;;  %vm2308_vm3 = vcmp.gt.f32.partialorder %v8771_v25, 0.0  ;;  %5450 = vpow2.f32 %v4579_v6  ;;  %v8773_v41 = vld [vmem:[#allocation14_spill] sm:$0xff] }
 0x193   : > { %8768 = vst [vmem:[#allocation6_spill] sm:$0xff] %v6929_v18  ;;  %v5435_v10 = vpop.eup %5434  ;;  %8770 = vst [vmem:[#allocation9_spill] sm:$0xff] %v6942_v58  ;;  %v2472_v18 = vmul.f32 1.442695, %v2383_v8  ;;  %5452 = vpow2.f32 %v4578_v51  ;;  %v2470_v17 = vmul.f32 1.442695, %v2382_v4  ;;  %v3235_v6 = vmul.f32 %v5165_v55, %v6415_v48 }
 0x194   : > { %v6946_v63 = vpop.eup %5436  ;;  %v3556_v39 = vadd.f32 1.0, %v5435_v10  ;;  %v2385_v21 = vmin.f32 %v6905_v38, 0.0  ;;  %v6949_v20 = vpop.f32.mrb[50].mxu1  ;;  %5454 = vrcp.f32 %v3555_v5  ;;  %v3557_v24 = vadd.f32 1.0, %v5433_v27 }
 0x195   : > { %v6951_v42 = vpop.f32.mrb[50].mxu0  ;;  %v6953_v0 = vpop.eup %5438  ;;  %3804 = vrot.lane.b32.xlu1 %v8773_v41, %s5868_s25  ;;  %v3306_v1 = vadd.f32 %v6423_v56, %v3234_v44  ;;  %v4433_v4 = vadd.f32 -1.0, %v6667_v23  ;;  %v4436_v10 = vadd.f32 -1.0, %v6724_v28  ;;  %v4580_v58 = vmul.f32 -1.442695, %v3305_v11 }
 0x196   : > { %8772 = vst [vmem:[#allocation11_spill] sm:$0xff] %v6951_v42  ;;  %v6959_v8 = vpop.f32.mrb[51].mxu1  ;;  %v6961_v51 = vpop.eup %5440  ;;  %5456 = vrcp.f32 %v3556_v39  ;;  %v6970_v5 = vsel %vm2307_vm0, %v8755_v47, %v4434_v3  ;;  %v4435_v44 = vadd.f32 -1.0, %v6744_v62  ;;  %v6975_v41 = vadd.f32 %v6846_v43, %v6420_v53  ;;  %v8779_v3 = vld [vmem:[#allocation15_spill] sm:$0xff]  ;;  %v8780_v43 = vld [vmem:[#allocation17_spill] sm:$0xff] }
 0x197   : > { %8774 = vst [vmem:[#allocation12_spill] sm:$0xff] %v6959_v8  ;;  %v6965_v42 = vpop.f32.mrb[51].mxu0  ;;  %v5443_v27 = vpop.eup %5442  ;;  %8776 = vst [vmem:[#allocation14_spill] sm:$0xff] %v6970_v5  ;;  %5458 = vpow2.f32 %v2472_v18  ;;  %v2476_v28 = vmul.f32 1.442695, %v2385_v21  ;;  %v6978_v11 = vadd.f32 %v5165_v55, %v6420_v53  ;;  %vm2311_vm4 = vcmp.gt.f32.partialorder %v8779_v3, 0.0 }
 0x198   : > { %8775 = vst [vmem:[#allocation13_spill] sm:$0xff] %v6965_v42  ;;  %v5445_v23 = vpop.eup %5444  ;;  %5460 = vpow2.f32 %v2470_v17  ;;  %v4581_v39 = vmul.f32 -1.442695, %v3306_v1  ;;  %3830 = vrot.lane.b32.xlu0 %v5443_v27, %s5868_s25  ;;  %v6981_v42 = vpop.f32.mrb[52].mxu1  ;;  %v3307_v18 = vadd.f32 %v6423_v56, %v3235_v6  ;;  %v3236_v55 = vmul.f32 %v6909_v9, %v6415_v48 }
 0x199   : > { %8777 = vst [vmem:[#allocation47_spill] sm:$0xff] %v6981_v42  ;;  %v6983_v47 = vpop.f32.mrb[52].mxu0  ;;  %5462 = vrcp.f32 %v3557_v24  ;;  %v3558_v62 = vadd.f32 1.0, %v5445_v23  ;;  %3808 = vrot.lane.b32.xlu1 %v8780_v43, %s5868_s25  ;;  %v6991_v17 = vpop.f32.mrb[53].mxu1  ;;  %v6998_v1 = vsel %vm2306_vm1, %v8764_v45, %v4433_v4  ;;  %v7003_v24 = vsel %vm2309_vm2, %v8765_v36, %v4436_v10  ;;  %v8787_v23 = vld [vmem:[#allocation19_spill] sm:$0xff] }
 0x19a   : > { %8778 = vst [vmem:[#allocation48_spill] sm:$0xff] %v6983_v47  ;;  %8781 = vst [vmem:[#allocation15_spill] sm:$0xff] %v6991_v17  ;;  %v6993_v21 = vpop.f32.mrb[53].mxu0  ;;  %5464 = vpow2.f32 %v4580_v58  ;;  %v7007_v6 = vadd.f32 %v6896_v35, %v6420_v53  ;;  %v7009_v27 = vpop.eup %5446  ;;  %v2384_v45 = vmin.f32 %v6975_v41, 0.0  ;;  %v3237_v4 = vmul.f32 %v6900_v19, %v6415_v48  ;;  %v8786_v58 = vld [vmem:[#allocation18_spill] sm:$0xff] }
 0x19b   : > { %8782 = vst [vmem:[#allocation17_spill] sm:$0xff] %v6993_v21  ;;  %8783 = vst [vmem:[#allocation49_spill] sm:$0xff] %v6998_v1  ;;  %5466 = vrcp.f32 %v3558_v62  ;;  %v3308_v36 = vadd.f32 %v6423_v56, %v3236_v55  ;;  %v7017_v10 = vpop.eup %5448  ;;  %v7022_v53 = vsel %vm2308_vm3, %v8771_v25, %v4435_v44  ;;  %v2387_v35 = vmin.f32 %v6978_v11, 0.0  ;;  %v7027_v43 = vpop.f32.mrb[54].mxu1 }
 0x19c   : > { %8784 = vst [vmem:[#allocation50_spill] sm:$0xff] %v7003_v24  ;;  %8785 = vst [vmem:[#allocation51_spill] sm:$0xff] %v7022_v53  ;;  %5468 = vpow2.f32 %v4581_v39  ;;  %v5169_v62 = vadd.f32 %v8787_v23, %v8786_v58  ;;  %v7029_v24 = vpop.f32.mrb[54].mxu0  ;;  %v5451_v5 = vpop.eup %5450  ;;  %v4438_v55 = vadd.f32 -1.0, %v6789_v26  ;;  %v4437_v1 = vadd.f32 -1.0, %v6859_v34 }
 0x19d   : > { %8788 = vst [vmem:[#allocation18_spill] sm:$0xff] %v7027_v43  ;;  %8789 = vst [vmem:[#allocation19_spill] sm:$0xff] %v7029_v24  ;;  %5470 = vpow2.f32 %v2476_v28  ;;  %v4582_v21 = vmul.f32 -1.442695, %v3307_v18  ;;  %3812 = vrot.lane.b32.xlu1 %v6731_v59, %s5868_s25  ;;  %v7035_v25 = vpop.f32.mrb[55].mxu1  ;;  %v7037_v44 = vpop.f32.mrb[55].mxu0  ;;  %v3309_v18 = vadd.f32 %v6423_v56, %v3237_v4 }
 0x19e   : > { %8790 = vst [vmem:[#allocation52_spill] sm:$0xff] %v7035_v25  ;;  %8791 = vst [vmem:[#allocation53_spill] sm:$0xff] %v7037_v44  ;;  %v5453_v39 = vpop.eup %5452  ;;  %v3560_v58 = vadd.f32 1.0, %v5451_v5  ;;  %v2386_v23 = vmin.f32 %v7007_v6, 0.0  ;;  %v7043_v53 = vld [vmem:[%s8688_s2] ss:$0 sm:$0xff]  ;;  %v3239_v5 = vmul.f32 %v5169_v62, %v6415_v48 }
 0x19f   : > { %v7047_v26 = vadd.f32 %v7043_v53, %v6900_v19  ;;  %v4583_v34 = vmul.f32 -1.442695, %v3308_v36  ;;  %v7049_v28 = vpop.eup %5454  ;;  %v2474_v59 = vmul.f32 1.442695, %v2384_v45  ;;  %v8792_v44 = vld [vmem:[#allocation20_spill] sm:$0xff]  ;;  %v8793_v25 = vld [vmem:[#allocation21_spill] sm:$0xff] }
 0x1a0   : > { %v7056_v24 = vadd.f32 %v8793_v25, %v8792_v44  ;;  %v5457_v43 = vpop.eup %5456  ;;  %v4440_v17 = vadd.f32 -1.0, %v6876_v49  ;;  %5472 = vrcp.f32 %v3560_v58  ;;  %v2480_v19 = vmul.f32 1.442695, %v2387_v35  ;;  %v8794_v36 = vld [vmem:[#allocation22_spill] sm:$0xff]  ;;  %v7063_v42 = vpop.f32.mrb[56].mxu1 }
 0x1a1   : > { %v7061_v47 = vadd.f32 %v8794_v36, %v6663_v61  ;;  %v7065_v45 = vpop.f32.mrb[56].mxu0  ;;  %v7067_v4 = vpop.eup %5458  ;;  %v3559_v8 = vadd.f32 1.0, %v5453_v39  ;;  %5474 = vpow2.f32 %v4582_v21  ;;  %3816 = vrot.lane.b32.xlu1 %v6796_v16, %s5868_s25  ;;  %v7073_v49 = vadd.f32 %v7043_v53, %v6909_v9  ;;  %3834 = vrot.lane.b32.xlu0 %v5457_v43, %s5868_s25 }
 0x1a2   : > { %v3238_v35 = vmul.f32 %v7056_v24, %v6415_v48  ;;  %v7078_v61 = vpop.f32.mrb[57].mxu1  ;;  %v7080_v25 = vpop.f32.mrb[57].mxu0  ;;  %v7087_v21 = vsel %vm2311_vm4, %v8779_v3, %v4438_v55  ;;  %v2478_v16 = vmul.f32 1.442695, %v2386_v23  ;;  %v2389_v9 = vmin.f32 %v7047_v26, 0.0 }
 0x1a3   : > { %8795 = vst [vmem:[#allocation20_spill] sm:$0xff] %v7078_v61  ;;  %8796 = vst [vmem:[#allocation21_spill] sm:$0xff] %v7080_v25  ;;  %v7082_v44 = vpop.eup %5460  ;;  %5476 = vpow2.f32 %v4583_v34  ;;  %v4584_v58 = vmul.f32 -1.442695, %v3309_v18  ;;  %v3311_v43 = vadd.f32 %v6423_v56, %v3239_v5  ;;  %v7097_v61 = vsel %vm2310_vm5, %v6652_v60, %v4437_v1  ;;  %v7105_v23 = vpop.f32.mrb[58].mxu1 }
 0x1a4   : > { %8797 = vst [vmem:[#allocation22_spill] sm:$0xff] %v7087_v21  ;;  %v7090_v39 = vpop.eup %5462  ;;  %5478 = vpow2.f32 %v2474_v59  ;;  %v3310_v36 = vadd.f32 %v6423_v56, %v3238_v35  ;;  %8798 = vst [vmem:[#allocation54_spill] sm:$0xff] %v7097_v61  ;;  %v7102_v3 = vsel %vm2313_vm6, %v6680_v32, %v4440_v17  ;;  %v4439_v55 = vadd.f32 -1.0, %v6890_v13  ;;  %v7107_v34 = vpop.f32.mrb[58].mxu0 }
 0x1a5   : > { %v5465_v25 = vpop.eup %5464  ;;  %8799 = vst [vmem:[#allocation55_spill] sm:$0xff] %v7102_v3  ;;  %5480 = vpow2.f32 %v2480_v19  ;;  %v2388_v18 = vmin.f32 %v7073_v49, 0.0  ;;  %v7111_v5 = vadd.f32 %v7043_v53, %v5169_v62  ;;  %3820 = vrot.lane.b32.xlu1 %v6863_v33, %s5868_s25  ;;  %v7115_v32 = vpop.f32.mrb[59].mxu1  ;;  %v2484_v13 = vmul.f32 1.442695, %v2389_v9 }
 0x1a6   : > { %v5467_v59 = vpop.eup %5466  ;;  %5482 = vrcp.f32 %v3559_v8  ;;  %v4585_v60 = vmul.f32 -1.442695, %v3310_v36  ;;  %v3241_v1 = vmul.f32 %v7061_v47, %v6415_v48  ;;  %v5172_v8 = vadd.f32 %v6673_v50, %v6671_v52  ;;  %v7122_v19 = vpop.f32.mrb[59].mxu0  ;;  %v8800_v36 = vld [vmem:[#allocation25_spill] sm:$0xff] }
 0x1a7   : > { %v5469_v17 = vpop.eup %5468  ;;  %5484 = vpow2.f32 %v2478_v16  ;;  %3838 = vrot.lane.b32.xlu0 %v5467_v59, %s5868_s25  ;;  %v4586_v33 = vmul.f32 -1.442695, %v3311_v43  ;;  %v7128_v3 = vadd.f32 %v8800_v36, %v6701_v22  ;;  %v7133_v16 = vsel %vm2312_vm7, %v6713_v30, %v4439_v55  ;;  %v7138_v9 = vpop.f32.mrb[60].mxu1 }
 0x1a8   : > { %v7124_v62 = vpop.eup %5470  ;;  %v3562_v35 = vadd.f32 1.0, %v5469_v17  ;;  %5486 = vpow2.f32 %v4584_v58  ;;  %8801 = vst [vmem:[#allocation25_spill] sm:$0xff] %v7133_v16  ;;  %vm2314_vm9 = vcmp.gt.f32.partialorder %v6761_v14, 0.0  ;;  %v3561_v52 = vadd.f32 1.0, %v5465_v25  ;;  %v7140_v58 = vpop.f32.mrb[60].mxu0 }
 0x1a9   : > { %5488 = vpow2.f32 %v4585_v60  ;;  %v3313_v50 = vadd.f32 %v6423_v56, %v3241_v1  ;;  %vm2317_vm10 = vcmp.gt.f32.partialorder %v6765_v37, 0.0  ;;  %v2482_v22 = vmul.f32 1.442695, %v2388_v18  ;;  %3824 = vrot.lane.b32.xlu1 %v6915_v2, %s5868_s25  ;;  %v7147_v55 = vpop.f32.mrb[61].mxu1  ;;  %v7149_v25 = vpop.f32.mrb[61].mxu0 }
 0x1aa   : > { %5490 = vrcp.f32 %v3562_v35  ;;  %v2391_v43 = vmin.f32 %v7111_v5, 0.0  ;;  %v3240_v30 = vmul.f32 %v5172_v8, %v6415_v48  ;;  %8802 = vst [vmem:[#allocation56_spill] sm:$0xff] %v7147_v55  ;;  %8803 = vst [vmem:[#allocation57_spill] sm:$0xff] %v7149_v25  ;;  %v5473_v59 = vpop.eup %5472  ;;  %v4442_v60 = vadd.f32 -1.0, %v6946_v63 }
 0x1ab   : > { %v4441_v17 = vadd.f32 -1.0, %v6953_v0  ;;  %vm2316_vm11 = vcmp.gt.f32.partialorder %v6806_v29, 0.0  ;;  %5492 = vpow2.f32 %v2484_v13  ;;  %v7156_v18 = vadd.f32 %v7043_v53, %v7056_v24  ;;  %v5475_v1 = vpop.eup %5474  ;;  %3842 = vrot.lane.b32.xlu0 %v5473_v59, %s5868_s25 }
 0x1ac   : > { %v4444_v2 = vadd.f32 -1.0, %v6961_v51  ;;  %v4443_v35 = vadd.f32 -1.0, %v7017_v10  ;;  %vm2319_vm12 = vcmp.gt.f32.partialorder %v6842_v12, 0.0  ;;  %5494 = vpow2.f32 %v4586_v33  ;;  %v7169_v51 = vpop.f32.mrb[62].mxu1  ;;  %v7171_v10 = vpop.f32.mrb[62].mxu0 }
 0x1ad   : > { %v3312_v36 = vadd.f32 %v6423_v56, %v3240_v30  ;;  %v5477_v0 = vpop.eup %5476  ;;  %5496 = vrcp.f32 %v3561_v52  ;;  %v7165_v63 = vadd.f32 %v7043_v53, %v7061_v47  ;;  %v4588_v24 = vmul.f32 -1.442695, %v3313_v50  ;;  %8804 = vst [vmem:[#allocation58_spill] sm:$0xff] %v7169_v51  ;;  %8805 = vst [vmem:[#allocation59_spill] sm:$0xff] %v7171_v10  ;;  %3828 = vrot.lane.b32.xlu1 %v7009_v27, %s5868_s25  ;;  %v7177_v52 = vpop.f32.mrb[63].mxu1  ;;  %v8807_v10 = vld [vmem:[#allocation27_spill] sm:$0xff] }
 0x1ae   : > { %v3243_v13 = vmul.f32 %v7128_v3, %v6415_v48  ;;  %v7173_v16 = vpop.eup %5478  ;;  %5498 = vpow2.f32 %v2482_v22  ;;  %v3564_v33 = vadd.f32 1.0, %v5477_v0  ;;  %v2488_v30 = vmul.f32 1.442695, %v2391_v43  ;;  %8806 = vst [vmem:[#allocation60_spill] sm:$0xff] %v7177_v52  ;;  %v7188_v0 = vpop.f32.mrb[63].mxu0  ;;  %v8808_v27 = vld [vmem:[#allocation28_spill] sm:$0xff] }
 0x1af   : > { %v4587_v59 = vmul.f32 -1.442695, %v3312_v36  ;;  %v7179_v47 = vpop.eup %5480  ;;  %v2390_v50 = vmin.f32 %v7156_v18, 0.0  ;;  %v7183_v21 = vadd.f32 %v7043_v53, %v5172_v8  ;;  %v5174_v22 = vadd.f32 %v8807_v10, %v6715_v31  ;;  %v8809_v51 = vld [vmem:[#allocation29_spill] sm:$0xff] }
 0x1b0   : > { %v3315_v61 = vadd.f32 %v6423_v56, %v3243_v13  ;;  %v5483_v43 = vpop.eup %5482  ;;  %v3563_v36 = vadd.f32 1.0, %v5475_v1  ;;  %5500 = vrcp.f32 %v3564_v33  ;;  %v7192_v52 = vadd.f32 %v8808_v27, %v6727_v15 }
 0x1b1   : > { %v7196_v25 = vadd.f32 %v8809_v51, %v6740_v46  ;;  %v7198_v8 = vpop.eup %5484  ;;  %v4446_v13 = vadd.f32 -1.0, %v7067_v4  ;;  %v2393_v55 = vmin.f32 %v7165_v63, 0.0  ;;  %5502 = vpow2.f32 %v4588_v24  ;;  %3832 = vrot.lane.b32.xlu1 %v7049_v28, %s5868_s25 }
 0x1b2   : > { %v4590_v31 = vmul.f32 -1.442695, %v3315_v61  ;;  %v5487_v10 = vpop.eup %5486  ;;  %v7205_v1 = vsel %vm2315_vm8, %v6749_v7, %v4442_v60  ;;  %v7210_v15 = vsel %vm2314_vm9, %v6761_v14, %v4441_v17  ;;  %5504 = vpow2.f32 %v4587_v59 }
 0x1b3   : > { %v3242_v46 = vmul.f32 %v5174_v22, %v6415_v48  ;;  %v5489_v4 = vpop.eup %5488  ;;  %v7218_v61 = vsel %vm2317_vm10, %v6765_v37, %v4444_v2  ;;  %5506 = vpow2.f32 %v2488_v30  ;;  %v2486_v7 = vmul.f32 1.442695, %v2390_v50 }
 0x1b4   : > { %v2392_v60 = vmin.f32 %v7183_v21, 0.0  ;;  %v5491_v24 = vpop.eup %5490  ;;  %v7224_v14 = vsel %vm2316_vm11, %v6806_v29, %v4443_v35  ;;  %5508 = vrcp.f32 %v3563_v36  ;;  %v3566_v17 = vadd.f32 1.0, %v5489_v4 }
 0x1b5   : > { %v3314_v28 = vadd.f32 %v6423_v56, %v3242_v46  ;;  %v7227_v51 = vpop.eup %5492  ;;  %v7232_v37 = vsel %vm2319_vm12, %v6842_v12, %v4446_v13  ;;  %vm2318_vm13 = vcmp.gt.f32.partialorder %v6868_v54, 0.0  ;;  %v2492_v2 = vmul.f32 1.442695, %v2393_v55  ;;  %3846 = vrot.lane.b32.xlu0 %v5491_v24, %s5868_s25  ;;  %3836 = vrot.lane.b32.xlu1 %v7090_v39, %s5868_s25 }
 0x1b6   : > { %v7237_v33 = vadd.f32 %v7043_v53, %v7128_v3  ;;  %5510 = vpow2.f32 %v4590_v31  ;;  %v5495_v29 = vpop.eup %5494  ;;  %vm2321_vm14 = vcmp.gt.f32.partialorder %v6905_v38, 0.0  ;;  %vm2320_vm15 = vcmp.gt.f32.partialorder %v6975_v41, 0.0  ;;  %v8810_v31 = vld [vmem:[#allocation30_spill] sm:$0xff] }
 0x1b7   : > { %v3565_v35 = vadd.f32 1.0, %v5487_v10  ;;  %5512 = vrcp.f32 %v3566_v17  ;;  %v4589_v30 = vmul.f32 -1.442695, %v3314_v28  ;;  %v3245_v12 = vmul.f32 %v7192_v52, %v6415_v48  ;;  %v5497_v55 = vpop.eup %5496  ;;  %v8812_v28 = vld [vmem:[#allocation34_spill] sm:$0xff] }
 0x1b8   : > { %v4445_v3 = vadd.f32 -1.0, %v7082_v44  ;;  %5514 = vpow2.f32 %v2486_v7  ;;  %v2490_v59 = vmul.f32 1.442695, %v2392_v60  ;;  %v3244_v50 = vmul.f32 %v7196_v25, %v6415_v48  ;;  %v5499_v36 = vpop.eup %5498 }
 0x1b9   : > { %vm2323_vm0 = vcmp.gt.f32.partialorder %v6978_v11, 0.0  ;;  %v7251_v27 = vadd.f32 %v7043_v53, %v5174_v22  ;;  %5516 = vpow2.f32 %v4589_v30  ;;  %v3317_v13 = vadd.f32 %v6423_v56, %v3245_v12  ;;  %3840 = vrot.lane.b32.xlu1 %v5483_v43, %s5868_s25 }
 0x1ba   : > { %v5177_v39 = vadd.f32 %v8810_v31, %v6770_v57  ;;  %v4448_v10 = vadd.f32 -1.0, %v7124_v62  ;;  %v3567_v44 = vadd.f32 1.0, %v5495_v29  ;;  %5518 = vpow2.f32 %v2492_v2  ;;  %v5501_v4 = vpop.eup %5500  ;;  %v8811_v57 = vld [vmem:[#allocation33_spill] sm:$0xff]  ;;  %v8813_v2 = vld [vmem:[#allocation35_spill] sm:$0xff] }
 0x1bb   : > { %v2395_v46 = vmin.f32 %v7237_v33, 0.0  ;;  %5520 = vrcp.f32 %v3565_v35  ;;  %v4592_v7 = vmul.f32 -1.442695, %v3317_v13  ;;  %v3316_v60 = vadd.f32 %v6423_v56, %v3244_v50  ;;  %v5503_v24 = vpop.eup %5502  ;;  %3850 = vrot.lane.b32.xlu0 %v5501_v4, %s5868_s25 }
 0x1bc   : > { %v3247_v22 = vmul.f32 %v5177_v39, %v6415_v48  ;;  %v4447_v17 = vadd.f32 -1.0, %v7173_v16  ;;  %5522 = vpow2.f32 %v2490_v59  ;;  %v5178_v62 = vadd.f32 %v8812_v28, %v8811_v57  ;;  %v5505_v35 = vpop.eup %5504 }
 0x1bd   : > { %v7266_v29 = vadd.f32 %v8813_v2, %v6799_v40  ;;  %v4450_v30 = vadd.f32 -1.0, %v7179_v47  ;;  %v2394_v12 = vmin.f32 %v7251_v27, 0.0  ;;  %5524 = vpow2.f32 %v4592_v7  ;;  %v5507_v50 = vpop.eup %5506  ;;  %3844 = vrot.lane.b32.xlu1 %v5497_v55, %s5868_s25 }
 0x1be   : > { %v4591_v43 = vmul.f32 -1.442695, %v3316_v60  ;;  %5526 = vrcp.f32 %v3567_v44  ;;  %v3568_v16 = vadd.f32 1.0, %v5505_v35  ;;  %v2496_v59 = vmul.f32 1.442695, %v2395_v46  ;;  %v5509_v31 = vpop.eup %5508 }
 0x1bf   : > { %v3319_v13 = vadd.f32 %v6423_v56, %v3247_v22  ;;  %v7275_v40 = vsel %vm2318_vm13, %v6868_v54, %v4445_v3  ;;  %v3569_v4 = vadd.f32 1.0, %v5503_v24  ;;  %v3246_v47 = vmul.f32 %v5178_v62, %v6415_v48 }
 0x1c0   : > { %5528 = vpow2.f32 %v4591_v43  ;;  %v5511_v7 = vpop.eup %5510  ;;  %v7282_v44 = vsel %vm2321_vm14, %v6905_v38, %v4448_v10  ;;  %v7287_v46 = vsel %vm2320_vm15, %v6975_v41, %v4447_v17  ;;  %vm2322_vm1 = vcmp.gt.f32.partialorder %v7007_v6, 0.0 }
 0x1c1   : > { %5530 = vrcp.f32 %v3568_v16  ;;  %v4594_v54 = vmul.f32 -1.442695, %v3319_v13  ;;  %v5513_v3 = vpop.eup %5512  ;;  %vm2325_vm2 = vcmp.gt.f32.partialorder %v7047_v26, 0.0  ;;  %v2494_v60 = vmul.f32 1.442695, %v2394_v12  ;;  %3848 = vrot.lane.b32.xlu1 %v5509_v31, %s5868_s25  ;;  %v8815_v13 = vld [vmem:[#allocation37_spill] sm:$0xff] }
 0x1c2   : > { %v7293_v55 = vadd.f32 %v7043_v53, %v7192_v52  ;;  %v7297_v38 = vadd.f32 %v7043_v53, %v7196_v25  ;;  %v3318_v10 = vadd.f32 %v6423_v56, %v3246_v47  ;;  %v7300_v41 = vpop.eup %5514  ;;  %v7305_v22 = vsel %vm2323_vm0, %v6978_v11, %v4450_v30  ;;  %3854 = vrot.lane.b32.xlu0 %v5513_v3, %s5868_s25 }
 0x1c3   : > { %v4449_v24 = vadd.f32 -1.0, %v7198_v8  ;;  %vm2324_vm3 = vcmp.gt.f32.partialorder %v7073_v49, 0.0  ;;  %vm2327_vm4 = vcmp.gt.f32.partialorder %v7111_v5, 0.0  ;;  %5532 = vpow2.f32 %v2496_v59  ;;  %v5517_v52 = vpop.eup %5516  ;;  %v8814_v59 = vld [vmem:[#allocation36_spill] sm:$0xff] }
 0x1c4   : > { %v3249_v25 = vmul.f32 %v7266_v29, %v6415_v48  ;;  %v4452_v17 = vadd.f32 -1.0, %v7227_v51  ;;  %v4451_v57 = vadd.f32 -1.0, %v5499_v36  ;;  %5534 = vrcp.f32 %v3569_v4  ;;  %v5519_v11 = vpop.eup %5518  ;;  %v8817_v4 = vld [vmem:[#allocation41_spill] sm:$0xff] }
 0x1c5   : > { %v4593_v28 = vmul.f32 -1.442695, %v3318_v10  ;;  %v3571_v8 = vadd.f32 1.0, %v5511_v7  ;;  %v3570_v2 = vadd.f32 1.0, %v5517_v52  ;;  %v7316_v35 = vadd.f32 %v7043_v53, %v5177_v39  ;;  %v5521_v30 = vpop.eup %5520  ;;  %v8816_v39 = vld [vmem:[#allocation40_spill] sm:$0xff]  ;;  %v8819_v10 = vld [vmem:[#allocation43_spill] sm:$0xff] }
 0x1c6   : > { %5536 = vpow2.f32 %v4594_v54  ;;  %v2397_v12 = vmin.f32 %v7293_v55, 0.0  ;;  %v2396_v43 = vmin.f32 %v7297_v38, 0.0  ;;  %v3321_v51 = vadd.f32 %v6423_v56, %v3249_v25  ;;  %v7321_v36 = vpop.eup %5522  ;;  %3852 = vrot.lane.b32.xlu1 %v5521_v30, %s5868_s25 }
 0x1c7   : > { %5538 = vpow2.f32 %v2494_v60  ;;  %v7324_v16 = vadd.f32 %v7043_v53, %v5178_v62  ;;  %v5180_v31 = vadd.f32 %v8815_v13, %v8814_v59  ;;  %v5181_v47 = vadd.f32 %v8817_v4, %v8816_v39  ;;  %v5525_v7 = vpop.eup %5524  ;;  %v8818_v60 = vld [vmem:[#allocation2_spill] sm:$0xff] }
 0x1c8   : > { %5540 = vrcp.f32 %v3570_v2  ;;  %v4454_v54 = vadd.f32 -1.0, %v5507_v50  ;;  %v4596_v3 = vmul.f32 -1.442695, %v3321_v51  ;;  %v7332_v52 = vadd.f32 %v8819_v10, %v8818_v60  ;;  %v5527_v25 = vpop.eup %5526 }
 0x1c9   : > { %5542 = vpow2.f32 %v4593_v28  ;;  %v3573_v62 = vadd.f32 1.0, %v5525_v7  ;;  %v2399_v2 = vmin.f32 %v7316_v35, 0.0  ;;  %v3248_v59 = vmul.f32 %v5180_v31, %v6415_v48 }
 0x1ca   : > { %5544 = vrcp.f32 %v3571_v8  ;;  %v5529_v13 = vpop.eup %5528  ;;  %v7340_v50 = vsel %vm2322_vm1, %v7007_v6, %v4449_v24  ;;  %vm2326_vm5 = vcmp.gt.f32.partialorder %v7156_v18, 0.0  ;;  %v2500_v28 = vmul.f32 1.442695, %v2397_v12  ;;  %3856 = vrot.lane.b32.xlu1 %v5527_v25, %s5868_s25 }
 0x1cb   : > { %5546 = vpow2.f32 %v4596_v3  ;;  %v3251_v51 = vmul.f32 %v5181_v47, %v6415_v48  ;;  %v5531_v30 = vpop.eup %5530  ;;  %v7347_v8 = vsel %vm2325_vm2, %v7047_v26, %v4452_v17  ;;  %vm2329_vm6 = vcmp.gt.f32.partialorder %v7165_v63, 0.0 }
 0x1cc   : > { %8820 = vst [vmem:[#allocation27_spill] sm:$0xff] %v7347_v8  ;;  %v2498_v39 = vmul.f32 1.442695, %v2396_v43  ;;  %v3572_v4 = vadd.f32 1.0, %v5529_v13  ;;  %v2398_v7 = vmin.f32 %v7324_v16, 0.0  ;;  %v7354_v6 = vsel %vm2324_vm3, %v7073_v49, %v4451_v57  ;;  %3858 = vrot.lane.b32.xlu0 %v5531_v30, %s5868_s25  ;;  %v8823_v30 = vld [vmem:[#allocation45_spill] sm:$0xff] }
 0x1cd   : > { %v7359_v24 = vsel %vm2327_vm4, %v7111_v5, %v4454_v54  ;;  %5548 = vrcp.f32 %v3573_v62  ;;  %v3320_v26 = vadd.f32 %v6423_v56, %v3248_v59  ;;  %v5533_v17 = vpop.eup %5532  ;;  %v2504_v12 = vmul.f32 1.442695, %v2399_v2 }
 0x1ce   : > { %8821 = vst [vmem:[#allocation28_spill] sm:$0xff] %v7359_v24  ;;  %5550 = vrcp.f32 %v3572_v4  ;;  %v7366_v43 = vadd.f32 %v7043_v53, %v7266_v29  ;;  %v3323_v49 = vadd.f32 %v6423_v56, %v3251_v51  ;;  %v5535_v57 = vpop.eup %5534  ;;  %v4453_v5 = vadd.f32 -1.0, %v7300_v41  ;;  %v8822_v51 = vld [vmem:[#allocation7_spill] sm:$0xff] }
 0x1cf   : > { %5552 = vpow2.f32 %v2500_v28  ;;  %v4595_v54 = vmul.f32 -1.442695, %v3320_v26  ;;  %v3250_v3 = vmul.f32 %v7332_v52, %v6415_v48  ;;  %v4456_v10 = vadd.f32 -1.0, %v5519_v11  ;;  %3860 = vrot.lane.b32.xlu1 %v5535_v57, %s5868_s25  ;;  %v8825_v26 = vld [vmem:[#allocation46_spill] sm:$0xff]  ;;  %v8826_v57 = vld [vmem:[#allocation8_spill] sm:$0xff]  ;;  %v8840_v24 = vld [vmem:[#allocation15_spill] sm:$0xff] }
 0x1d0   : > { %v5537_v60 = vpop.eup %5536  ;;  %5554 = vpow2.f32 %v2498_v39  ;;  %v2502_v25 = vmul.f32 1.442695, %v2398_v7  ;;  %v4598_v62 = vmul.f32 -1.442695, %v3323_v49  ;;  %v7373_v29 = vadd.f32 %v7043_v53, %v5180_v31  ;;  %v8824_v7 = vld [vmem:[#allocation10_spill] sm:$0xff] }
 0x1d1   : > { %v5539_v2 = vpop.eup %5538  ;;  %v3575_v59 = vadd.f32 1.0, %v5537_v60  ;;  %5556 = vpow2.f32 %v4595_v54  ;;  %v3322_v13 = vadd.f32 %v6423_v56, %v3250_v3  ;;  %vm2328_vm7 = vcmp.gt.f32.partialorder %v7183_v21, 0.0  ;;  %v8827_v54 = vld [vmem:[#allocation3_spill] sm:$0xff] }
 0x1d2   : > { %v5541_v41 = vpop.eup %5540  ;;  %vm2331_vm8 = vcmp.gt.f32.partialorder %v7237_v33, 0.0  ;;  %5558 = vpow2.f32 %v2504_v12  ;;  %v2401_v11 = vmin.f32 %v7366_v43, 0.0  ;;  %v7381_v28 = vadd.f32 %v7043_v53, %v5181_v47 }
 0x1d3   : > { %v5183_v31 = vadd.f32 %v8823_v30, %v8822_v51  ;;  %v5543_v39 = vpop.eup %5542  ;;  %5560 = vrcp.f32 %v3575_v59  ;;  %v4597_v4 = vmul.f32 -1.442695, %v3322_v13  ;;  %v5184_v49 = vadd.f32 %v8825_v26, %v8824_v7  ;;  %3862 = vrot.lane.b32.xlu0 %v5541_v41, %s5868_s25 }
 0x1d4   : > { %v7389_v3 = vadd.f32 %v8827_v54, %v8826_v57  ;;  %v5545_v12 = vpop.eup %5544  ;;  %v7395_v47 = vsel %vm2326_vm5, %v7156_v18, %v4453_v5  ;;  %vm2330_vm9 = vcmp.gt.f32.partialorder %v7251_v27, 0.0  ;;  %v3574_v60 = vadd.f32 1.0, %v5543_v39 }
 0x1d5   : > { %8828 = vst [vmem:[#allocation29_spill] sm:$0xff] %v7395_v47  ;;  %5562 = vpow2.f32 %v4598_v62  ;;  %v5547_v59 = vpop.eup %5546  ;;  %v7401_v13 = vsel %vm2329_vm6, %v7165_v63, %v4456_v10  ;;  %v2400_v51 = vmin.f32 %v7373_v29, 0.0  ;;  %v3253_v41 = vmul.f32 %v5183_v31, %v6415_v48  ;;  %3864 = vrot.lane.b32.xlu1 %v5545_v12, %s5868_s25  ;;  %v8830_v12 = vld [vmem:[#allocation5_spill] sm:$0xff] }
 0x1d6   : > { %8829 = vst [vmem:[#allocation30_spill] sm:$0xff] %v7401_v13  ;;  %5564 = vpow2.f32 %v2502_v25  ;;  %v4455_v18 = vadd.f32 -1.0, %v7321_v36  ;;  %v2508_v5 = vmul.f32 1.442695, %v2401_v11  ;;  %v3577_v30 = vadd.f32 1.0, %v5547_v59  ;;  %v8838_v13 = vld [vmem:[#allocation47_spill] sm:$0xff] }
 0x1d7   : > { %5566 = vrcp.f32 %v3574_v60  ;;  %v5549_v39 = vpop.eup %5548  ;;  %v4458_v62 = vadd.f32 -1.0, %v5533_v17  ;;  %v2403_v7 = vmin.f32 %v7381_v28, 0.0  ;;  %v3325_v63 = vadd.f32 %v6423_v56, %v3253_v41  ;;  %v8831_v60 = vld [vmem:[#allocation6_spill] sm:$0xff] }
 0x1d8   : > { %5568 = vpow2.f32 %v4597_v4  ;;  %v5551_v10 = vpop.eup %5550  ;;  %v4457_v25 = vadd.f32 -1.0, %v5539_v2  ;;  %v7411_v26 = vadd.f32 %v7043_v53, %v7332_v52  ;;  %v3252_v57 = vmul.f32 %v5184_v49, %v6415_v48 }
 0x1d9   : > { %5570 = vrcp.f32 %v3577_v30  ;;  %v5553_v36 = vpop.eup %5552  ;;  %v2506_v54 = vmul.f32 1.442695, %v2400_v51  ;;  %v4600_v11 = vmul.f32 -1.442695, %v3325_v63  ;;  %v3255_v17 = vmul.f32 %v7389_v3, %v6415_v48  ;;  %3866 = vrot.lane.b32.xlu0 %v5551_v10, %s5868_s25  ;;  %3868 = vrot.lane.b32.xlu1 %v5549_v39, %s5868_s25  ;;  %v8832_v51 = vld [vmem:[#allocation11_spill] sm:$0xff] }
 0x1da   : > { %v5186_v4 = vadd.f32 %v8831_v60, %v8830_v12  ;;  %v5555_v2 = vpop.eup %5554  ;;  %5572 = vpow2.f32 %v2508_v5  ;;  %v7421_v52 = vadd.f32 %v7043_v53, %v5183_v31  ;;  %v3324_v59 = vadd.f32 %v6423_v56, %v3252_v57 }
 0x1db   : > { %v7426_v41 = vadd.f32 %v8832_v51, %v6949_v20  ;;  %v5557_v30 = vpop.eup %5556  ;;  %v7431_v63 = vsel %vm2328_vm7, %v7183_v21, %v4455_v18  ;;  %v7436_v39 = vsel %vm2331_vm8, %v7237_v33, %v4458_v62  ;;  %v2512_v5 = vmul.f32 1.442695, %v2403_v7 }
 0x1dc   : > { %8833 = vst [vmem:[#allocation33_spill] sm:$0xff] %v7431_v63  ;;  %8834 = vst [vmem:[#allocation34_spill] sm:$0xff] %v7436_v39  ;;  %5574 = vpow2.f32 %v4600_v11  ;;  %v5559_v31 = vpop.eup %5558  ;;  %v3576_v10 = vadd.f32 1.0, %v5557_v30  ;;  %v2402_v57 = vmin.f32 %v7411_v26, 0.0  ;;  %v4599_v12 = vmul.f32 -1.442695, %v3324_v59 }
 0x1dd   : > { %v3327_v20 = vadd.f32 %v6423_v56, %v3255_v17  ;;  %v5561_v60 = vpop.eup %5560  ;;  %v7443_v21 = vsel %vm2330_vm9, %v7251_v27, %v4457_v25  ;;  %v4460_v18 = vadd.f32 -1.0, %v5553_v36  ;;  %5576 = vpow2.f32 %v2506_v54  ;;  %v8837_v39 = vld [vmem:[#allocation13_spill] sm:$0xff]  ;;  %v8839_v63 = vld [vmem:[#allocation48_spill] sm:$0xff] }
 0x1de   : > { %8835 = vst [vmem:[#allocation35_spill] sm:$0xff] %v7443_v21  ;;  %v7446_v33 = vadd.f32 %v7043_v53, %v5184_v49  ;;  %vm2333_vm10 = vcmp.gt.f32.partialorder %v7293_v55, 0.0  ;;  %vm2332_vm11 = vcmp.gt.f32.partialorder %v7297_v38, 0.0  ;;  %5578 = vrcp.f32 %v3576_v10  ;;  %3872 = vrot.lane.b32.xlu1 %v5561_v60, %s5868_s25 }
 0x1df   : > { %v5563_v62 = vpop.eup %5562  ;;  %v2405_v7 = vmin.f32 %v7421_v52, 0.0  ;;  %v4602_v11 = vmul.f32 -1.442695, %v3327_v20  ;;  %v3254_v17 = vmul.f32 %v5186_v4, %v6415_v48  ;;  %v4459_v25 = vadd.f32 -1.0, %v5555_v2 }
 0x1e0   : > { %v5565_v27 = vpop.eup %5564  ;;  %vm2335_vm12 = vcmp.gt.f32.partialorder %v7316_v35, 0.0  ;;  %v3579_v36 = vadd.f32 1.0, %v5563_v62  ;;  %5580 = vpow2.f32 %v4599_v12  ;;  %v7456_v49 = vadd.f32 %v7043_v53, %v7389_v3 }
 0x1e1   : > { %v5567_v54 = vpop.eup %5566  ;;  %v4462_v59 = vadd.f32 -1.0, %v5559_v31  ;;  %vm2334_vm13 = vcmp.gt.f32.partialorder %v7324_v16, 0.0  ;;  %5582 = vpow2.f32 %v2512_v5  ;;  %v2510_v51 = vmul.f32 1.442695, %v2402_v57 }
 0x1e2   : > { %v3326_v30 = vadd.f32 %v6423_v56, %v3254_v17  ;;  %v5569_v10 = vpop.eup %5568  ;;  %5584 = vrcp.f32 %v3579_v36  ;;  %v2404_v2 = vmin.f32 %v7446_v33, 0.0  ;;  %v7462_v20 = vadd.f32 %v7043_v53, %v5186_v4  ;;  %3870 = vrot.lane.b32.xlu0 %v5567_v54, %s5868_s25  ;;  %v8836_v36 = vld [vmem:[#allocation12_spill] sm:$0xff] }
 0x1e3   : > { %v3257_v12 = vmul.f32 %v7426_v41, %v6415_v48  ;;  %v5571_v3 = vpop.eup %5570  ;;  %v4461_v31 = vadd.f32 -1.0, %v5565_v27  ;;  %v3578_v60 = vadd.f32 1.0, %v5569_v10  ;;  %v2516_v62 = vmul.f32 1.442695, %v2405_v7  ;;  %v8841_v27 = vld [vmem:[#allocation17_spill] sm:$0xff]  ;;  %v8842_v7 = vld [vmem:[#allocation18_spill] sm:$0xff] }
 0x1e4   : > { %5586 = vpow2.f32 %v4602_v11  ;;  %v2407_v5 = vmin.f32 %v7456_v49, 0.0  ;;  %v4601_v57 = vmul.f32 -1.442695, %v3326_v30  ;;  %v5188_v21 = vadd.f32 %v8837_v39, %v8836_v36  ;;  %3876 = vrot.lane.b32.xlu1 %v5571_v3, %s5868_s25  ;;  %v5573_v4 = vpop.eup %5572  ;;  %v8843_v11 = vld [vmem:[#allocation19_spill] sm:$0xff] }
 0x1e5   : > { %v3329_v17 = vadd.f32 %v6423_v56, %v3257_v12  ;;  %5588 = vrcp.f32 %v3578_v60  ;;  %v5189_v54 = vadd.f32 %v8839_v63, %v8838_v13  ;;  %v5190_v10 = vadd.f32 %v8841_v27, %v8840_v24 }
 0x1e6   : > { %v7478_v47 = vadd.f32 %v8843_v11, %v8842_v7  ;;  %v5575_v30 = vpop.eup %5574  ;;  %5590 = vpow2.f32 %v2510_v51  ;;  %v2514_v12 = vmul.f32 1.442695, %v2404_v2  ;;  %v2406_v8 = vmin.f32 %v7462_v20, 0.0 }
 0x1e7   : > { %v4604_v39 = vmul.f32 -1.442695, %v3329_v17  ;;  %v3581_v36 = vadd.f32 1.0, %v5575_v30  ;;  %5592 = vpow2.f32 %v4601_v57  ;;  %v7483_v3 = vadd.f32 %v7043_v53, %v7426_v41  ;;  %v5577_v63 = vpop.eup %5576 }
 0x1e8   : > { %v3256_v13 = vmul.f32 %v5188_v21, %v6415_v48  ;;  %v7489_v24 = vsel %vm2333_vm10, %v7293_v55, %v4460_v18  ;;  %v7494_v51 = vsel %vm2332_vm11, %v7297_v38, %v4459_v25  ;;  %5594 = vpow2.f32 %v2516_v62  ;;  %v5579_v60 = vpop.eup %5578 }
 0x1e9   : > { %v2520_v2 = vmul.f32 1.442695, %v2407_v5  ;;  %v7499_v41 = vsel %vm2335_vm12, %v7316_v35, %v4462_v59  ;;  %5596 = vrcp.f32 %v3581_v36  ;;  %v7502_v57 = vadd.f32 %v7043_v53, %v5188_v21  ;;  %3874 = vrot.lane.b32.xlu0 %v5579_v60, %s5868_s25 }
 0x1ea   : > { %v3328_v55 = vadd.f32 %v6423_v56, %v3256_v13  ;;  %v5581_v18 = vpop.eup %5580  ;;  %v7508_v38 = vsel %vm2334_vm13, %v7324_v16, %v4461_v31  ;;  %vm2337_vm14 = vcmp.gt.f32.partialorder %v7366_v43, 0.0  ;;  %vm2336_vm15 = vcmp.gt.f32.partialorder %v7373_v29, 0.0 }
 0x1eb   : > { %vm2339_vm0 = vcmp.gt.f32.partialorder %v7381_v28, 0.0  ;;  %v2518_v35 = vmul.f32 1.442695, %v2406_v8  ;;  %5598 = vpow2.f32 %v4604_v39  ;;  %v3259_v25 = vmul.f32 %v5189_v54, %v6415_v48  ;;  %v5583_v21 = vpop.eup %5582 }
 0x1ec   : > { %5600 = vpow2.f32 %v2514_v12  ;;  %v3580_v59 = vadd.f32 1.0, %v5581_v18  ;;  %v2409_v62 = vmin.f32 %v7483_v3, 0.0  ;;  %v4603_v5 = vmul.f32 -1.442695, %v3328_v55  ;;  %v5585_v16 = vpop.eup %5584  ;;  %v8844_v18 = vld [vmem:[#allocation52_spill] sm:$0xff] }
 0x1ed   : > { %5602 = vpow2.f32 %v2520_v2  ;;  %v7517_v31 = vadd.f32 %v7043_v53, %v5189_v54  ;;  %v3331_v17 = vadd.f32 %v6423_v56, %v3259_v25  ;;  %v3258_v8 = vmul.f32 %v5190_v10, %v6415_v48  ;;  %3880 = vrot.lane.b32.xlu1 %v5585_v16, %s5868_s25  ;;  %v8845_v25 = vld [vmem:[#allocation53_spill] sm:$0xff] }
 0x1ee   : > { %v5587_v27 = vpop.eup %5586  ;;  %v4464_v7 = vadd.f32 -1.0, %v5573_v4  ;;  %v4463_v11 = vadd.f32 -1.0, %v5577_v63  ;;  %5604 = vrcp.f32 %v3580_v59  ;;  %v2408_v30 = vmin.f32 %v7502_v57, 0.0 }
 0x1ef   : > { %v3583_v12 = vadd.f32 1.0, %v5587_v27  ;;  %5606 = vpow2.f32 %v2518_v35  ;;  %v4606_v39 = vmul.f32 -1.442695, %v3331_v17  ;;  %v7524_v36 = vadd.f32 %v7043_v53, %v5190_v10  ;;  %v5589_v54 = vpop.eup %5588 }
 0x1f0   : > { %v4466_v13 = vadd.f32 -1.0, %v5583_v21  ;;  %v2524_v2 = vmul.f32 1.442695, %v2409_v62  ;;  %5608 = vpow2.f32 %v4603_v5  ;;  %v3330_v60 = vadd.f32 %v6423_v56, %v3258_v8  ;;  %v5591_v55 = vpop.eup %5590  ;;  %3878 = vrot.lane.b32.xlu0 %v5589_v54, %s5868_s25 }
 0x1f1   : > { %5610 = vrcp.f32 %v3583_v12  ;;  %v2411_v4 = vmin.f32 %v7517_v31, 0.0  ;;  %v3261_v63 = vmul.f32 %v7478_v47, %v6415_v48  ;;  %v5192_v35 = vadd.f32 %v8845_v25, %v8844_v18  ;;  %v5593_v10 = vpop.eup %5592 }
 0x1f2   : > { %v2522_v59 = vmul.f32 1.442695, %v2408_v30  ;;  %v4605_v16 = vmul.f32 -1.442695, %v3330_v60  ;;  %v7535_v21 = vadd.f32 %v7043_v53, %v7478_v47  ;;  %v5193_v62 = vadd.f32 %v7065_v45, %v7063_v42  ;;  %v5595_v5 = vpop.eup %5594 }
 0x1f3   : > { %vm2338_vm1 = vcmp.gt.f32.partialorder %v7411_v26, 0.0  ;;  %v3582_v17 = vadd.f32 1.0, %v5593_v10  ;;  %5612 = vpow2.f32 %v4606_v39  ;;  %v2410_v8 = vmin.f32 %v7524_v36, 0.0  ;;  %v5597_v12 = vpop.eup %5596  ;;  %v8849_v10 = vld [vmem:[#allocation20_spill] sm:$0xff] }
 0x1f4   : > { %v3333_v27 = vadd.f32 %v6423_v56, %v3261_v63  ;;  %v7545_v30 = vsel %vm2337_vm14, %v7366_v43, %v4464_v7  ;;  %v7550_v47 = vsel %vm2336_vm15, %v7373_v29, %v4463_v11  ;;  %v7555_v42 = vsel %vm2339_vm0, %v7381_v28, %v4466_v13  ;;  %3884 = vrot.lane.b32.xlu1 %v5597_v12, %s5868_s25 }
 0x1f5   : > { %8846 = vst [vmem:[#allocation36_spill] sm:$0xff] %v7545_v30  ;;  %8847 = vst [vmem:[#allocation37_spill] sm:$0xff] %v7550_v47  ;;  %vm2341_vm2 = vcmp.gt.f32.partialorder %v7421_v52, 0.0  ;;  %5614 = vpow2.f32 %v2524_v2  ;;  %v5599_v45 = vpop.eup %5598  ;;  %v4465_v39 = vadd.f32 -1.0, %v5591_v55  ;;  %vm2340_vm3 = vcmp.gt.f32.partialorder %v7446_v33, 0.0 }
 0x1f6   : > { %8848 = vst [vmem:[#allocation40_spill] sm:$0xff] %v7555_v42  ;;  %5616 = vrcp.f32 %v3582_v17  ;;  %v4608_v43 = vmul.f32 -1.442695, %v3333_v27  ;;  %v3260_v7 = vmul.f32 %v5192_v35, %v6415_v48  ;;  %v5601_v29 = vpop.eup %5600  ;;  %v3585_v11 = vadd.f32 1.0, %v5599_v45  ;;  %v8850_v17 = vld [vmem:[#allocation21_spill] sm:$0xff] }
 0x1f7   : > { %v2528_v54 = vmul.f32 1.442695, %v2411_v4  ;;  %5618 = vpow2.f32 %v4605_v16  ;;  %v2413_v28 = vmin.f32 %v7535_v21, 0.0  ;;  %v5603_v13 = vpop.eup %5602  ;;  %v2526_v60 = vmul.f32 1.442695, %v2410_v8 }
 0x1f8   : > { %5620 = vpow2.f32 %v2522_v59  ;;  %v7563_v2 = vadd.f32 %v7043_v53, %v5192_v35  ;;  %v3332_v55 = vadd.f32 %v6423_v56, %v3260_v7  ;;  %v5605_v63 = vpop.eup %5604  ;;  %v4468_v18 = vadd.f32 -1.0, %v5595_v5 }
 0x1f9   : > { %5622 = vrcp.f32 %v3585_v11  ;;  %v3263_v25 = vmul.f32 %v5193_v62, %v6415_v48  ;;  %v5194_v27 = vadd.f32 %v8850_v17, %v8849_v10  ;;  %v5607_v4 = vpop.eup %5606  ;;  %v7570_v12 = vadd.f32 %v7043_v53, %v5193_v62  ;;  %3882 = vrot.lane.b32.xlu0 %v5605_v63, %s5868_s25  ;;  %v7578_v62 = vpop.permute.xlu1 %3792 }
 0x1fa   : > { %5624 = vpow2.f32 %v4608_v43  ;;  %v4607_v16 = vmul.f32 -1.442695, %v3332_v55  ;;  %v5195_v35 = vadd.f32 %v7107_v34, %v7105_v23  ;;  %v5609_v59 = vpop.eup %5608  ;;  %v4467_v8 = vadd.f32 -1.0, %v5601_v29 }
 0x1fb   : > { %5626 = vpow2.f32 %v2528_v54  ;;  %v2532_v5 = vmul.f32 1.442695, %v2413_v28  ;;  %v3335_v45 = vadd.f32 %v6423_v56, %v3263_v25  ;;  %v5611_v7 = vpop.eup %5610  ;;  %v3584_v11 = vadd.f32 1.0, %v5609_v59  ;;  %v7589_v54 = vpop.permute.xlu0 %3794 }
 0x1fc   : > { %5628 = vpow2.f32 %v2526_v60  ;;  %v2412_v43 = vmin.f32 %v7563_v2, 0.0  ;;  %v3262_v55 = vmul.f32 %v5194_v27, %v6415_v48  ;;  %v7583_v23 = vsel %vm2338_vm1, %v7411_v26, %v4465_v39  ;;  %3888 = vrot.lane.b32.xlu1 %v5611_v7, %s5868_s25 }
 0x1fd   : > { %8851 = vst [vmem:[#allocation41_spill] sm:$0xff] %v7583_v23  ;;  %5630 = vpow2.f32 %v4607_v16  ;;  %v4610_v34 = vmul.f32 -1.442695, %v3335_v45  ;;  %v7586_v29 = vadd.f32 %v7043_v53, %v5194_v27  ;;  %v5613_v28 = vpop.eup %5612  ;;  %v7594_v60 = vsel %vm2341_vm2, %v7421_v52, %v4468_v18  ;;  %v7607_v52 = vld [vmem:[%s8688_s2] ss:$0 sm:$0xff] }
 0x1fe   : > { %8852 = vst [vmem:[#allocation2_spill] sm:$0xff] %v7594_v60  ;;  %5632 = vrcp.f32 %v3584_v11  ;;  %v2415_v63 = vmin.f32 %v7570_v12, 0.0  ;;  %v3334_v26 = vadd.f32 %v6423_v56, %v3262_v55  ;;  %v7601_v53 = vsel %vm2340_vm3, %v7446_v33, %v4467_v8 }
 0x1ff   : > { %v5615_v39 = vpop.eup %5614  ;;  %8853 = vst [vmem:[#allocation43_spill] sm:$0xff] %v7601_v53  ;;  %vm2343_vm4 = vcmp.gt.f32.partialorder %v7456_v49, 0.0  ;;  %v3587_v25 = vadd.f32 1.0, %v5613_v28  ;;  %5634 = vpow2.f32 %v2532_v5  ;;  %v7610_v18 = vadd.f32 %v7607_v52, %v5195_v35 }
 0x200   : > { %v5617_v10 = vpop.eup %5616  ;;  %v4470_v17 = vadd.f32 -1.0, %v5603_v13  ;;  %vm2342_vm5 = vcmp.gt.f32.partialorder %v7462_v20, 0.0  ;;  %v4469_v27 = vadd.f32 -1.0, %v5607_v4  ;;  %v2530_v16 = vmul.f32 1.442695, %v2412_v43  ;;  %v7619_v43 = vpop.permute.xlu1 %3790 }
 0x201   : > { %5636 = vpow2.f32 %v4610_v34  ;;  %v5619_v33 = vpop.eup %5618  ;;  %vm2345_vm6 = vcmp.gt.f32.partialorder %v7483_v3, 0.0  ;;  %v2414_v59 = vmin.f32 %v7586_v29, 0.0  ;;  %v4609_v8 = vmul.f32 -1.442695, %v3334_v26  ;;  %3886 = vrot.lane.b32.xlu0 %v5617_v10, %s5868_s25  ;;  %v7625_v26 = vpop.permute.xlu0 %3798 }
 0x202   : > { %5638 = vrcp.f32 %v3587_v25  ;;  %v3265_v5 = vmul.f32 %v5195_v35, %v6415_v48  ;;  %v5621_v45 = vpop.eup %5620  ;;  %v4472_v7 = vadd.f32 -1.0, %v5615_v39  ;;  %v3586_v11 = vadd.f32 1.0, %v5619_v33  ;;  %v8855_v39 = vld [vmem:[#allocation57_spill] sm:$0xff] }
 0x203   : > { %v2536_v13 = vmul.f32 1.442695, %v2415_v63  ;;  %v5196_v4 = vadd.f32 %v7122_v19, %v7115_v32  ;;  %v5623_v55 = vpop.eup %5622  ;;  %5640 = vpow2.f32 %v4609_v8  ;;  %v2417_v34 = vmin.f32 %v7610_v18, 0.0  ;;  %v8854_v19 = vld [vmem:[#allocation56_spill] sm:$0xff] }
 0x204   : > { %v3337_v28 = vadd.f32 %v6423_v56, %v3265_v5  ;;  %v5197_v35 = vadd.f32 %v7140_v58, %v7138_v9  ;;  %v5625_v25 = vpop.eup %5624  ;;  %5642 = vrcp.f32 %v3586_v11  ;;  %v5198_v10 = vadd.f32 %v8855_v39, %v8854_v19  ;;  %3892 = vrot.lane.b32.xlu1 %v5623_v55, %s5868_s25 }
 0x205   : > { %v7628_v63 = vadd.f32 %v7607_v52, %v5196_v4  ;;  %v3264_v32 = vmul.f32 %v5196_v4, %v6415_v48  ;;  %v5627_v33 = vpop.eup %5626  ;;  %v3589_v8 = vadd.f32 1.0, %v5625_v25  ;;  %5644 = vpow2.f32 %v2530_v16  ;;  %v7639_v4 = vpop.permute.xlu1 %3796 }
 0x206   : > { %v2534_v5 = vmul.f32 1.442695, %v2414_v59  ;;  %v4612_v60 = vmul.f32 -1.442695, %v3337_v28  ;;  %v5629_v9 = vpop.eup %5628  ;;  %5646 = vpow2.f32 %v2536_v13  ;;  %v7637_v53 = vadd.f32 %v7607_v52, %v5197_v35 }
 0x207   : > { %v2416_v58 = vmin.f32 %v7628_v63, 0.0  ;;  %v3336_v11 = vadd.f32 %v6423_v56, %v3264_v32  ;;  %v5631_v42 = vpop.eup %5630  ;;  %vm2344_vm7 = vcmp.gt.f32.partialorder %v7502_v57, 0.0  ;;  %5648 = vrcp.f32 %v3589_v8 }
 0x208   : > { %v2540_v55 = vmul.f32 1.442695, %v2417_v34  ;;  %v3267_v16 = vmul.f32 %v5197_v35, %v6415_v48  ;;  %v7644_v59 = vadd.f32 %v7607_v52, %v5198_v10  ;;  %v5633_v13 = vpop.eup %5632  ;;  %v7649_v28 = vsel %vm2343_vm4, %v7456_v49, %v4470_v17 }
 0x209   : > { %8856 = vst [vmem:[#allocation7_spill] sm:$0xff] %v7649_v28  ;;  %vm2347_vm8 = vcmp.gt.f32.partialorder %v7517_v31, 0.0  ;;  %v3588_v25 = vadd.f32 1.0, %v5631_v42  ;;  %5650 = vpow2.f32 %v4612_v60  ;;  %v4611_v32 = vmul.f32 -1.442695, %v3336_v11  ;;  %v5635_v19 = vpop.eup %5634  ;;  %3890 = vrot.lane.b32.xlu0 %v5633_v13, %s5868_s25  ;;  %v7662_v42 = vpop.permute.xlu0 %3802 }
 0x20a   : > { %v7655_v34 = vsel %vm2342_vm5, %v7462_v20, %v4469_v27  ;;  %vm2346_vm9 = vcmp.gt.f32.partialorder %v7524_v36, 0.0  ;;  %vm2349_vm10 = vcmp.gt.f32.partialorder %v7535_v21, 0.0  ;;  %5652 = vpow2.f32 %v2534_v5  ;;  %v7669_v39 = vpop.permute.xlu1 %3800 }
 0x20b   : > { %8857 = vst [vmem:[#allocation45_spill] sm:$0xff] %v7655_v34  ;;  %v2419_v35 = vmin.f32 %v7637_v53, 0.0  ;;  %v3339_v49 = vadd.f32 %v6423_v56, %v3267_v16  ;;  %v5637_v60 = vpop.eup %5636  ;;  %v7667_v17 = vsel %vm2345_vm6, %v7483_v3, %v4472_v7  ;;  %v4471_v20 = vadd.f32 -1.0, %v5621_v45  ;;  %v8859_v7 = vld [vmem:[#allocation58_spill] sm:$0xff] }
 0x20c   : > { %8858 = vst [vmem:[#allocation10_spill] sm:$0xff] %v7667_v17  ;;  %5654 = vrcp.f32 %v3588_v25  ;;  %v2538_v27 = vmul.f32 1.442695, %v2416_v58  ;;  %v5639_v8 = vpop.eup %5638  ;;  %v3591_v5 = vadd.f32 1.0, %v5637_v60  ;;  %v2418_v16 = vmin.f32 %v7644_v59, 0.0  ;;  %v8860_v58 = vld [vmem:[#allocation59_spill] sm:$0xff] }
 0x20d   : > { %5656 = vpow2.f32 %v2540_v55  ;;  %v4614_v11 = vmul.f32 -1.442695, %v3339_v49  ;;  %v4474_v13 = vadd.f32 -1.0, %v5627_v33  ;;  %v4473_v28 = vadd.f32 -1.0, %v5629_v9  ;;  %3896 = vrot.lane.b32.xlu1 %v5639_v8, %s5868_s25  ;;  %v5641_v3 = vpop.eup %5640  ;;  %v8861_v17 = vld [vmem:[#allocation60_spill] sm:$0xff] }
 0x20e   : > { %5658 = vpow2.f32 %v4611_v32  ;;  %v3266_v34 = vmul.f32 %v5198_v10, %v6415_v48  ;;  %v2544_v45 = vmul.f32 1.442695, %v2419_v35  ;;  %v5199_v25 = vadd.f32 %v8860_v58, %v8859_v7  ;;  %v5643_v55 = vpop.eup %5642  ;;  %v7679_v9 = vpop.permute.xlu1 %3804 }
 0x20f   : > { %5660 = vrcp.f32 %v3591_v5  ;;  %v5200_v60 = vadd.f32 %v7188_v0, %v8861_v17  ;;  %v4476_v49 = vadd.f32 -1.0, %v5635_v19  ;;  %v3590_v23 = vadd.f32 1.0, %v5641_v3  ;;  %v5645_v10 = vpop.eup %5644  ;;  %3894 = vrot.lane.b32.xlu0 %v5643_v55, %s5868_s25  ;;  %v7686_v5 = vpop.permute.xlu0 %3806  ;;  %v8866_v55 = vld [vmem:[#allocation23_spill] sm:$0xff] }
 0x210   : > { %5662 = vpow2.f32 %v2538_v27  ;;  %v3338_v33 = vadd.f32 %v6423_v56, %v3266_v34  ;;  %v2542_v32 = vmul.f32 1.442695, %v2418_v16  ;;  %v7682_v8 = vadd.f32 %v7607_v52, %v5199_v25  ;;  %v5647_v0 = vpop.eup %5646 }
 0x211   : > { %5664 = vpow2.f32 %v4614_v11  ;;  %v3269_v35 = vmul.f32 %v5199_v25, %v6415_v48  ;;  %v7691_v19 = vsel %vm2344_vm7, %v7502_v57, %v4471_v20  ;;  %vm2348_vm11 = vcmp.gt.f32.partialorder %v7563_v2, 0.0  ;;  %v5649_v27 = vpop.eup %5648  ;;  %v7708_v20 = vld [vmem:[%s8688_s2 + $0x1] ss:$0 sm:$0xff] }
 0x212   : > { %8862 = vst [vmem:[#allocation46_spill] sm:$0xff] %v7691_v19  ;;  %vm2351_vm12 = vcmp.gt.f32.partialorder %v7570_v12, 0.0  ;;  %5666 = vrcp.f32 %v3590_v23  ;;  %v4613_v34 = vmul.f32 -1.442695, %v3338_v33  ;;  %v7696_v17 = vadd.f32 %v7607_v52, %v5200_v60  ;;  %3900 = vrot.lane.b32.xlu1 %v5649_v27, %s5868_s25  ;;  %v7722_v3 = vpop.permute.xlu1 %3808  ;;  %v8867_v33 = vld [vmem:[#allocation24_spill] sm:$0xff] }
 0x213   : > { %v7701_v11 = vsel %vm2347_vm8, %v7517_v31, %v4474_v13  ;;  %5668 = vpow2.f32 %v2544_v45  ;;  %v2421_v16 = vmin.f32 %v7682_v8, 0.0  ;;  %v3341_v57 = vadd.f32 %v6423_v56, %v3269_v35  ;;  %v5651_v23 = vpop.eup %5650 }
 0x214   : > { %8863 = vst [vmem:[#allocation8_spill] sm:$0xff] %v7701_v11  ;;  %v7713_v52 = vsel %vm2346_vm9, %v7524_v36, %v4473_v28  ;;  %v7718_v31 = vsel %vm2349_vm10, %v7535_v21, %v4476_v49  ;;  %5670 = vpow2.f32 %v4613_v34  ;;  %v2420_v13 = vmin.f32 %v7696_v17, 0.0  ;;  %v5653_v45 = vpop.eup %5652  ;;  %v7729_v21 = vld [vmem:[%s8688_s2 + $0x2] ss:$0 sm:$0xff]  ;;  %v8868_v34 = vld [vmem:[#allocation31_spill] sm:$0xff] }
 0x215   : > { %8864 = vst [vmem:[#allocation3_spill] sm:$0xff] %v7713_v52  ;;  %8865 = vst [vmem:[#allocation5_spill] sm:$0xff] %v7718_v31  ;;  %vm2350_vm13 = vcmp.gt.f32.partialorder %v7586_v29, 0.0  ;;  %v3593_v7 = vadd.f32 1.0, %v5651_v23  ;;  %5672 = vpow2.f32 %v2542_v32  ;;  %v4616_v58 = vmul.f32 -1.442695, %v3341_v57 }
 0x216   : > { %v3268_v36 = vmul.f32 %v5200_v60, %v6415_v48  ;;  %v5655_v28 = vpop.eup %5654  ;;  %v2548_v25 = vmul.f32 1.442695, %v2421_v16  ;;  %v2683_v49 = vmul.f32 %v7708_v20, %v8866_v55  ;;  %v2682_v35 = vmul.f32 %v7708_v20, %v8867_v33  ;;  %v7740_v60 = vpop.permute.xlu0 %3810 }
 0x217   : > { %v2684_v27 = vmul.f32 %v7708_v20, %v8868_v34  ;;  %v5657_v32 = vpop.eup %5656  ;;  %v4475_v57 = vadd.f32 -1.0, %v5645_v10  ;;  %v4478_v23 = vadd.f32 -1.0, %v5647_v0  ;;  %vm2353_vm14 = vcmp.gt.f32.partialorder %v7610_v18, 0.0  ;;  %3898 = vrot.lane.b32.xlu0 %v5655_v28, %s5868_s25  ;;  %v8869_v34 = vld [vmem:[#allocation26_spill] sm:$0xff]  ;;  %v7750_v0 = vpop.permute.xlu1 %3812 }
 0x218   : > { %5674 = vrcp.f32 %v3593_v7  ;;  %v3340_v48 = vadd.f32 %v6423_v56, %v3268_v36  ;;  %v5659_v16 = vpop.eup %5658  ;;  %v2546_v55 = vmul.f32 1.442695, %v2420_v13  ;;  %v7743_v31 = vadd.f32 %v7729_v21, %v2683_v49 }
 0x219   : > { %v7746_v33 = vadd.f32 %v7729_v21, %v2682_v35  ;;  %v2685_v10 = vmul.f32 %v7708_v20, %v8869_v34  ;;  %v5661_v7 = vpop.eup %5660  ;;  %v3592_v11 = vadd.f32 1.0, %v5659_v16  ;;  %5676 = vpow2.f32 %v4616_v58  ;;  %v8870_v35 = vld [vmem:[#allocation38_spill] sm:$0xff] }
 0x21a   : > { %v4615_v56 = vmul.f32 -1.442695, %v3340_v48  ;;  %v7753_v36 = vadd.f32 %v7729_v21, %v2684_v27  ;;  %v5663_v28 = vpop.eup %5662  ;;  %v4477_v13 = vadd.f32 -1.0, %v5653_v45  ;;  %vm2352_vm15 = vcmp.gt.f32.partialorder %v7628_v63, 0.0  ;;  %3904 = vrot.lane.b32.xlu1 %v5661_v7, %s5868_s25 }
 0x21b   : > { %5678 = vpow2.f32 %v2548_v25  ;;  %v2879_v49 = vmin.f32 %v7743_v31, 0.0  ;;  %v2686_v34 = vmul.f32 %v7708_v20, %v8870_v35  ;;  %v5665_v52 = vpop.eup %5664  ;;  %v7763_v58 = vsel %vm2348_vm11, %v7563_v2, %v4475_v57  ;;  %v7778_v57 = vpop.permute.xlu0 %3814 }
 0x21c   : > { %8871 = vst [vmem:[#allocation6_spill] sm:$0xff] %v7763_v58  ;;  %v7768_v45 = vsel %vm2351_vm12, %v7570_v12, %v4478_v23  ;;  %5680 = vrcp.f32 %v3592_v11  ;;  %v2878_v25 = vmin.f32 %v7746_v33, 0.0  ;;  %v5667_v27 = vpop.eup %5666  ;;  %v4480_v48 = vadd.f32 -1.0, %v5657_v32 }
 0x21d   : > { %8872 = vst [vmem:[#allocation11_spill] sm:$0xff] %v7768_v45  ;;  %v3595_v16 = vadd.f32 1.0, %v5665_v52  ;;  %5682 = vpow2.f32 %v4615_v56  ;;  %v2944_v7 = vmul.f32 1.442695, %v2879_v49  ;;  %v5669_v35 = vpop.eup %5668  ;;  %vm2355_vm0 = vcmp.gt.f32.partialorder %v7637_v53, 0.0  ;;  %3902 = vrot.lane.b32.xlu0 %v5667_v27, %s5868_s25  ;;  %v7790_v49 = vpop.permute.xlu1 %3816 }
 0x21e   : > { %vm2354_vm1 = vcmp.gt.f32.partialorder %v7644_v59, 0.0  ;;  %5684 = vpow2.f32 %v2546_v55  ;;  %v2942_v2 = vmul.f32 1.442695, %v2878_v25  ;;  %v2880_v12 = vmin.f32 %v7753_v36, 0.0  ;;  %v5671_v32 = vpop.eup %5670  ;;  %v8874_v55 = vld [vmem:[#allocation32_spill] sm:$0xff] }
 0x21f   : > { %v7776_v11 = vadd.f32 %v7729_v21, %v2685_v10  ;;  %v7783_v52 = vsel %vm2350_vm13, %v7586_v29, %v4477_v13  ;;  %5686 = vrcp.f32 %v3595_v16  ;;  %v7786_v23 = vadd.f32 %v7729_v21, %v2686_v34  ;;  %v5673_v25 = vpop.eup %5672 }
 0x220   : > { %8873 = vst [vmem:[#allocation12_spill] sm:$0xff] %v7783_v52  ;;  %v2687_v56 = vmul.f32 %v7708_v20, %v8874_v55  ;;  %v4479_v10 = vadd.f32 -1.0, %v5663_v28  ;;  %v3594_v27 = vadd.f32 1.0, %v5671_v32  ;;  %5688 = vpow2.f32 %v2944_v7  ;;  %v8876_v7 = vld [vmem:[#allocation42_spill] sm:$0xff]  ;;  %v8885_v52 = vld [vmem:[#allocation49_spill] sm:$0xff] }
 0x221   : > { %v2946_v45 = vmul.f32 1.442695, %v2880_v12  ;;  %v7795_v58 = vsel %vm2353_vm14, %v7610_v18, %v4480_v48  ;;  %v4482_v29 = vadd.f32 -1.0, %v5669_v35  ;;  %5690 = vpow2.f32 %v2942_v2  ;;  %v8877_v48 = vld [vmem:[#allocation39_spill] sm:$0xff] }
 0x222   : > { %8875 = vst [vmem:[#allocation13_spill] sm:$0xff] %v7795_v58  ;;  %v2881_v13 = vmin.f32 %v7776_v11, 0.0  ;;  %v5675_v34 = vpop.eup %5674  ;;  %5692 = vrcp.f32 %v3594_v27  ;;  %v2882_v16 = vmin.f32 %v7786_v23, 0.0  ;;  %v7800_v28 = vadd.f32 %v7729_v21, %v2687_v56 }
 0x223   : > { %v2688_v12 = vmul.f32 %v7708_v20, %v8876_v7  ;;  %v4481_v32 = vadd.f32 -1.0, %v5673_v25  ;;  %5694 = vpow2.f32 %v2946_v45  ;;  %3908 = vrot.lane.b32.xlu1 %v5675_v34, %s5868_s25  ;;  %v2689_v35 = vmul.f32 %v7708_v20, %v8877_v48  ;;  %v5677_v2 = vpop.eup %5676  ;;  %v8879_v45 = vld [vmem:[#allocation4_spill] sm:$0xff] }
 0x224   : > { %v2948_v18 = vmul.f32 1.442695, %v2881_v13  ;;  %v7810_v55 = vsel %vm2352_vm15, %v7628_v63, %v4479_v10  ;;  %vm2357_vm2 = vcmp.gt.f32.partialorder %v7682_v8, 0.0  ;;  %v2950_v56 = vmul.f32 1.442695, %v2882_v16  ;;  %v7818_v13 = vpop.permute.xlu0 %3818  ;;  %v7826_v10 = vpop.permute.xlu1 %3820 }
 0x225   : > { %8878 = vst [vmem:[#allocation47_spill] sm:$0xff] %v7810_v55  ;;  %v2883_v25 = vmin.f32 %v7800_v28, 0.0  ;;  %v2690_v27 = vmul.f32 %v7708_v20, %v8879_v45  ;;  %v5679_v34 = vpop.eup %5678  ;;  %v3597_v7 = vadd.f32 1.0, %v5677_v2  ;;  %vm4046_vm3 = vcmask 64512  }
 0x226   : > { %5696 = vpow2.f32 %v2948_v18  ;;  %v7821_v48 = vadd.f32 %v7729_v21, %v2688_v12  ;;  %v7824_v63 = vadd.f32 %v7729_v21, %v2689_v35  ;;  %v5681_v16 = vpop.eup %5680  ;;  %vm2815_vm4 = vcmp.gt.f32.partialorder %v7743_v31, 0.0 }
 0x227   : > { %vm2814_vm5 = vcmp.gt.f32.partialorder %v7746_v33, 0.0  ;;  %5698 = vpow2.f32 %v2950_v56  ;;  %v2952_v45 = vmul.f32 1.442695, %v2883_v25  ;;  %v5683_v58 = vpop.eup %5682  ;;  %v7833_v18 = vsel %vm2355_vm0, %v7637_v53, %v4482_v29  ;;  %3906 = vrot.lane.b32.xlu0 %v5681_v16, %s5868_s25 }
 0x228   : > { %8880 = vst [vmem:[#allocation48_spill] sm:$0xff] %v7833_v18  ;;  %v7838_v12 = vsel %vm2354_vm1, %v7644_v59, %v4481_v32  ;;  %5700 = vrcp.f32 %v3597_v7  ;;  %vm2816_vm6 = vcmp.gt.f32.partialorder %v7753_v36, 0.0  ;;  %v2884_v35 = vmin.f32 %v7821_v48, 0.0  ;;  %v5685_v2 = vpop.eup %5684  ;;  %v8882_v7 = vld [vmem:[#allocation44_spill] sm:$0xff]  ;;  %v8883_v18 = vld [vmem:[#allocation9_spill] sm:$0xff] }
 0x229   : > { %8881 = vst [vmem:[#allocation15_spill] sm:$0xff] %v7838_v12  ;;  %v4484_v56 = vadd.f32 -1.0, %v5679_v34  ;;  %v3596_v25 = vadd.f32 1.0, %v5683_v58  ;;  %5702 = vpow2.f32 %v2952_v45  ;;  %v2885_v53 = vmin.f32 %v7824_v63, 0.0  ;;  %v5687_v29 = vpop.eup %5686  ;;  %v8884_v34 = vld [vmem:[#allocation16_spill] sm:$0xff] }
 0x22a   : > { %vm2817_vm7 = vcmp.gt.f32.partialorder %v7776_v11, 0.0  ;;  %v2954_v59 = vmul.f32 1.442695, %v2884_v35  ;;  %v7848_v32 = vadd.f32 %v7729_v21, %v2690_v27  ;;  %v2691_v16 = vmul.f32 %v7708_v20, %v8882_v7  ;;  %v5689_v55 = vpop.eup %5688  ;;  %3912 = vrot.lane.b32.xlu1 %v5687_v29, %s5868_s25  ;;  %v7860_v27 = vpop.permute.xlu0 %3822 }
 0x22b   : > { %v2692_v12 = vmul.f32 %v7708_v20, %v8883_v18  ;;  %5704 = vrcp.f32 %v3596_v25  ;;  %v2956_v58 = vmul.f32 1.442695, %v2885_v53  ;;  %v2693_v45 = vmul.f32 %v7708_v20, %v8884_v34  ;;  %v5691_v19 = vpop.eup %5690  ;;  %v7864_v25 = vpop.permute.xlu1 %3824 }
 0x22c   : > { %v2694_v35 = vmul.f32 %v7708_v20, %v8885_v52  ;;  %v4488_v30 = vadd.f32 -1.0, %v5689_v55  ;;  %vm2818_vm8 = vcmp.gt.f32.partialorder %v7786_v23, 0.0  ;;  %5706 = vpow2.f32 %v2954_v59  ;;  %v5693_v7 = vpop.eup %5692 }
 0x22d   : > { %v2886_v18 = vmin.f32 %v7848_v32, 0.0  ;;  %v4487_v29 = vadd.f32 -1.0, %v5691_v19  ;;  %vm2819_vm9 = vcmp.gt.f32.partialorder %v7800_v28, 0.0  ;;  %5708 = vpow2.f32 %v2956_v58  ;;  %v5695_v34 = vpop.eup %5694  ;;  %3910 = vrot.lane.b32.xlu0 %v5693_v7, %s5868_s25 }
 0x22e   : > { %v7868_v53 = vadd.f32 %v7729_v21, %v2691_v16  ;;  %v7871_v52 = vadd.f32 %v7729_v21, %v2692_v12  ;;  %v7876_v55 = vsel %vm2357_vm2, %v7682_v8, %v4484_v56  ;;  %v3135_v19 = vsel %vm2815_vm4, %v7743_v31, %v4488_v30 }
 0x22f   : > { %8886 = vst [vmem:[#allocation17_spill] sm:$0xff] %v7876_v55  ;;  %v2958_v12 = vmul.f32 1.442695, %v2886_v18  ;;  %v7888_v59 = vadd.f32 %v7729_v21, %v2693_v45  ;;  %v3983_v16 = vmul.f32 %v7578_v62, %v3135_v19  ;;  %v3134_v8 = vsel %vm2814_vm5, %v7746_v33, %v4487_v29  ;;  %v7913_v19 = vpop.permute.xlu1 %3828 }
 0x230   : > { %v4489_v56 = vadd.f32 -1.0, %v5695_v34  ;;  %v7895_v58 = vadd.f32 %v7729_v21, %v2694_v35  ;;  %v5697_v55 = vpop.eup %5696  ;;  %v4483_v47 = vadd.f32 -1.0, %v5685_v2  ;;  %v3982_v30 = vmul.f32 %v7619_v43, %v3134_v8  ;;  %v7907_v35 = vpop.permute.xlu0 %3826 }
 0x231   : > { %5710 = vpow2.f32 %v2958_v12  ;;  %v2887_v31 = vmin.f32 %v7868_v53, 0.0  ;;  %v5699_v45 = vpop.eup %5698  ;;  %vm2356_vm10 = vcmp.gt.f32.partialorder %v7696_v17, 0.0  ;;  %4048 = vst.msk [vmem:[%s7881_s12 + $0x8] sm:$0xff] %vm4046_vm3, %v3983_v16  ;;  %v4490_v33 = vadd.f32 -1.0, %v5697_v55 }
 0x232   : > { %v3136_v62 = vsel %vm2816_vm6, %v7753_v36, %v4489_v56  ;;  %vm2820_vm11 = vcmp.gt.f32.partialorder %v7821_v48, 0.0  ;;  %v2888_v2 = vmin.f32 %v7871_v52, 0.0  ;;  %v5701_v43 = vpop.eup %5700  ;;  %4047 = vst.msk [vmem:[%s7881_s12] sm:$0xff] %vm4046_vm3, %v3982_v30  ;;  %v4491_v7 = vadd.f32 -1.0, %v5699_v45 }
 0x233   : > { %v3984_v18 = vmul.f32 %v7589_v54, %v3136_v62  ;;  %v2960_v29 = vmul.f32 1.442695, %v2887_v31  ;;  %v2889_v34 = vmin.f32 %v7888_v59, 0.0  ;;  %v5703_v36 = vpop.eup %5702  ;;  %v3137_v55 = vsel %vm2817_vm7, %v7776_v11, %v4490_v33  ;;  %3916 = vrot.lane.b32.xlu1 %v5701_v43, %s5868_s25  ;;  %v8887_v33 = vld [vmem:[#allocation14_spill] sm:$0xff] }
 0x234   : > { %vm2821_vm12 = vcmp.gt.f32.partialorder %v7824_v63, 0.0  ;;  %v2962_v12 = vmul.f32 1.442695, %v2888_v2  ;;  %v2890_v16 = vmin.f32 %v7895_v58, 0.0  ;;  %v3985_v54 = vmul.f32 %v7639_v4, %v3137_v55  ;;  %v8888_v2 = vld [vmem:[#allocation51_spill] sm:$0xff]  ;;  %v7945_v55 = vpop.permute.xlu0 %3830 }
 0x235   : > { %4049 = vst.msk [vmem:[%s7881_s12 + $0x10] sm:$0xff] %vm4046_vm3, %v3984_v18  ;;  %v3138_v8 = vsel %vm2818_vm8, %v7786_v23, %v4491_v7  ;;  %v4492_v56 = vadd.f32 -1.0, %v5703_v36  ;;  %5712 = vpow2.f32 %v2960_v29  ;;  %v5705_v11 = vpop.eup %5704  ;;  %v2964_v31 = vmul.f32 1.442695, %v2889_v34  ;;  %v8890_v36 = vld [vmem:[#allocation54_spill] sm:$0xff] }
 0x236   : > { %v3986_v30 = vmul.f32 %v7625_v26, %v3138_v8  ;;  %5714 = vpow2.f32 %v2962_v12  ;;  %v2966_v45 = vmul.f32 1.442695, %v2890_v16  ;;  %v5707_v62 = vpop.eup %5706  ;;  %4050 = vst.msk [vmem:[%s7881_s12 + $0x18] sm:$0xff] %vm4046_vm3, %v3985_v54  ;;  %3914 = vrot.lane.b32.xlu0 %v5705_v11, %s5868_s25  ;;  %v2695_v23 = vmul.f32 %v7708_v20, %v8887_v33  ;;  %v8889_v26 = vld [vmem:[#allocation50_spill] sm:$0xff]  ;;  %v7953_v8 = vpop.permute.xlu1 %3832 }
 0x237   : > { %v3139_v4 = vsel %vm2819_vm9, %v7800_v28, %v4492_v56  ;;  %v2696_v43 = vmul.f32 %v7708_v20, %v8888_v2  ;;  %v2697_v18 = vmul.f32 %v7708_v20, %v8889_v26  ;;  %v5709_v7 = vpop.eup %5708  ;;  %v4493_v34 = vadd.f32 -1.0, %v5707_v62 }
 0x238   : > { %4051 = vst.msk [vmem:[%s7881_s12 + $0x20] sm:$0xff] %vm4046_vm3, %v3986_v30  ;;  %v3987_v29 = vmul.f32 %v7669_v39, %v3139_v4  ;;  %5716 = vpow2.f32 %v2964_v31  ;;  %v2698_v28 = vmul.f32 %v7708_v20, %v8890_v36  ;;  %v4494_v12 = vadd.f32 -1.0, %v5709_v7  ;;  %v8891_v30 = vld [vmem:[#allocation22_spill] sm:$0xff]  ;;  %v8892_v36 = vld [vmem:[#allocation25_spill] sm:$0xff] }
 0x239   : > { %5718 = vpow2.f32 %v2966_v45  ;;  %v7948_v16 = vadd.f32 %v7729_v21, %v2695_v23  ;;  %v7951_v54 = vadd.f32 %v7729_v21, %v2696_v43  ;;  %v3140_v39 = vsel %vm2820_vm11, %v7821_v48, %v4493_v34 }
 0x23a   : > { %4052 = vst.msk [vmem:[%s7881_s12 + $0x28] sm:$0xff] %vm4046_vm3, %v3987_v29  ;;  %v7961_v56 = vadd.f32 %v7729_v21, %v2697_v18  ;;  %v7964_v11 = vadd.f32 %v7729_v21, %v2698_v28  ;;  %v2699_v31 = vmul.f32 %v7708_v20, %v8891_v30  ;;  %v7971_v62 = vsel %vm2356_vm10, %v7696_v17, %v4483_v47  ;;  %v7993_v18 = vpop.permute.xlu0 %3834 }
 0x23b   : > { %v5711_v45 = vpop.eup %5710  ;;  %v3988_v4 = vmul.f32 %v7662_v42, %v3140_v39  ;;  %v3141_v48 = vsel %vm2821_vm12, %v7824_v63, %v4494_v12  ;;  %v2891_v33 = vmin.f32 %v7948_v16, 0.0  ;;  %vm2822_vm13 = vcmp.gt.f32.partialorder %v7848_v32, 0.0  ;;  %v7998_v12 = vpop.permute.xlu1 %3836 }
 0x23c   : > { %v3989_v23 = vmul.f32 %v7679_v9, %v3141_v48  ;;  %v4495_v2 = vadd.f32 -1.0, %v5711_v45  ;;  %v2892_v43 = vmin.f32 %v7951_v54, 0.0  ;;  %vm2823_vm14 = vcmp.gt.f32.partialorder %v7868_v53, 0.0 }
 0x23d   : > { %4053 = vst.msk [vmem:[%s7881_s12 + $0x30] sm:$0xff] %vm4046_vm3, %v3988_v4  ;;  %vm2824_vm15 = vcmp.gt.f32.partialorder %v7871_v52, 0.0  ;;  %v2968_v47 = vmul.f32 1.442695, %v2891_v33  ;;  %v2893_v42 = vmin.f32 %v7961_v56, 0.0  ;;  %v2894_v63 = vmin.f32 %v7964_v11, 0.0 }
 0x23e   : > { %4054 = vst.msk [vmem:[%s7881_s12 + $0x38] sm:$0xff] %vm4046_vm3, %v3989_v23  ;;  %v3142_v17 = vsel %vm2822_vm13, %v7848_v32, %v4495_v2  ;;  %v2970_v9 = vmul.f32 1.442695, %v2892_v43  ;;  %v7991_v26 = vadd.f32 %v7729_v21, %v2699_v31  ;;  %v2700_v28 = vmul.f32 %v7708_v20, %v8892_v36  ;;  %v8893_v33 = vld [vmem:[#allocation55_spill] sm:$0xff] }
 0x23f   : > { %v5713_v7 = vpop.eup %5712  ;;  %v3990_v29 = vmul.f32 %v7686_v5, %v3142_v17  ;;  %5720 = vpow2.f32 %v2968_v47  ;;  %v2972_v34 = vmul.f32 1.442695, %v2893_v42  ;;  %vm2825_vm0 = vcmp.gt.f32.partialorder %v7888_v59, 0.0 }
 0x240   : > { %v5715_v32 = vpop.eup %5714  ;;  %v4496_v39 = vadd.f32 -1.0, %v5713_v7  ;;  %5722 = vpow2.f32 %v2970_v9  ;;  %v2974_v30 = vmul.f32 1.442695, %v2894_v63  ;;  %v2895_v45 = vmin.f32 %v7991_v26, 0.0 }
 0x241   : > { %4055 = vst.msk [vmem:[%s7881_s12 + $0x40] sm:$0xff] %vm4046_vm3, %v3990_v29  ;;  %v4497_v31 = vadd.f32 -1.0, %v5715_v32  ;;  %5724 = vpow2.f32 %v2972_v34  ;;  %v8005_v5 = vadd.f32 %v7729_v21, %v2700_v28  ;;  %v2701_v23 = vmul.f32 %v7708_v20, %v8893_v33  ;;  %v8021_v29 = vpop.permute.xlu0 %3838 }
 0x242   : > { %v5717_v4 = vpop.eup %5716  ;;  %v3143_v48 = vsel %vm2823_vm14, %v7868_v53, %v4496_v39  ;;  %5726 = vpow2.f32 %v2974_v30  ;;  %v2702_v2 = vmul.f32 %v7708_v20, %v7210_v15  ;;  %v2976_v9 = vmul.f32 1.442695, %v2895_v45 }
 0x243   : > { %v5719_v43 = vpop.eup %5718  ;;  %v3991_v47 = vmul.f32 %v7722_v3, %v3143_v48  ;;  %v3144_v42 = vsel %vm2824_vm15, %v7871_v52, %v4497_v31  ;;  %v4498_v17 = vadd.f32 -1.0, %v5717_v4  ;;  %vm2826_vm1 = vcmp.gt.f32.partialorder %v7895_v58, 0.0  ;;  %v8034_v52 = vpop.permute.xlu1 %3840 }
 0x244   : > { %v3992_v63 = vmul.f32 %v7740_v60, %v3144_v42  ;;  %v4499_v53 = vadd.f32 -1.0, %v5719_v43  ;;  %v2896_v7 = vmin.f32 %v8005_v5, 0.0  ;;  %5728 = vpow2.f32 %v2976_v9 }
 0x245   : > { %4056 = vst.msk [vmem:[%s7881_s12 + $0x48] sm:$0xff] %vm4046_vm3, %v3991_v47  ;;  %v3145_v15 = vsel %vm2825_vm0, %v7888_v59, %v4498_v17  ;;  %v8029_v3 = vadd.f32 %v7729_v21, %v2701_v23  ;;  %v8032_v60 = vadd.f32 %v7729_v21, %v2702_v2  ;;  %v2703_v59 = vmul.f32 %v7708_v20, %v7205_v1 }
 0x246   : > { %4057 = vst.msk [vmem:[%s7881_s12 + $0x50] sm:$0xff] %vm4046_vm3, %v3992_v63  ;;  %v3993_v34 = vmul.f32 %v7750_v0, %v3145_v15  ;;  %v3146_v36 = vsel %vm2826_vm1, %v7895_v58, %v4499_v53  ;;  %v2978_v28 = vmul.f32 1.442695, %v2896_v7  ;;  %vm2827_vm2 = vcmp.gt.f32.partialorder %v7948_v16, 0.0 }
 0x247   : > { %v3994_v32 = vmul.f32 %v7778_v57, %v3146_v36  ;;  %vm2828_vm4 = vcmp.gt.f32.partialorder %v7951_v54, 0.0  ;;  %v2897_v39 = vmin.f32 %v8029_v3, 0.0  ;;  %v2898_v30 = vmin.f32 %v8032_v60, 0.0 }
 0x248   : > { %4058 = vst.msk [vmem:[%s7881_s12 + $0x58] sm:$0xff] %vm4046_vm3, %v3993_v34  ;;  %5730 = vpow2.f32 %v2978_v28  ;;  %v8050_v0 = vadd.f32 %v7729_v21, %v2703_v59  ;;  %v2704_v58 = vmul.f32 %v7708_v20, %v7224_v14  ;;  %vm2829_vm5 = vcmp.gt.f32.partialorder %v7961_v56, 0.0  ;;  %v8063_v14 = vpop.permute.xlu0 %3842 }
 0x249   : > { %v5721_v1 = vpop.eup %5720  ;;  %4059 = vst.msk [vmem:[%s7881_s12 + $0x60] sm:$0xff] %vm4046_vm3, %v3994_v32  ;;  %vm2830_vm6 = vcmp.gt.f32.partialorder %v7964_v11, 0.0  ;;  %v2980_v57 = vmul.f32 1.442695, %v2897_v39  ;;  %v2705_v31 = vmul.f32 %v7708_v20, %v7218_v61  ;;  %v2982_v48 = vmul.f32 1.442695, %v2898_v30  ;;  %v8071_v61 = vpop.permute.xlu1 %3844 }
 0x24a   : > { %v5723_v45 = vpop.eup %5722  ;;  %v4500_v4 = vadd.f32 -1.0, %v5721_v1  ;;  %v2899_v33 = vmin.f32 %v8050_v0, 0.0  ;;  %v2706_v23 = vmul.f32 %v7708_v20, %v7275_v40  ;;  %v8066_v47 = vadd.f32 %v7729_v21, %v2704_v58 }
 0x24b   : > { %v5725_v2 = vpop.eup %5724  ;;  %v4501_v43 = vadd.f32 -1.0, %v5723_v45  ;;  %5732 = vpow2.f32 %v2980_v57  ;;  %v8069_v42 = vadd.f32 %v7729_v21, %v2705_v31  ;;  %v2707_v34 = vmul.f32 %v7708_v20, %v7232_v37 }
 0x24c   : > { %v5727_v17 = vpop.eup %5726  ;;  %v3147_v9 = vsel %vm2827_vm2, %v7948_v16, %v4500_v4  ;;  %v4502_v40 = vadd.f32 -1.0, %v5725_v2  ;;  %5734 = vpow2.f32 %v2982_v48  ;;  %v2984_v63 = vmul.f32 1.442695, %v2899_v33  ;;  %v8101_v30 = vpop.permute.xlu0 %3846 }
 0x24d   : > { %v3995_v53 = vmul.f32 %v7790_v49, %v3147_v9  ;;  %v3148_v7 = vsel %vm2828_vm4, %v7951_v54, %v4501_v43  ;;  %v4503_v15 = vadd.f32 -1.0, %v5727_v17  ;;  %v2900_v28 = vmin.f32 %v8066_v47, 0.0 }
 0x24e   : > { %v3996_v36 = vmul.f32 %v7818_v13, %v3148_v7  ;;  %v3149_v16 = vsel %vm2829_vm5, %v7961_v56, %v4502_v40  ;;  %5736 = vpow2.f32 %v2984_v63  ;;  %v5729_v59 = vpop.eup %5728  ;;  %vm2831_vm7 = vcmp.gt.f32.partialorder %v7991_v26, 0.0 }
 0x24f   : > { %4060 = vst.msk [vmem:[%s7881_s12 + $0x68] sm:$0xff] %vm4046_vm3, %v3995_v53  ;;  %v3997_v49 = vmul.f32 %v7826_v10, %v3149_v16  ;;  %v3150_v54 = vsel %vm2830_vm6, %v7964_v11, %v4503_v15  ;;  %v2901_v37 = vmin.f32 %v8069_v42, 0.0  ;;  %v4504_v56 = vadd.f32 -1.0, %v5729_v59 }
 0x250   : > { %4061 = vst.msk [vmem:[%s7881_s12 + $0x70] sm:$0xff] %vm4046_vm3, %v3996_v36  ;;  %v3998_v13 = vmul.f32 %v7860_v27, %v3150_v54  ;;  %v2986_v32 = vmul.f32 1.442695, %v2900_v28  ;;  %v8099_v39 = vadd.f32 %v7729_v21, %v2706_v23  ;;  %v8106_v11 = vadd.f32 %v7729_v21, %v2707_v34  ;;  %v8112_v27 = vpop.permute.xlu1 %3848  ;;  %v8138_v63 = vpop.permute.xlu0 %3850 }
 0x251   : > { %4062 = vst.msk [vmem:[%s7881_s12 + $0x78] sm:$0xff] %vm4046_vm3, %v3997_v49  ;;  %v2988_v10 = vmul.f32 1.442695, %v2901_v37  ;;  %v2708_v58 = vmul.f32 %v7708_v20, %v7287_v46  ;;  %v2709_v1 = vmul.f32 %v7708_v20, %v7282_v44  ;;  %v3151_v31 = vsel %vm2831_vm7, %v7991_v26, %v4504_v56 }
 0x252   : > { %v5731_v57 = vpop.eup %5730  ;;  %4063 = vst.msk [vmem:[%s7881_s12 + $0x80] sm:$0xff] %vm4046_vm3, %v3998_v13  ;;  %vm2832_vm8 = vcmp.gt.f32.partialorder %v8005_v5, 0.0  ;;  %5738 = vpow2.f32 %v2986_v32  ;;  %v2902_v45 = vmin.f32 %v8099_v39, 0.0  ;;  %v3999_v46 = vmul.f32 %v7864_v25, %v3151_v31  ;;  %v8894_v32 = vld [vmem:[#allocation27_spill] sm:$0xff] }
 0x253   : > { %v4505_v4 = vadd.f32 -1.0, %v5731_v57  ;;  %vm2833_vm9 = vcmp.gt.f32.partialorder %v8029_v3, 0.0  ;;  %5740 = vpow2.f32 %v2988_v10  ;;  %v2903_v48 = vmin.f32 %v8106_v11, 0.0 }
 0x254   : > { %v2990_v44 = vmul.f32 1.442695, %v2902_v45  ;;  %v8125_v33 = vadd.f32 %v7729_v21, %v2708_v58  ;;  %v8128_v23 = vadd.f32 %v7729_v21, %v2709_v1  ;;  %4064 = vst.msk [vmem:[%s7881_s12 + $0x88] sm:$0xff] %vm4046_vm3, %v3999_v46  ;;  %vm2834_vm10 = vcmp.gt.f32.partialorder %v8032_v60, 0.0  ;;  %v8145_v34 = vpop.permute.xlu1 %3852  ;;  %v8179_v58 = vpop.permute.xlu0 %3854 }
 0x255   : > { %v5733_v26 = vpop.eup %5732  ;;  %v3152_v2 = vsel %vm2832_vm8, %v8005_v5, %v4505_v4  ;;  %vm2835_vm11 = vcmp.gt.f32.partialorder %v8050_v0, 0.0  ;;  %v2710_v25 = vmul.f32 %v7708_v20, %v7340_v50  ;;  %v2992_v40 = vmul.f32 1.442695, %v2903_v48  ;;  %v8895_v48 = vld [vmem:[#allocation29_spill] sm:$0xff] }
 0x256   : > { %v5735_v43 = vpop.eup %5734  ;;  %v4000_v17 = vmul.f32 %v7907_v35, %v3152_v2  ;;  %v4506_v9 = vadd.f32 -1.0, %v5733_v26  ;;  %5742 = vpow2.f32 %v2990_v44  ;;  %v2904_v7 = vmin.f32 %v8125_v33, 0.0  ;;  %v8896_v2 = vld [vmem:[#allocation28_spill] sm:$0xff] }
 0x257   : > { %v4507_v53 = vadd.f32 -1.0, %v5735_v43  ;;  %v2711_v5 = vmul.f32 %v7708_v20, %v7305_v22  ;;  %v2712_v15 = vmul.f32 %v7708_v20, %v7354_v6  ;;  %5744 = vpow2.f32 %v2992_v40 }
 0x258   : > { %v5737_v50 = vpop.eup %5736  ;;  %4065 = vst.msk [vmem:[%s7881_s12 + $0x90] sm:$0xff] %vm4046_vm3, %v4000_v17  ;;  %v3153_v35 = vsel %vm2833_vm9, %v8029_v3, %v4506_v9  ;;  %v2905_v36 = vmin.f32 %v8128_v23, 0.0  ;;  %v8154_v16 = vadd.f32 %v7729_v21, %v2710_v25  ;;  %v2994_v59 = vmul.f32 1.442695, %v2904_v7  ;;  %v8184_v31 = vpop.permute.xlu1 %3856 }
 0x259   : > { %v4001_v22 = vmul.f32 %v7913_v19, %v3153_v35  ;;  %v3154_v6 = vsel %vm2834_vm10, %v8032_v60, %v4507_v53  ;;  %v4508_v28 = vadd.f32 -1.0, %v5737_v50  ;;  %vm2836_vm12 = vcmp.gt.f32.partialorder %v8066_v47, 0.0  ;;  %v8897_v50 = vld [vmem:[#allocation33_spill] sm:$0xff] }
 0x25a   : > { %v4002_v49 = vmul.f32 %v7945_v55, %v3154_v6  ;;  %v2996_v3 = vmul.f32 1.442695, %v2905_v36  ;;  %v2906_v54 = vmin.f32 %v8154_v16, 0.0  ;;  %5746 = vpow2.f32 %v2994_v59 }
 0x25b   : > { %4066 = vst.msk [vmem:[%s7881_s12 + $0x98] sm:$0xff] %vm4046_vm3, %v4001_v22  ;;  %v3155_v37 = vsel %vm2835_vm11, %v8050_v0, %v4508_v28  ;;  %v8169_v19 = vadd.f32 %v7729_v21, %v2711_v5  ;;  %v8172_v60 = vadd.f32 %v7729_v21, %v2712_v15  ;;  %v2713_v10 = vmul.f32 %v7708_v20, %v8894_v32  ;;  %v8898_v28 = vld [vmem:[#allocation30_spill] sm:$0xff] }
 0x25c   : > { %v5739_v55 = vpop.eup %5738  ;;  %4067 = vst.msk [vmem:[%s7881_s12 + $0xa0] sm:$0xff] %vm4046_vm3, %v4002_v49  ;;  %v4003_v13 = vmul.f32 %v7953_v8, %v3155_v37  ;;  %5748 = vpow2.f32 %v2996_v3  ;;  %v2998_v56 = vmul.f32 1.442695, %v2906_v54  ;;  %vm2837_vm13 = vcmp.gt.f32.partialorder %v8069_v42, 0.0  ;;  %v8221_v6 = vpop.permute.xlu1 %3860 }
 0x25d   : > { %v5741_v0 = vpop.eup %5740  ;;  %v4509_v1 = vadd.f32 -1.0, %v5739_v55  ;;  %vm2838_vm14 = vcmp.gt.f32.partialorder %v8099_v39, 0.0  ;;  %v2907_v57 = vmin.f32 %v8169_v19, 0.0  ;;  %v2908_v45 = vmin.f32 %v8172_v60, 0.0 }
 0x25e   : > { %4068 = vst.msk [vmem:[%s7881_s12 + $0xa8] sm:$0xff] %vm4046_vm3, %v4003_v13  ;;  %v4510_v8 = vadd.f32 -1.0, %v5741_v0  ;;  %5750 = vpow2.f32 %v2998_v56  ;;  %v8190_v46 = vadd.f32 %v7729_v21, %v2713_v10  ;;  %v2714_v26 = vmul.f32 %v7708_v20, %v8895_v48 }
 0x25f   : > { %v3156_v4 = vsel %vm2836_vm12, %v8066_v47, %v4509_v1  ;;  %v3000_v44 = vmul.f32 1.442695, %v2907_v57  ;;  %v2715_v25 = vmul.f32 %v7708_v20, %v8896_v2  ;;  %vm2839_vm15 = vcmp.gt.f32.partialorder %v8106_v11, 0.0 }
 0x260   : > { %v5743_v43 = vpop.eup %5742  ;;  %v4004_v17 = vmul.f32 %v7993_v18, %v3156_v4  ;;  %v3157_v9 = vsel %vm2837_vm13, %v8069_v42, %v4510_v8  ;;  %v3002_v40 = vmul.f32 1.442695, %v2908_v45  ;;  %v2909_v47 = vmin.f32 %v8190_v46, 0.0  ;;  %v8212_v42 = vpop.permute.xlu0 %3858 }
 0x261   : > { %v4005_v53 = vmul.f32 %v7998_v12, %v3157_v9  ;;  %v4511_v7 = vadd.f32 -1.0, %v5743_v43  ;;  %5752 = vpow2.f32 %v3000_v44  ;;  %v5745_v5 = vpop.eup %5744  ;;  %v8207_v15 = vadd.f32 %v7729_v21, %v2714_v26  ;;  %v8257_v26 = vpop.permute.xlu1 %3864  ;;  %v8899_v43 = vld [vmem:[#allocation35_spill] sm:$0xff] }
 0x262   : > { %4069 = vst.msk [vmem:[%s7881_s12 + $0xb0] sm:$0xff] %vm4046_vm3, %v4004_v17  ;;  %5754 = vpow2.f32 %v3002_v40  ;;  %v8210_v18 = vadd.f32 %v7729_v21, %v2715_v25  ;;  %v2716_v35 = vmul.f32 %v7708_v20, %v8897_v50  ;;  %v4512_v36 = vadd.f32 -1.0, %v5745_v5 }
 0x263   : > { %4070 = vst.msk [vmem:[%s7881_s12 + $0xb8] sm:$0xff] %vm4046_vm3, %v4005_v53  ;;  %v3158_v12 = vsel %vm2838_vm14, %v8099_v39, %v4511_v7  ;;  %v3004_v22 = vmul.f32 1.442695, %v2909_v47  ;;  %v2717_v59 = vmul.f32 %v7708_v20, %v8898_v28  ;;  %vm2840_vm0 = vcmp.gt.f32.partialorder %v8125_v33, 0.0 }
 0x264   : > { %v4006_v49 = vmul.f32 %v8021_v29, %v3158_v12  ;;  %vm2841_vm1 = vcmp.gt.f32.partialorder %v8128_v23, 0.0  ;;  %v2910_v3 = vmin.f32 %v8207_v15, 0.0  ;;  %v5747_v54 = vpop.eup %5746  ;;  %v3159_v39 = vsel %vm2839_vm15, %v8106_v11, %v4512_v36  ;;  %v8251_v45 = vpop.permute.xlu0 %3862 }
 0x265   : > { %5756 = vpow2.f32 %v3004_v22  ;;  %v2911_v37 = vmin.f32 %v8210_v18, 0.0  ;;  %v8234_v55 = vadd.f32 %v7729_v21, %v2716_v35  ;;  %v4007_v29 = vmul.f32 %v8034_v52, %v3159_v39 }
 0x266   : > { %v5749_v13 = vpop.eup %5748  ;;  %4071 = vst.msk [vmem:[%s7881_s12 + $0xc0] sm:$0xff] %vm4046_vm3, %v4006_v49  ;;  %v4513_v56 = vadd.f32 -1.0, %v5747_v54  ;;  %v3006_v32 = vmul.f32 1.442695, %v2910_v3  ;;  %v8240_v10 = vadd.f32 %v7729_v21, %v2717_v59  ;;  %vm2842_vm2 = vcmp.gt.f32.partialorder %v8154_v16, 0.0 }
 0x267   : > { %v4514_v0 = vadd.f32 -1.0, %v5749_v13  ;;  %v3008_v11 = vmul.f32 1.442695, %v2911_v37  ;;  %v2912_v1 = vmin.f32 %v8234_v55, 0.0  ;;  %4072 = vst.msk [vmem:[%s7881_s12 + $0xc8] sm:$0xff] %vm4046_vm3, %v4007_v29  ;;  %vm2843_vm4 = vcmp.gt.f32.partialorder %v8169_v19, 0.0 }
 0x268   : > { %v5751_v57 = vpop.eup %5750  ;;  %v3160_v8 = vsel %vm2840_vm0, %v8125_v33, %v4513_v56  ;;  %5758 = vpow2.f32 %v3006_v32  ;;  %v2913_v52 = vmin.f32 %v8240_v10, 0.0  ;;  %v2718_v17 = vmul.f32 %v7708_v20, %v8899_v43  ;;  %v8292_v12 = vpop.permute.xlu0 %3866  ;;  %v8318_v56 = vld [vmem:[%s8688_s2 + $0x1] ss:$0 sm:$0xff] }
 0x269   : > { %v4008_v4 = vmul.f32 %v8063_v14, %v3160_v8  ;;  %v3161_v44 = vsel %vm2841_vm1, %v8128_v23, %v4514_v0  ;;  %v4515_v48 = vadd.f32 -1.0, %v5751_v57  ;;  %5760 = vpow2.f32 %v3008_v11  ;;  %v8900_v23 = vld [vmem:[#allocation34_spill] sm:$0xff] }
 0x26a   : > { %v4009_v33 = vmul.f32 %v8071_v61, %v3161_v44  ;;  %v3010_v2 = vmul.f32 1.442695, %v2912_v1  ;;  %v3012_v25 = vmul.f32 1.442695, %v2913_v52  ;;  %v2719_v40 = vmul.f32 %v7708_v20, %v8900_v23 }
 0x26b   : > { %v5753_v9 = vpop.eup %5752  ;;  %4073 = vst.msk [vmem:[%s7881_s12 + $0xd0] sm:$0xff] %vm4046_vm3, %v4008_v4  ;;  %v3162_v14 = vsel %vm2842_vm2, %v8154_v16, %v4515_v48  ;;  %v2720_v53 = vmul.f32 %v7708_v20, %v7494_v51  ;;  %v2721_v61 = vmul.f32 %v7708_v20, %v7489_v24  ;;  %v8277_v50 = vadd.f32 %v7729_v21, %v2718_v17  ;;  %v8901_v4 = vld [vmem:[#allocation37_spill] sm:$0xff]  ;;  %v8902_v48 = vld [vmem:[#allocation36_spill] sm:$0xff] }
 0x26c   : > { %v5755_v7 = vpop.eup %5754  ;;  %4074 = vst.msk [vmem:[%s7881_s12 + $0xd8] sm:$0xff] %vm4046_vm3, %v4009_v33  ;;  %v4010_v47 = vmul.f32 %v8101_v30, %v3162_v14  ;;  %v4516_v5 = vadd.f32 -1.0, %v5753_v9  ;;  %5762 = vpow2.f32 %v3010_v2  ;;  %v8280_v35 = vadd.f32 %v7729_v21, %v2719_v40  ;;  %v8323_v52 = vpop.permute.xlu0 %3870 }
 0x26d   : > { %v4517_v16 = vadd.f32 -1.0, %v5755_v7  ;;  %5764 = vpow2.f32 %v3012_v25  ;;  %v8283_v51 = vadd.f32 %v7729_v21, %v2720_v53  ;;  %vm2844_vm5 = vcmp.gt.f32.partialorder %v8172_v60, 0.0 }
 0x26e   : > { %4075 = vst.msk [vmem:[%s7881_s12 + $0xe0] sm:$0xff] %vm4046_vm3, %v4010_v47  ;;  %v3163_v24 = vsel %vm2843_vm4, %v8169_v19, %v4516_v5  ;;  %v2914_v30 = vmin.f32 %v8277_v50, 0.0  ;;  %v8295_v36 = vadd.f32 %v7729_v21, %v2721_v61  ;;  %vm2845_vm6 = vcmp.gt.f32.partialorder %v8190_v46, 0.0  ;;  %v8301_v19 = vpop.permute.xlu1 %3868  ;;  %v8903_v61 = vld [vmem:[#allocation41_spill] sm:$0xff]  ;;  %v8904_v47 = vld [vmem:[#allocation40_spill] sm:$0xff] }
 0x26f   : > { %v5757_v22 = vpop.eup %5756  ;;  %v4011_v28 = vmul.f32 %v8112_v27, %v3163_v24  ;;  %v3164_v59 = vsel %vm2844_vm5, %v8172_v60, %v4517_v16  ;;  %v2915_v49 = vmin.f32 %v8280_v35, 0.0  ;;  %vm2846_vm7 = vcmp.gt.f32.partialorder %v8207_v15, 0.0 }
 0x270   : > { %v4012_v3 = vmul.f32 %v8138_v63, %v3164_v59  ;;  %v4518_v54 = vadd.f32 -1.0, %v5757_v22  ;;  %v3014_v39 = vmul.f32 1.442695, %v2914_v30  ;;  %vm2847_vm8 = vcmp.gt.f32.partialorder %v8210_v18, 0.0  ;;  %v8374_v22 = vpop.permute.xlu0 %3874 }
 0x271   : > { %4076 = vst.msk [vmem:[%s7881_s12 + $0xe8] sm:$0xff] %vm4046_vm3, %v4011_v28  ;;  %v3016_v37 = vmul.f32 1.442695, %v2915_v49  ;;  %v2916_v27 = vmin.f32 %v8283_v51, 0.0  ;;  %v2917_v60 = vmin.f32 %v8295_v36, 0.0  ;;  %v2722_v63 = vmul.f32 %v7708_v20, %v7508_v38 }
 0x272   : > { %v5759_v13 = vpop.eup %5758  ;;  %4077 = vst.msk [vmem:[%s7881_s12 + $0xf0] sm:$0xff] %vm4046_vm3, %v4012_v3  ;;  %v3165_v29 = vsel %vm2845_vm6, %v8190_v46, %v4518_v54  ;;  %5766 = vpow2.f32 %v3014_v39  ;;  %v2723_v32 = vmul.f32 %v8318_v56, %v7499_v41  ;;  %v2724_v44 = vmul.f32 %v8318_v56, %v8901_v4 }
 0x273   : > { %v5761_v0 = vpop.eup %5760  ;;  %v4013_v11 = vmul.f32 %v8145_v34, %v3165_v29  ;;  %v4519_v1 = vadd.f32 -1.0, %v5759_v13  ;;  %5768 = vpow2.f32 %v3016_v37  ;;  %v3018_v57 = vmul.f32 1.442695, %v2916_v27  ;;  %v8336_v34 = vpop.permute.xlu1 %3872  ;;  %v8905_v37 = vld [vmem:[#allocation43_spill] sm:$0xff] }
 0x274   : > { %v4520_v8 = vadd.f32 -1.0, %v5761_v0  ;;  %v3020_v46 = vmul.f32 1.442695, %v2917_v60  ;;  %v8326_v38 = vadd.f32 %v7729_v21, %v2722_v63  ;;  %v8329_v20 = vadd.f32 %v7729_v21, %v2723_v32  ;;  %v8906_v63 = vld [vmem:[#allocation2_spill] sm:$0xff]  ;;  %v8407_v4 = vpop.permute.xlu0 %3878 }
 0x275   : > { %4078 = vst.msk [vmem:[%s7881_s12 + $0xf8] sm:$0xff] %vm4046_vm3, %v4013_v11  ;;  %v3166_v41 = vsel %vm2846_vm7, %v8207_v15, %v4519_v1  ;;  %5770 = vpow2.f32 %v3018_v57  ;;  %v2725_v33 = vmul.f32 %v8318_v56, %v8902_v48  ;;  %vm2848_vm9 = vcmp.gt.f32.partialorder %v8234_v55, 0.0 }
 0x276   : > { %v5763_v2 = vpop.eup %5762  ;;  %v4014_v21 = vmul.f32 %v8179_v58, %v3166_v41  ;;  %v3167_v25 = vsel %vm2847_vm8, %v8210_v18, %v4520_v8  ;;  %5772 = vpow2.f32 %v3020_v46  ;;  %vm2849_vm10 = vcmp.gt.f32.partialorder %v8240_v10, 0.0  ;;  %v8356_v18 = vld [vmem:[%s8688_s2 + $0x2] ss:$0 sm:$0xff] }
 0x277   : > { %v5765_v15 = vpop.eup %5764  ;;  %v4015_v43 = vmul.f32 %v8184_v31, %v3167_v25  ;;  %v4521_v17 = vadd.f32 -1.0, %v5763_v2  ;;  %v2918_v9 = vmin.f32 %v8326_v38, 0.0  ;;  %v2919_v58 = vmin.f32 %v8329_v20, 0.0  ;;  %v8379_v59 = vpop.permute.xlu1 %3876  ;;  %v8907_v25 = vld [vmem:[#allocation45_spill] sm:$0xff] }
 0x278   : > { %4079 = vst.msk [vmem:[%s7881_s12 + $0x100] sm:$0xff] %vm4046_vm3, %v4014_v21  ;;  %v4522_v14 = vadd.f32 -1.0, %v5765_v15  ;;  %v8359_v23 = vadd.f32 %v8356_v18, %v2724_v44  ;;  %v8362_v31 = vadd.f32 %v8356_v18, %v2725_v33  ;;  %v2726_v7 = vmul.f32 %v8318_v56, %v8903_v61  ;;  %v8449_v61 = vpop.permute.xlu0 %3882 }
 0x279   : > { %4080 = vst.msk [vmem:[%s7881_s12 + $0x108] sm:$0xff] %vm4046_vm3, %v4015_v43  ;;  %v3168_v40 = vsel %vm2848_vm9, %v8234_v55, %v4521_v17  ;;  %v3022_v53 = vmul.f32 1.442695, %v2918_v9  ;;  %v2727_v5 = vmul.f32 %v8318_v56, %v8904_v47  ;;  %vm2850_vm11 = vcmp.gt.f32.partialorder %v8277_v50, 0.0  ;;  %v8909_v47 = vld [vmem:[#allocation46_spill] sm:$0xff] }
 0x27a   : > { %v4016_v16 = vmul.f32 %v8212_v42, %v3168_v40  ;;  %v3169_v24 = vsel %vm2849_vm10, %v8240_v10, %v4522_v14  ;;  %v3024_v30 = vmul.f32 1.442695, %v2919_v58  ;;  %vm2851_vm12 = vcmp.gt.f32.partialorder %v8280_v35, 0.0 }
 0x27b   : > { %v4017_v28 = vmul.f32 %v8221_v6, %v3169_v24  ;;  %5774 = vpow2.f32 %v3022_v53  ;;  %v2920_v55 = vmin.f32 %v8359_v23, 0.0  ;;  %v2921_v42 = vmin.f32 %v8362_v31, 0.0  ;;  %v8410_v33 = vpop.permute.xlu1 %3880 }
 0x27c   : > { %v5767_v49 = vpop.eup %5766  ;;  %4081 = vst.msk [vmem:[%s7881_s12 + $0x110] sm:$0xff] %vm4046_vm3, %v4016_v16  ;;  %5776 = vpow2.f32 %v3024_v30  ;;  %v8385_v10 = vadd.f32 %v8356_v18, %v2726_v7  ;;  %v8388_v3 = vadd.f32 %v8356_v18, %v2727_v5  ;;  %vm2852_vm13 = vcmp.gt.f32.partialorder %v8283_v51, 0.0 }
 0x27d   : > { %v5769_v6 = vpop.eup %5768  ;;  %4082 = vst.msk [vmem:[%s7881_s12 + $0x118] sm:$0xff] %vm4046_vm3, %v4017_v28  ;;  %v4523_v54 = vadd.f32 -1.0, %v5767_v49  ;;  %v3026_v39 = vmul.f32 1.442695, %v2920_v55  ;;  %v2728_v27 = vmul.f32 %v8318_v56, %v8905_v37  ;;  %v3028_v13 = vmul.f32 1.442695, %v2921_v42 }
 0x27e   : > { %v4524_v60 = vadd.f32 -1.0, %v5769_v6  ;;  %v2922_v29 = vmin.f32 %v8385_v10, 0.0  ;;  %v2729_v32 = vmul.f32 %v8318_v56, %v8906_v63  ;;  %vm2853_vm14 = vcmp.gt.f32.partialorder %v8295_v36, 0.0  ;;  %v8910_v55 = vld [vmem:[#allocation10_spill] sm:$0xff] }
 0x27f   : > { %v5771_v0 = vpop.eup %5770  ;;  %v3170_v11 = vsel %vm2850_vm11, %v8277_v50, %v4523_v54  ;;  %5778 = vpow2.f32 %v3026_v39  ;;  %v2923_v1 = vmin.f32 %v8388_v3, 0.0  ;;  %vm2854_vm15 = vcmp.gt.f32.partialorder %v8326_v38, 0.0  ;;  %v8453_v24 = vpop.permute.xlu1 %3884 }
 0x280   : > { %v5773_v57 = vpop.eup %5772  ;;  %v4018_v8 = vmul.f32 %v8251_v45, %v3170_v11  ;;  %v3171_v46 = vsel %vm2851_vm12, %v8280_v35, %v4524_v60  ;;  %v4525_v41 = vadd.f32 -1.0, %v5771_v0  ;;  %5780 = vpow2.f32 %v3028_v13  ;;  %v8911_v0 = vld [vmem:[#allocation3_spill] sm:$0xff]  ;;  %v8484_v11 = vpop.permute.xlu0 %3886 }
 0x281   : > { %v4019_v44 = vmul.f32 %v8257_v26, %v3171_v46  ;;  %v4526_v50 = vadd.f32 -1.0, %v5773_v57  ;;  %v3030_v48 = vmul.f32 1.442695, %v2922_v29  ;;  %v3032_v2 = vmul.f32 1.442695, %v2923_v1 }
 0x282   : > { %4083 = vst.msk [vmem:[%s7881_s12 + $0x120] sm:$0xff] %vm4046_vm3, %v4018_v8  ;;  %v3172_v45 = vsel %vm2852_vm13, %v8283_v51, %v4525_v41  ;;  %v8418_v35 = vadd.f32 %v8356_v18, %v2728_v27  ;;  %v8421_v21 = vadd.f32 %v8356_v18, %v2729_v32  ;;  %v2730_v26 = vmul.f32 %v8318_v56, %v8907_v25  ;;  %v8908_v51 = vld [vmem:[#allocation7_spill] sm:$0xff] }
 0x283   : > { %4084 = vst.msk [vmem:[%s7881_s12 + $0x128] sm:$0xff] %vm4046_vm3, %v4019_v44  ;;  %v4020_v15 = vmul.f32 %v8292_v12, %v3172_v45  ;;  %v3173_v43 = vsel %vm2853_vm14, %v8295_v36, %v4526_v50  ;;  %5782 = vpow2.f32 %v3030_v48  ;;  %v2731_v17 = vmul.f32 %v8318_v56, %v8908_v51  ;;  %v8492_v41 = vpop.permute.xlu1 %3888 }
 0x284   : > { %v4021_v9 = vmul.f32 %v8301_v19, %v3173_v43  ;;  %5784 = vpow2.f32 %v3032_v2  ;;  %v2924_v14 = vmin.f32 %v8418_v35, 0.0  ;;  %vm2855_vm0 = vcmp.gt.f32.partialorder %v8329_v20, 0.0 }
 0x285   : > { %v5775_v58 = vpop.eup %5774  ;;  %4085 = vst.msk [vmem:[%s7881_s12 + $0x130] sm:$0xff] %vm4046_vm3, %v4020_v15  ;;  %v2925_v12 = vmin.f32 %v8421_v21, 0.0  ;;  %v8441_v36 = vadd.f32 %v8356_v18, %v2730_v26  ;;  %v8444_v40 = vadd.f32 %v8356_v18, %v2731_v17  ;;  %vm2856_vm1 = vcmp.gt.f32.partialorder %v8359_v23, 0.0  ;;  %v8912_v26 = vld [vmem:[#allocation8_spill] sm:$0xff]  ;;  %v8913_v15 = vld [vmem:[#allocation6_spill] sm:$0xff] }
 0x286   : > { %v5777_v53 = vpop.eup %5776  ;;  %4086 = vst.msk [vmem:[%s7881_s12 + $0x138] sm:$0xff] %vm4046_vm3, %v4021_v9  ;;  %v4527_v19 = vadd.f32 -1.0, %v5775_v58  ;;  %v3034_v7 = vmul.f32 1.442695, %v2924_v14  ;;  %v2732_v5 = vmul.f32 %v8318_v56, %v8909_v47  ;;  %v2733_v49 = vmul.f32 %v8318_v56, %v8910_v55 }
 0x287   : > { %v4528_v16 = vadd.f32 -1.0, %v5777_v53  ;;  %v3036_v30 = vmul.f32 1.442695, %v2925_v12  ;;  %v2926_v28 = vmin.f32 %v8441_v36, 0.0  ;;  %vm2857_vm2 = vcmp.gt.f32.partialorder %v8362_v31, 0.0 }
 0x288   : > { %v3174_v42 = vsel %vm2854_vm15, %v8326_v38, %v4527_v19  ;;  %5786 = vpow2.f32 %v3034_v7  ;;  %v2927_v6 = vmin.f32 %v8444_v40, 0.0  ;;  %v8469_v63 = vadd.f32 %v8356_v18, %v2732_v5  ;;  %v8914_v7 = vld [vmem:[#allocation5_spill] sm:$0xff]  ;;  %v3893_v5 = vpop.permute.xlu1 %3892 }
 0x289   : > { %v5779_v54 = vpop.eup %5778  ;;  %v4022_v39 = vmul.f32 %v8323_v52, %v3174_v42  ;;  %v3175_v37 = vsel %vm2855_vm0, %v8329_v20, %v4528_v16  ;;  %5788 = vpow2.f32 %v3036_v30  ;;  %v3038_v27 = vmul.f32 1.442695, %v2926_v28  ;;  %v8915_v30 = vld [vmem:[#allocation12_spill] sm:$0xff] }
 0x28a   : > { %v5781_v60 = vpop.eup %5780  ;;  %v4023_v13 = vmul.f32 %v8336_v34, %v3175_v37  ;;  %v4529_v29 = vadd.f32 -1.0, %v5779_v54  ;;  %v3040_v38 = vmul.f32 1.442695, %v2927_v6  ;;  %v8474_v52 = vadd.f32 %v8356_v18, %v2733_v49 }
 0x28b   : > { %4087 = vst.msk [vmem:[%s7881_s12 + $0x140] sm:$0xff] %vm4046_vm3, %v4022_v39  ;;  %v4530_v32 = vadd.f32 -1.0, %v5781_v60  ;;  %5790 = vpow2.f32 %v3038_v27  ;;  %v2734_v20 = vmul.f32 %v8318_v56, %v8911_v0  ;;  %vm2858_vm4 = vcmp.gt.f32.partialorder %v8385_v10, 0.0 }
 0x28c   : > { %4088 = vst.msk [vmem:[%s7881_s12 + $0x148] sm:$0xff] %vm4046_vm3, %v4023_v13  ;;  %v3176_v34 = vsel %vm2856_vm1, %v8359_v23, %v4529_v29  ;;  %5792 = vpow2.f32 %v3040_v38  ;;  %v2928_v1 = vmin.f32 %v8469_v63, 0.0  ;;  %vm2859_vm5 = vcmp.gt.f32.partialorder %v8388_v3, 0.0 }
 0x28d   : > { %v5783_v57 = vpop.eup %5782  ;;  %v4024_v8 = vmul.f32 %v8374_v22, %v3176_v34  ;;  %v3177_v46 = vsel %vm2857_vm2, %v8362_v31, %v4530_v32  ;;  %v2929_v23 = vmin.f32 %v8474_v52, 0.0  ;;  %v8497_v45 = vadd.f32 %v8356_v18, %v2734_v20  ;;  %v3897_v20 = vpop.permute.xlu1 %3896 }
 0x28e   : > { %v5785_v44 = vpop.eup %5784  ;;  %v4025_v50 = vmul.f32 %v8379_v59, %v3177_v46  ;;  %v4531_v48 = vadd.f32 -1.0, %v5783_v57  ;;  %v3042_v2 = vmul.f32 1.442695, %v2928_v1  ;;  %v2735_v31 = vmul.f32 %v8318_v56, %v8912_v26  ;;  %v8916_v1 = vld [vmem:[#allocation11_spill] sm:$0xff] }
 0x28f   : > { %4089 = vst.msk [vmem:[%s7881_s12 + $0x150] sm:$0xff] %vm4046_vm3, %v4024_v8  ;;  %v4532_v22 = vadd.f32 -1.0, %v5785_v44  ;;  %v3044_v25 = vmul.f32 1.442695, %v2929_v23  ;;  %v2736_v43 = vmul.f32 %v8318_v56, %v8913_v15  ;;  %vm2860_vm6 = vcmp.gt.f32.partialorder %v8418_v35, 0.0  ;;  %v8917_v23 = vld [vmem:[#allocation47_spill] sm:$0xff] }
 0x290   : > { %4090 = vst.msk [vmem:[%s7881_s12 + $0x158] sm:$0xff] %vm4046_vm3, %v4025_v50  ;;  %v3178_v59 = vsel %vm2858_vm4, %v8385_v10, %v4531_v48  ;;  %5794 = vpow2.f32 %v3042_v2  ;;  %v2930_v51 = vmin.f32 %v8497_v45, 0.0  ;;  %v8517_v14 = vadd.f32 %v8356_v18, %v2735_v31  ;;  %v8520_v10 = vpop.permute.xlu0 %3890  ;;  %v8918_v50 = vld [vmem:[#allocation13_spill] sm:$0xff] }
 0x291   : > { %v4026_v17 = vmul.f32 %v8407_v4, %v3178_v59  ;;  %v3179_v9 = vsel %vm2859_vm5, %v8388_v3, %v4532_v22  ;;  %5796 = vpow2.f32 %v3044_v25  ;;  %v8523_v19 = vadd.f32 %v8356_v18, %v2736_v43  ;;  %v8919_v25 = vld [vmem:[#allocation15_spill] sm:$0xff] }
 0x292   : > { %v5787_v58 = vpop.eup %5786  ;;  %v4027_v12 = vmul.f32 %v8410_v33, %v3179_v9  ;;  %v3046_v53 = vmul.f32 1.442695, %v2930_v51  ;;  %v2737_v4 = vmul.f32 %v8318_v56, %v8914_v7  ;;  %vm2861_vm7 = vcmp.gt.f32.partialorder %v8421_v21, 0.0 }
 0x293   : > { %v5789_v47 = vpop.eup %5788  ;;  %4091 = vst.msk [vmem:[%s7881_s12 + $0x160] sm:$0xff] %vm4046_vm3, %v4026_v17  ;;  %v4533_v3 = vadd.f32 -1.0, %v5787_v58  ;;  %v2931_v16 = vmin.f32 %v8517_v14, 0.0  ;;  %v2738_v33 = vmul.f32 %v8318_v56, %v8915_v30  ;;  %vm2862_vm8 = vcmp.gt.f32.partialorder %v8441_v36, 0.0 }
 0x294   : > { %4092 = vst.msk [vmem:[%s7881_s12 + $0x168] sm:$0xff] %vm4046_vm3, %v4027_v12  ;;  %v4534_v28 = vadd.f32 -1.0, %v5789_v47  ;;  %5798 = vpow2.f32 %v3046_v53  ;;  %v2932_v55 = vmin.f32 %v8523_v19, 0.0  ;;  %v8541_v54 = vadd.f32 %v8356_v18, %v2737_v4 }
 0x295   : > { %v5791_v49 = vpop.eup %5790  ;;  %v3180_v42 = vsel %vm2860_vm6, %v8418_v35, %v4533_v3  ;;  %v3048_v6 = vmul.f32 1.442695, %v2931_v16  ;;  %v8544_v39 = vadd.f32 %v8356_v18, %v2738_v33  ;;  %vm2863_vm9 = vcmp.gt.f32.partialorder %v8444_v40, 0.0 }
 0x296   : > { %v5793_v37 = vpop.eup %5792  ;;  %v4028_v27 = vmul.f32 %v8449_v61, %v3180_v42  ;;  %v3181_v60 = vsel %vm2861_vm7, %v8421_v21, %v4534_v28  ;;  %v4535_v13 = vadd.f32 -1.0, %v5791_v49  ;;  %v3050_v29 = vmul.f32 1.442695, %v2932_v55  ;;  %v3895_v61 = vpop.permute.xlu0 %3894  ;;  %v8921_v28 = vld [vmem:[#allocation17_spill] sm:$0xff] }
 0x297   : > { %v4029_v38 = vmul.f32 %v8453_v24, %v3181_v60  ;;  %v4536_v35 = vadd.f32 -1.0, %v5793_v37  ;;  %5800 = vpow2.f32 %v3048_v6  ;;  %vm2864_vm10 = vcmp.gt.f32.partialorder %v8469_v63, 0.0 }
 0x298   : > { %4093 = vst.msk [vmem:[%s7881_s12 + $0x170] sm:$0xff] %vm4046_vm3, %v4028_v27  ;;  %v3182_v32 = vsel %vm2862_vm8, %v8441_v36, %v4535_v13  ;;  %5802 = vpow2.f32 %v3050_v29  ;;  %v2933_v21 = vmin.f32 %v8541_v54, 0.0  ;;  %v2934_v34 = vmin.f32 %v8544_v39, 0.0 }
 0x299   : > { %4094 = vst.msk [vmem:[%s7881_s12 + $0x178] sm:$0xff] %vm4046_vm3, %v4029_v38  ;;  %v4030_v24 = vmul.f32 %v8484_v11, %v3182_v32  ;;  %v3183_v0 = vsel %vm2863_vm9, %v8444_v40, %v4536_v35  ;;  %v2739_v36 = vmul.f32 %v8318_v56, %v8916_v1  ;;  %v2740_v44 = vmul.f32 %v8318_v56, %v8917_v23 }
 0x29a   : > { %v5795_v57 = vpop.eup %5794  ;;  %v4031_v8 = vmul.f32 %v8492_v41, %v3183_v0  ;;  %v3052_v46 = vmul.f32 1.442695, %v2933_v21  ;;  %v2741_v48 = vmul.f32 %v8318_v56, %v8918_v50  ;;  %v3054_v2 = vmul.f32 1.442695, %v2934_v34  ;;  %v3899_v58 = vpop.permute.xlu0 %3898 }
 0x29b   : > { %v5797_v11 = vpop.eup %5796  ;;  %4095 = vst.msk [vmem:[%s7881_s12 + $0x180] sm:$0xff] %vm4046_vm3, %v4030_v24  ;;  %v4537_v40 = vadd.f32 -1.0, %v5795_v57  ;;  %v8574_v22 = vadd.f32 %v8356_v18, %v2739_v36  ;;  %v2742_v26 = vmul.f32 %v8318_v56, %v8919_v25  ;;  %v8581_v31 = vadd.f32 %v8356_v18, %v2740_v44 }
 0x29c   : > { %4096 = vst.msk [vmem:[%s7881_s12 + $0x188] sm:$0xff] %vm4046_vm3, %v4031_v8  ;;  %v4538_v41 = vadd.f32 -1.0, %v5797_v11  ;;  %5804 = vpow2.f32 %v3052_v46  ;;  %v8584_v15 = vadd.f32 %v8356_v18, %v2741_v48  ;;  %vm2865_vm11 = vcmp.gt.f32.partialorder %v8474_v52, 0.0 }
 0x29d   : > { %v3184_v43 = vsel %vm2864_vm10, %v8469_v63, %v4537_v40  ;;  %5806 = vpow2.f32 %v3054_v2  ;;  %v2935_v59 = vmin.f32 %v8574_v22, 0.0  ;;  %vm2866_vm12 = vcmp.gt.f32.partialorder %v8497_v45, 0.0  ;;  %v3901_v63 = vpop.permute.xlu1 %3900 }
 0x29e   : > { %v5799_v51 = vpop.eup %5798  ;;  %v4032_v17 = vmul.f32 %v8520_v10, %v3184_v43  ;;  %v3185_v9 = vsel %vm2865_vm11, %v8474_v52, %v4538_v41  ;;  %v2936_v12 = vmin.f32 %v8581_v31, 0.0  ;;  %vm2867_vm13 = vcmp.gt.f32.partialorder %v8517_v14, 0.0  ;;  %v8920_v52 = vld [vmem:[#allocation48_spill] sm:$0xff] }
 0x29f   : > { %v4033_v53 = vmul.f32 %v3893_v5, %v3185_v9  ;;  %v4539_v7 = vadd.f32 -1.0, %v5799_v51  ;;  %v3056_v4 = vmul.f32 1.442695, %v2935_v59  ;;  %v2937_v3 = vmin.f32 %v8584_v15, 0.0 }
 0x2a0   : > { %4097 = vst.msk [vmem:[%s7881_s12 + $0x190] sm:$0xff] %vm4046_vm3, %v4032_v17  ;;  %v3058_v47 = vmul.f32 1.442695, %v2936_v12  ;;  %v8600_v10 = vadd.f32 %v8356_v18, %v2742_v26  ;;  %v2743_v16 = vmul.f32 %v8318_v56, %v8920_v52  ;;  %v2744_v33 = vmul.f32 %v8318_v56, %v7971_v62 }
 0x2a1   : > { %v5801_v30 = vpop.eup %5800  ;;  %4098 = vst.msk [vmem:[%s7881_s12 + $0x198] sm:$0xff] %vm4046_vm3, %v4033_v53  ;;  %v3186_v5 = vsel %vm2866_vm12, %v8497_v45, %v4539_v7  ;;  %5808 = vpow2.f32 %v3056_v4  ;;  %v2745_v55 = vmul.f32 %v8318_v56, %v8921_v28  ;;  %v3060_v37 = vmul.f32 1.442695, %v2937_v3  ;;  %v3903_v56 = vpop.permute.xlu0 %3902 }
 0x2a2   : > { %v5803_v49 = vpop.eup %5802  ;;  %v4034_v42 = vmul.f32 %v3895_v61, %v3186_v5  ;;  %v4540_v6 = vadd.f32 -1.0, %v5801_v30  ;;  %5810 = vpow2.f32 %v3058_v47  ;;  %vm2868_vm14 = vcmp.gt.f32.partialorder %v8523_v19, 0.0  ;;  %v3905_v32 = vpop.permute.xlu1 %3904 }
 0x2a3   : > { %v4541_v27 = vadd.f32 -1.0, %v5803_v49  ;;  %v2938_v60 = vmin.f32 %v8600_v10, 0.0  ;;  %v8614_v13 = vadd.f32 %v8356_v18, %v2743_v16  ;;  %5812 = vpow2.f32 %v3060_v37 }
 0x2a4   : > { %4099 = vst.msk [vmem:[%s7881_s12 + $0x1a0] sm:$0xff] %vm4046_vm3, %v4034_v42  ;;  %v3187_v62 = vsel %vm2867_vm13, %v8517_v14, %v4540_v6  ;;  %v8622_v45 = vadd.f32 %v8356_v18, %v2744_v33  ;;  %v8625_v29 = vadd.f32 %v8356_v18, %v2745_v55  ;;  %vm2869_vm15 = vcmp.gt.f32.partialorder %v8541_v54, 0.0 }
 0x2a5   : > { %v4035_v38 = vmul.f32 %v3897_v20, %v3187_v62  ;;  %v3188_v35 = vsel %vm2868_vm14, %v8523_v19, %v4541_v27  ;;  %v3062_v61 = vmul.f32 1.442695, %v2938_v60  ;;  %v2939_v0 = vmin.f32 %v8614_v13, 0.0  ;;  %v3907_v44 = vpop.permute.xlu0 %3906 }
 0x2a6   : > { %v5805_v21 = vpop.eup %5804  ;;  %v4036_v24 = vmul.f32 %v3899_v58, %v3188_v35  ;;  %v2940_v14 = vmin.f32 %v8622_v45, 0.0  ;;  %v2941_v36 = vmin.f32 %v8625_v29, 0.0  ;;  %vm2870_vm0 = vcmp.gt.f32.partialorder %v8544_v39, 0.0  ;;  %v3909_v11 = vpop.permute.xlu1 %3908 }
 0x2a7   : > { %v5807_v34 = vpop.eup %5806  ;;  %4100 = vst.msk [vmem:[%s7881_s12 + $0x1a8] sm:$0xff] %vm4046_vm3, %v4035_v38  ;;  %v4542_v1 = vadd.f32 -1.0, %v5805_v21  ;;  %5814 = vpow2.f32 %v3062_v61  ;;  %v3064_v19 = vmul.f32 1.442695, %v2939_v0  ;;  %vm2871_vm1 = vcmp.gt.f32.partialorder %v8574_v22, 0.0 }
 0x2a8   : > { %4101 = vst.msk [vmem:[%s7881_s12 + $0x1b0] sm:$0xff] %vm4046_vm3, %v4036_v24  ;;  %v4543_v18 = vadd.f32 -1.0, %v5807_v34  ;;  %v3066_v20 = vmul.f32 1.442695, %v2940_v14  ;;  %v3068_v8 = vmul.f32 1.442695, %v2941_v36 }
 0x2a9   : > { %v3189_v57 = vsel %vm2869_vm15, %v8541_v54, %v4542_v1  ;;  %5816 = vpow2.f32 %v3064_v19  ;;  %vm2872_vm2 = vcmp.gt.f32.partialorder %v8581_v31, 0.0  ;;  %vm2873_vm4 = vcmp.gt.f32.partialorder %v8584_v15, 0.0  ;;  %v3911_v51 = vpop.permute.xlu0 %3910 }
 0x2aa   : > { %v4037_v46 = vmul.f32 %v3901_v63, %v3189_v57  ;;  %v3190_v23 = vsel %vm2870_vm0, %v8544_v39, %v4543_v18  ;;  %5818 = vpow2.f32 %v3066_v20  ;;  %v3913_v58 = vpop.permute.xlu1 %3912  ;;  %vm2874_vm5 = vcmp.gt.f32.partialorder %v8600_v10, 0.0 }
 0x2ab   : > { %v5809_v50 = vpop.eup %5808  ;;  %v4038_v48 = vmul.f32 %v3903_v56, %v3190_v23  ;;  %5820 = vpow2.f32 %v3068_v8  ;;  %vm2875_vm6 = vcmp.gt.f32.partialorder %v8614_v13, 0.0  ;;  %vm2876_vm7 = vcmp.gt.f32.partialorder %v8622_v45, 0.0 }
 0x2ac   : > { %v5811_v40 = vpop.eup %5810  ;;  %4102 = vst.msk [vmem:[%s7881_s12 + $0x1b8] sm:$0xff] %vm4046_vm3, %v4037_v46  ;;  %v4544_v2 = vadd.f32 -1.0, %v5809_v50  ;;  %vm2877_vm8 = vcmp.gt.f32.partialorder %v8625_v29, 0.0 }
 0x2ad   : > { %4103 = vst.msk [vmem:[%s7881_s12 + $0x1c0] sm:$0xff] %vm4046_vm3, %v4038_v48  ;;  %v4545_v54 = vadd.f32 -1.0, %v5811_v40  ;;  %v5813_v25 = vpop.eup %5812 }
 0x2ae   : > { %v3191_v39 = vsel %vm2871_vm1, %v8574_v22, %v4544_v2  ;;  %v4546_v43 = vadd.f32 -1.0, %v5813_v25  ;;  %v3917_v16 = vpop.permute.xlu1 %3916 }
 0x2af   : > { %v4039_v26 = vmul.f32 %v3905_v32, %v3191_v39  ;;  %v3192_v41 = vsel %vm2872_vm2, %v8581_v31, %v4545_v54 }
 0x2b0   : > { %v4040_v59 = vmul.f32 %v3907_v44, %v3192_v41  ;;  %v3193_v9 = vsel %vm2873_vm4, %v8584_v15, %v4546_v43  ;;  %v3915_v15 = vpop.permute.xlu0 %3914 }
 0x2b1   : > { %v5815_v17 = vpop.eup %5814  ;;  %4104 = vst.msk [vmem:[%s7881_s12 + $0x1c8] sm:$0xff] %vm4046_vm3, %v4039_v26  ;;  %v4041_v22 = vmul.f32 %v3909_v11, %v3193_v9 }
 0x2b2   : > { %4105 = vst.msk [vmem:[%s7881_s12 + $0x1d0] sm:$0xff] %vm4046_vm3, %v4040_v59  ;;  %v4547_v12 = vadd.f32 -1.0, %v5815_v17 }
 0x2b3   : > { %v5817_v53 = vpop.eup %5816  ;;  %4106 = vst.msk [vmem:[%s7881_s12 + $0x1d8] sm:$0xff] %vm4046_vm3, %v4041_v22 }
 0x2b4   : > { %v3194_v31 = vsel %vm2874_vm5, %v8600_v10, %v4547_v12  ;;  %v5819_v7 = vpop.eup %5818  ;;  %v4548_v4 = vadd.f32 -1.0, %v5817_v53 }
 0x2b5   : > { %v4042_v63 = vmul.f32 %v3911_v51, %v3194_v31  ;;  %v5821_v47 = vpop.eup %5820  ;;  %v4549_v3 = vadd.f32 -1.0, %v5819_v7 }
 0x2b6   : > { %v3195_v52 = vsel %vm2875_vm6, %v8614_v13, %v4548_v4  ;;  %v4550_v30 = vadd.f32 -1.0, %v5821_v47 }
 0x2b7   : > { %4107 = vst.msk [vmem:[%s7881_s12 + $0x1e0] sm:$0xff] %vm4046_vm3, %v4042_v63  ;;  %v4043_v10 = vmul.f32 %v3913_v58, %v3195_v52  ;;  %v3196_v5 = vsel %vm2876_vm7, %v8622_v45, %v4549_v3 }
 0x2b8   : > { %v4044_v33 = vmul.f32 %v3915_v15, %v3196_v5  ;;  %v3197_v28 = vsel %vm2877_vm8, %v8625_v29, %v4550_v30 }
 0x2b9   : > { %4108 = vst.msk [vmem:[%s7881_s12 + $0x1e8] sm:$0xff] %vm4046_vm3, %v4043_v10  ;;  %v4045_v55 = vmul.f32 %v3917_v16, %v3197_v28 }
 0x2ba   : > { %4109 = vst.msk [vmem:[%s7881_s12 + $0x1f0] sm:$0xff] %vm4046_vm3, %v4044_v33 }
 0x2bb   : > { %4110 = vst.msk [vmem:[%s7881_s12 + $0x1f8] sm:$0xff] %vm4046_vm3, %v4045_v55 }
 0x2bc PF: > { %s13_s16 = sadd.s32 1, %s5864_s16   ;;  %s8922_s12 = smov %s5856_s14 }
 0x2bd   : > { %p10_p7 = scmp.ge.s32.totalorder %s13_s16, 6   ;;  %s8923_s13 = smov %s5860_s15 }
 0x2be   : > { %s8924_s14 = smov %s8927_s17  ;;  %s8925_s15 = smov %s8931_s18 }
 0x2bf   :  { %12 = sbr.rel (!%p10_p7) target bundleno = 3 (0x3), region = 64 }

</bundles_post_ra>
